<compile_context>
chip_gen: v7x
topology: tpu7x:2x2x1
jax: 0.10.0
libtpu: 0.0.40
codegen_flags: <defaults>
</compile_context>

<pallas_src>
import functools

import jax
import jax.numpy as jnp
import numpy as np
from jax.experimental import pallas as pl
from jax.experimental.pallas import tpu as pltpu


def _round_up(x, m):
    return ((x + m - 1) // m) * m


def _chip_config():
    """Per-generation defaults (pure perf knobs; correctness never depends on them)."""
    kind = ""
    try:
        kind = jax.devices()[0].device_kind.lower()
    except Exception:
        pass
    multi_tc = ("v7" in kind) or ("7x" in kind)          # 2 TensorCores / chip
    has_bf16_vpu = ("v6" in kind) or multi_tc            # bf16 VALU on v6e / v7x
    return {
        "mlp_dtype": jnp.bfloat16 if has_bf16_vpu else jnp.float32,
        "num_parallel_cores": 2 if multi_tc else 1,
        # v5e/v6e: bigger B tiles amortize per-step overhead (VMEM is plentiful);
        # v7x: cap at 256 so both TensorCores get >= 1 B tile.
        "b_tile_max": 256 if multi_tc else 512,
    }


def _one_to_many_kernel(pooled_ref, w_fc_ref, b_fc_ref, ref_t_ref, r2_ref,
                        out_ref, feat_sc, x2_sc, *, w1, b1, w2, b2, mlp_dtype):
    # pooled_ref : (Bt, 2048) bf16   pooled backbone features (one B tile)
    # w_fc_ref   : (2048, 512) bf16, b_fc_ref: (1, 512) f32         (resident)
    # ref_t_ref  : (512, Rt)  bf16   reference embeddings, pre-transposed (K, N)
    # r2_ref     : (1, Rt)    f32    squared reference norms (precomputed)
    # out_ref    : (Bt, Rt)   f32    percentages
    # feat_sc    : (Bt, 512)  bf16   VMEM scratch (fc output, reused across R tiles)
    # x2_sc      : (Bt, 1)    f32    VMEM scratch (||f||^2)
    # w1/b1/w2/b2: compile-time Python-float constants of the 1->64->1 MLP.

    # fc: 2048 -> 512 (bf16 MXU, f32 accumulate) — only on the first R step of a B tile.
    @pl.when(pl.program_id(1) == 0)
    def _():
        feat = jnp.dot(pooled_ref[...], w_fc_ref[...],
                       preferred_element_type=jnp.float32) + b_fc_ref[...]   # (Bt,512) f32
        x2_sc[...] = jnp.sum(feat * feat, axis=-1, keepdims=True)            # (Bt,1) f32
        feat_sc[...] = feat.astype(jnp.bfloat16)

    # cosine similarity: (f . r) / max(||f||*||r||, 1e-8)
    # RHS is already (K, N) = (512, Rt) — native MXU layout, no in-kernel transpose.
    num = jnp.dot(feat_sc[...], ref_t_ref[...],
                  preferred_element_type=jnp.float32)                        # (Bt, Rt)
    # max(||f||*||r||, 1e-8)^2 == max(x2*r2, 1e-16); rsqrt runs on the EUP slot.
    sim = num * jax.lax.rsqrt(jnp.maximum(x2_sc[...] * r2_ref[...], 1e-16))  # (Bt, Rt) f32

    # similarity_to_percentage: Sigmoid(W2 @ ReLU(w1*sim + b1) + b2) * 100, per scalar.
    # Unrolled over the 64 hidden units.  mul/add/ReLU run in `mlp_dtype` (bf16 on
    # v6e/v7x -> 2x VPU packing); the accumulator stays f32 for accuracy.
    sim_m = sim.astype(mlp_dtype)
    lin = jnp.full_like(sim, b2)                                             # f32
    for k in range(len(w1)):
        h = jnp.maximum(sim_m * w1[k] + b1[k], 0.0)                          # mlp_dtype
        lin = lin + (h * w2[k]).astype(jnp.float32)
    # 100*sigmoid(x) == 50*tanh(x/2) + 50 : one EUP push, no f32 divide chain.
    out_ref[...] = 50.0 * jnp.tanh(0.5 * lin) + 50.0


def one_to_many_forward(x_nchw, params, *, b_tile_max=None, r_tile_max=512,
                        mlp_dtype=None):
    """x_nchw: (B, 2048, H, W) f32 backbone feature maps (NCHW, as in PyTorch)."""
    B, C, H, W = x_nchw.shape
    cfg = _chip_config()
    if b_tile_max is None:
        b_tile_max = cfg["b_tile_max"]
    if mlp_dtype is None:
        mlp_dtype = cfg["mlp_dtype"]
    num_cores = cfg["num_parallel_cores"]

    # AdaptiveAvgPool2d((1,1)) == mean over spatial dims; flatten to one minor axis so
    # XLA reduces a lane-dense (B, C, H*W) slab instead of a W<=7-lane masked reduce.
    pooled = jnp.mean(x_nchw.reshape(B, C, H * W), axis=-1)          # (B, C) f32

    ref = params["ref"].astype(jnp.float32)
    R, D = ref.shape

    # Lane-dense / tile-friendly padding.
    r_pad = _round_up(R, 128)
    r_tile = min(_round_up(r_tile_max, 128), r_pad)
    r_pad = _round_up(r_pad, r_tile)
    # Ensure >= num_cores parallel B steps on multi-TC chips (v7x), else max-size tiles.
    b_tile = min(b_tile_max, _round_up(pl.cdiv(B, num_cores), 8))
    b_pad = _round_up(B, b_tile)

    pooled_p = jnp.zeros((b_pad, C), jnp.bfloat16).at[:B].set(pooled.astype(jnp.bfloat16))
    ref_p = jnp.zeros((r_pad, D), jnp.float32).at[:R].set(ref)
    r2 = jnp.sum(ref_p * ref_p, axis=-1).reshape(1, r_pad)           # f32 squared norms
    ref_t = ref_p.T.astype(jnp.bfloat16)                             # (D, r_pad) — MXU (K,N)

    w_fc_b = params["w_fc"].astype(jnp.bfloat16)
    b_fc = params["b_fc"].reshape(1, D).astype(jnp.float32)

    # Tiny 1->64->1 MLP weights as compile-time constants (193 scalars).  NOTE: this
    # wrapper must be called with concrete (non-traced) MLP params for that reason.
    w1 = tuple(float(v) for v in np.asarray(params["w1"], np.float32).reshape(-1))
    b1 = tuple(float(v) for v in np.asarray(params["b1"], np.float32).reshape(-1))
    w2 = tuple(float(v) for v in np.asarray(params["w2"], np.float32).reshape(-1))
    b2 = float(np.asarray(params["b2"], np.float32).reshape(-1)[0])

    kernel = functools.partial(_one_to_many_kernel,
                               w1=w1, b1=b1, w2=w2, b2=b2, mlp_dtype=mlp_dtype)

    grid = (b_pad // b_tile, r_pad // r_tile)
    out_padded = pl.pallas_call(
        kernel,
        out_shape=jax.ShapeDtypeStruct((b_pad, r_pad), jnp.float32),
        grid=grid,
        in_specs=[
            pl.BlockSpec((b_tile, C), lambda i, j: (i, 0)),          # pooled (tiled over B)
            pl.BlockSpec((C, D), lambda i, j: (0, 0)),               # w_fc   (resident)
            pl.BlockSpec((1, D), lambda i, j: (0, 0)),               # b_fc   (resident)
            pl.BlockSpec((D, r_tile), lambda i, j: (0, j)),          # ref^T  (tiled over R)
            pl.BlockSpec((1, r_tile), lambda i, j: (0, j)),          # r2     (tiled over R)
        ],
        out_specs=pl.BlockSpec((b_tile, r_tile), lambda i, j: (i, j)),
        scratch_shapes=[
            pltpu.VMEM((b_tile, D), jnp.bfloat16),                   # feat (fc output)
            pltpu.VMEM((b_tile, 1), jnp.float32),                    # ||feat||^2
        ],
        compiler_params=pltpu.CompilerParams(
            dimension_semantics=("parallel", "arbitrary"),
            vmem_limit_bytes=32 * 1024 * 1024,
        ),
    )(pooled_p, w_fc_b, b_fc, ref_t, r2)

    return out_padded[:B, :R]


def reference_forward_f32(x_nchw, p):
    """Pure-JAX f32 reference matching the torch module semantics."""
    B, C, H, W = x_nchw.shape
    pooled = jnp.mean(x_nchw.reshape(B, C, H * W), axis=-1)          # (B, 2048)
    feat = pooled @ p["w_fc"] + p["b_fc"]                            # (B, 512)
    ref = p["ref"]
    num = feat @ ref.T
    denom = jnp.maximum(
        jnp.linalg.norm(feat, axis=-1, keepdims=True)
        * jnp.linalg.norm(ref, axis=-1)[None, :], 1e-8)
    sim = num / denom
    h = jnp.maximum(sim[..., None] * p["w1"].reshape(1, 1, -1)
                    + p["b1"].reshape(1, 1, -1), 0.0)
    lin = jnp.sum(h * p["w2"].reshape(1, 1, -1), axis=-1) + p["b2"].reshape(-1)[0]
    return 100.0 * jax.nn.sigmoid(lin)


def reference_forward_policy(x_nchw, p, mlp_dtype):
    """Pure-JAX reference mirroring the kernel's precision policy (bf16 matmul inputs,
    f32 accumulate, `mlp_dtype` MLP elementwise math, f32 accumulator + tanh output)."""
    B, C, H, W = x_nchw.shape
    pooled = jnp.mean(x_nchw.reshape(B, C, H * W), axis=-1)
    feat = jnp.dot(pooled.astype(jnp.bfloat16), p["w_fc"].astype(jnp.bfloat16),
                   preferred_element_type=jnp.float32) + p["b_fc"].reshape(1, -1)
    ref = p["ref"].astype(jnp.float32)
    num = jnp.dot(feat.astype(jnp.bfloat16), ref.astype(jnp.bfloat16).T,
                  preferred_element_type=jnp.float32)
    x2 = jnp.sum(feat * feat, axis=-1, keepdims=True)
    r2 = jnp.sum(ref * ref, axis=-1)[None, :]
    sim = num * jax.lax.rsqrt(jnp.maximum(x2 * r2, 1e-16))
    sim_m = sim.astype(mlp_dtype)
    w1 = p["w1"].reshape(-1).astype(mlp_dtype)
    b1 = p["b1"].reshape(-1).astype(mlp_dtype)
    w2 = p["w2"].reshape(-1).astype(mlp_dtype)
    h = jnp.maximum(sim_m[..., None] * w1 + b1, 0.0)
    lin = jnp.sum((h * w2).astype(jnp.float32), axis=-1) + p["b2"].reshape(-1)[0]
    return 50.0 * jnp.tanh(0.5 * lin) + 50.0


def make_params(key, num_reference_images):
    ks = jax.random.split(key, 7)
    return {
        "w_fc": jax.random.normal(ks[0], (2048, 512), jnp.float32) / np.sqrt(2048.0),
        "b_fc": jax.random.normal(ks[1], (1, 512), jnp.float32) * 0.01,
        # nn.Parameter(torch.randn(R, 512))
        "ref":  jax.random.normal(ks[2], (num_reference_images, 512), jnp.float32),
        # Linear(1, 64)   (torch weight (64,1) transposed)
        "w1":   jax.random.normal(ks[3], (1, 64), jnp.float32),
        "b1":   jax.random.normal(ks[4], (1, 64), jnp.float32) * 0.1,
        # Linear(64, 1)   (torch weight (1,64) as-is)
        "w2":   jax.random.normal(ks[5], (1, 64), jnp.float32) / np.sqrt(64.0),
        "b2":   jax.random.normal(ks[6], (1, 1), jnp.float32) * 0.1,
    }


if __name__ == "__main__":
    key = jax.random.PRNGKey(0)
    k_x, k_p = jax.random.split(key)

    B, C, H, W = 2, 2048, 4, 4     # backbone feature maps (small spatial extent)
    R = 8                          # num_reference_images

    x_feat = jax.random.normal(k_x, (B, C, H, W), jnp.float32)   # NCHW
    params = make_params(k_p, R)

    out = jax.block_until_ready(one_to_many_forward(x_feat, params))
    assert out.shape == (B, R) and np.isfinite(np.asarray(out)).all()

    # Tight check vs a reference using the kernel's exact precision policy.
    cfg = _chip_config()
    ref_pol = jax.block_until_ready(
        reference_forward_policy(x_feat, params, cfg["mlp_dtype"]))
    np.testing.assert_allclose(np.asarray(out), np.asarray(ref_pol),
                               rtol=2e-3, atol=5e-3)

    # Loose check vs the full-f32 torch-semantics reference (output scale 0..100):
    # bf16 quantization of matmul inputs (and MLP elementwise on v6e/v7x) separates them.
    ref_f32 = jax.block_until_ready(reference_forward_f32(x_feat, params))
    np.testing.assert_allclose(np.asarray(out), np.asarray(ref_f32),
                               rtol=5e-2, atol=2.0)

    print("KERNEL_OK")
</pallas_src>

<mosaic_0001>
module attributes {stable_mosaic.version = 11 : i64} {
  func.func @_one_to_many_kernel(%arg0: i32, %arg1: i32, %arg2: memref<8x2048xbf16, #tpu.memory_space<vmem>>, %arg3: memref<2048x512xbf16, #tpu.memory_space<vmem>>, %arg4: memref<1x512xf32, #tpu.memory_space<vmem>>, %arg5: memref<512x128xbf16, #tpu.memory_space<vmem>>, %arg6: memref<1x128xf32, #tpu.memory_space<vmem>>, %arg7: memref<8x128xf32, #tpu.memory_space<vmem>>, %arg8: memref<8x512xbf16, #tpu.memory_space<vmem>>, %arg9: memref<8x1xf32, #tpu.memory_space<vmem>>) attributes {dimension_semantics = [#tpu.dimension_semantics<parallel>, #tpu.dimension_semantics<arbitrary>], iteration_bounds = array<i64: 1, 1>, scalar_prefetch = 0 : i64, scratch_operands = 2 : i64, tpu.core_type = #tpu.core_type<tc>, window_params = [{transform_indices = @transform_0, window_bounds = array<i64: 8, 2048>}, {pipeline_mode = #tpu.pipeline_mode<synchronous>, transform_indices = @transform_1, window_bounds = array<i64: 2048, 512>}, {pipeline_mode = #tpu.pipeline_mode<synchronous>, transform_indices = @transform_2, window_bounds = array<i64: 1, 512>}, {transform_indices = @transform_3, window_bounds = array<i64: 512, 128>}, {transform_indices = @transform_4, window_bounds = array<i64: 1, 128>}, {transform_indices = @transform_5, window_bounds = array<i64: 8, 128>}]} {
    %c0_i32 = arith.constant 0 : i32
    %0 = arith.cmpi eq, %arg1, %c0_i32 : i32
    %1 = arith.extui %0 : i1 to i32
    %c0_i32_0 = arith.constant 0 : i32
    %2 = arith.cmpi ne, %1, %c0_i32_0 : i32
    scf.if %2 {
      %c0_271 = arith.constant 0 : index
      %c0_272 = arith.constant 0 : index
      %600 = vector.load %arg2[%c0_271, %c0_272] : memref<8x2048xbf16, #tpu.memory_space<vmem>>, vector<8x2048xbf16>
      %c0_273 = arith.constant 0 : index
      %c0_274 = arith.constant 0 : index
      %601 = vector.load %arg3[%c0_273, %c0_274] : memref<2048x512xbf16, #tpu.memory_space<vmem>>, vector<2048x512xbf16>
      %cst_275 = arith.constant dense<0.000000e+00> : vector<8x512xf32>
      %602 = tpu.matmul %600, %601, %cst_275 {dimension_numbers = #tpu.dot_dimension_numbers<[1], [0], [0], [1], [0, 0, 1, 1], [], []>} : vector<8x2048xbf16>, vector<2048x512xbf16>, vector<8x512xf32> -> vector<8x512xf32>
      %c0_276 = arith.constant 0 : index
      %c0_277 = arith.constant 0 : index
      %603 = vector.load %arg4[%c0_276, %c0_277] : memref<1x512xf32, #tpu.memory_space<vmem>>, vector<1x512xf32>
      %604 = vector.broadcast %603 : vector<1x512xf32> to vector<8x512xf32>
      %605 = arith.addf %602, %604 : vector<8x512xf32>
      %606 = arith.mulf %605, %605 : vector<8x512xf32>
      %cst_278 = arith.constant dense<0.000000e+00> : vector<8xf32>
      %607 = vector.multi_reduction <add>, %606, %cst_278 [1] : vector<8x512xf32> to vector<8xf32>
      %608 = vector.shape_cast %607 : vector<8xf32> to vector<8x1xf32>
      %c0_279 = arith.constant 0 : index
      %c0_280 = arith.constant 0 : index
      %609 = vector.load %arg9[%c0_279, %c0_280] : memref<8x1xf32, #tpu.memory_space<vmem>>, vector<8x1xf32>
      tpu.vector_store %arg9[%c0_279, %c0_280], %608 {strides = array<i32>} : memref<8x1xf32, #tpu.memory_space<vmem>>, vector<8x1xf32>,
      %610 = arith.truncf %605 : vector<8x512xf32> to vector<8x512xbf16>
      %c0_281 = arith.constant 0 : index
      %c0_282 = arith.constant 0 : index
      %611 = vector.load %arg8[%c0_281, %c0_282] : memref<8x512xbf16, #tpu.memory_space<vmem>>, vector<8x512xbf16>
      tpu.vector_store %arg8[%c0_281, %c0_282], %610 {strides = array<i32>} : memref<8x512xbf16, #tpu.memory_space<vmem>>, vector<8x512xbf16>,
    } else {
    }
    %c0 = arith.constant 0 : index
    %c0_1 = arith.constant 0 : index
    %3 = vector.load %arg8[%c0, %c0_1] : memref<8x512xbf16, #tpu.memory_space<vmem>>, vector<8x512xbf16>
    %c0_2 = arith.constant 0 : index
    %c0_3 = arith.constant 0 : index
    %4 = vector.load %arg5[%c0_2, %c0_3] : memref<512x128xbf16, #tpu.memory_space<vmem>>, vector<512x128xbf16>
    %cst = arith.constant dense<0.000000e+00> : vector<8x128xf32>
    %5 = tpu.matmul %3, %4, %cst {dimension_numbers = #tpu.dot_dimension_numbers<[1], [0], [0], [1], [0, 0, 1, 1], [], []>} : vector<8x512xbf16>, vector<512x128xbf16>, vector<8x128xf32> -> vector<8x128xf32>
    %c0_4 = arith.constant 0 : index
    %c0_5 = arith.constant 0 : index
    %6 = vector.load %arg9[%c0_4, %c0_5] : memref<8x1xf32, #tpu.memory_space<vmem>>, vector<8x1xf32>
    %c0_6 = arith.constant 0 : index
    %c0_7 = arith.constant 0 : index
    %7 = vector.load %arg6[%c0_6, %c0_7] : memref<1x128xf32, #tpu.memory_space<vmem>>, vector<1x128xf32>
    %8 = vector.broadcast %6 : vector<8x1xf32> to vector<8x128xf32>
    %9 = vector.broadcast %7 : vector<1x128xf32> to vector<8x128xf32>
    %10 = arith.mulf %8, %9 : vector<8x128xf32>
    %cst_8 = arith.constant 1.000000e-16 : f32
    %11 = vector.broadcast %cst_8 : f32 to vector<8x128xf32>
    %12 = arith.maximumf %10, %11 : vector<8x128xf32>
    %13 = math.rsqrt %12 : vector<8x128xf32>
    %14 = arith.mulf %5, %13 : vector<8x128xf32>
    %cst_9 = arith.constant -0.154265568 : f32
    %15 = vector.broadcast %cst_9 : f32 to vector<8x128xf32>
    %cst_10 = arith.constant 1.66087627 : f32
    %16 = vector.broadcast %cst_10 : f32 to vector<8x128xf32>
    %17 = arith.mulf %14, %16 : vector<8x128xf32>
    %cst_11 = arith.constant 6.994880e-02 : f32
    %18 = vector.broadcast %cst_11 : f32 to vector<8x128xf32>
    %19 = arith.addf %17, %18 : vector<8x128xf32>
    %cst_12 = arith.constant 0.000000e+00 : f32
    %20 = vector.broadcast %cst_12 : f32 to vector<8x128xf32>
    %21 = arith.maximumf %19, %20 : vector<8x128xf32>
    %cst_13 = arith.constant 0.0945163294 : f32
    %22 = vector.broadcast %cst_13 : f32 to vector<8x128xf32>
    %23 = arith.mulf %21, %22 : vector<8x128xf32>
    %24 = arith.addf %15, %23 : vector<8x128xf32>
    %cst_14 = arith.constant 0.255551606 : f32
    %25 = vector.broadcast %cst_14 : f32 to vector<8x128xf32>
    %26 = arith.mulf %14, %25 : vector<8x128xf32>
    %cst_15 = arith.constant -0.102518022 : f32
    %27 = vector.broadcast %cst_15 : f32 to vector<8x128xf32>
    %28 = arith.addf %26, %27 : vector<8x128xf32>
    %cst_16 = arith.constant 0.000000e+00 : f32
    %29 = vector.broadcast %cst_16 : f32 to vector<8x128xf32>
    %30 = arith.maximumf %28, %29 : vector<8x128xf32>
    %cst_17 = arith.constant -0.0750325918 : f32
    %31 = vector.broadcast %cst_17 : f32 to vector<8x128xf32>
    %32 = arith.mulf %30, %31 : vector<8x128xf32>
    %33 = arith.addf %24, %32 : vector<8x128xf32>
    %cst_18 = arith.constant 0.0289519597 : f32
    %34 = vector.broadcast %cst_18 : f32 to vector<8x128xf32>
    %35 = arith.mulf %14, %34 : vector<8x128xf32>
    %cst_19 = arith.constant 4.883860e-02 : f32
    %36 = vector.broadcast %cst_19 : f32 to vector<8x128xf32>
    %37 = arith.addf %35, %36 : vector<8x128xf32>
    %cst_20 = arith.constant 0.000000e+00 : f32
    %38 = vector.broadcast %cst_20 : f32 to vector<8x128xf32>
    %39 = arith.maximumf %37, %38 : vector<8x128xf32>
    %cst_21 = arith.constant 0.200695619 : f32
    %40 = vector.broadcast %cst_21 : f32 to vector<8x128xf32>
    %41 = arith.mulf %39, %40 : vector<8x128xf32>
    %42 = arith.addf %33, %41 : vector<8x128xf32>
    %cst_22 = arith.constant 1.37964821 : f32
    %43 = vector.broadcast %cst_22 : f32 to vector<8x128xf32>
    %44 = arith.mulf %14, %43 : vector<8x128xf32>
    %cst_23 = arith.constant -0.0185977276 : f32
    %45 = vector.broadcast %cst_23 : f32 to vector<8x128xf32>
    %46 = arith.addf %44, %45 : vector<8x128xf32>
    %cst_24 = arith.constant 0.000000e+00 : f32
    %47 = vector.broadcast %cst_24 : f32 to vector<8x128xf32>
    %48 = arith.maximumf %46, %47 : vector<8x128xf32>
    %cst_25 = arith.constant 0.234692946 : f32
    %49 = vector.broadcast %cst_25 : f32 to vector<8x128xf32>
    %50 = arith.mulf %48, %49 : vector<8x128xf32>
    %51 = arith.addf %42, %50 : vector<8x128xf32>
    %cst_26 = arith.constant 2.59828496 : f32
    %52 = vector.broadcast %cst_26 : f32 to vector<8x128xf32>
    %53 = arith.mulf %14, %52 : vector<8x128xf32>
    %cst_27 = arith.constant 0.00947327446 : f32
    %54 = vector.broadcast %cst_27 : f32 to vector<8x128xf32>
    %55 = arith.addf %53, %54 : vector<8x128xf32>
    %cst_28 = arith.constant 0.000000e+00 : f32
    %56 = vector.broadcast %cst_28 : f32 to vector<8x128xf32>
    %57 = arith.maximumf %55, %56 : vector<8x128xf32>
    %cst_29 = arith.constant 0.00244625169 : f32
    %58 = vector.broadcast %cst_29 : f32 to vector<8x128xf32>
    %59 = arith.mulf %57, %58 : vector<8x128xf32>
    %60 = arith.addf %51, %59 : vector<8x128xf32>
    %cst_30 = arith.constant -0.0297469981 : f32
    %61 = vector.broadcast %cst_30 : f32 to vector<8x128xf32>
    %62 = arith.mulf %14, %61 : vector<8x128xf32>
    %cst_31 = arith.constant -0.0708763301 : f32
    %63 = vector.broadcast %cst_31 : f32 to vector<8x128xf32>
    %64 = arith.addf %62, %63 : vector<8x128xf32>
    %cst_32 = arith.constant 0.000000e+00 : f32
    %65 = vector.broadcast %cst_32 : f32 to vector<8x128xf32>
    %66 = arith.maximumf %64, %65 : vector<8x128xf32>
    %cst_33 = arith.constant 0.237623438 : f32
    %67 = vector.broadcast %cst_33 : f32 to vector<8x128xf32>
    %68 = arith.mulf %66, %67 : vector<8x128xf32>
    %69 = arith.addf %60, %68 : vector<8x128xf32>
    %cst_34 = arith.constant 0.172620729 : f32
    %70 = vector.broadcast %cst_34 : f32 to vector<8x128xf32>
    %71 = arith.mulf %14, %70 : vector<8x128xf32>
    %cst_35 = arith.constant -0.223687336 : f32
    %72 = vector.broadcast %cst_35 : f32 to vector<8x128xf32>
    %73 = arith.addf %71, %72 : vector<8x128xf32>
    %cst_36 = arith.constant 0.000000e+00 : f32
    %74 = vector.broadcast %cst_36 : f32 to vector<8x128xf32>
    %75 = arith.maximumf %73, %74 : vector<8x128xf32>
    %cst_37 = arith.constant -0.142607838 : f32
    %76 = vector.broadcast %cst_37 : f32 to vector<8x128xf32>
    %77 = arith.mulf %75, %76 : vector<8x128xf32>
    %78 = arith.addf %69, %77 : vector<8x128xf32>
    %cst_38 = arith.constant -1.00323582 : f32
    %79 = vector.broadcast %cst_38 : f32 to vector<8x128xf32>
    %80 = arith.mulf %14, %79 : vector<8x128xf32>
    %cst_39 = arith.constant -5.01582748E-4 : f32
    %81 = vector.broadcast %cst_39 : f32 to vector<8x128xf32>
    %82 = arith.addf %80, %81 : vector<8x128xf32>
    %cst_40 = arith.constant 0.000000e+00 : f32
    %83 = vector.broadcast %cst_40 : f32 to vector<8x128xf32>
    %84 = arith.maximumf %82, %83 : vector<8x128xf32>
    %cst_41 = arith.constant 0.140694439 : f32
    %85 = vector.broadcast %cst_41 : f32 to vector<8x128xf32>
    %86 = arith.mulf %84, %85 : vector<8x128xf32>
    %87 = arith.addf %78, %86 : vector<8x128xf32>
    %cst_42 = arith.constant -1.63493669 : f32
    %88 = vector.broadcast %cst_42 : f32 to vector<8x128xf32>
    %89 = arith.mulf %14, %88 : vector<8x128xf32>
    %cst_43 = arith.constant 0.121379495 : f32
    %90 = vector.broadcast %cst_43 : f32 to vector<8x128xf32>
    %91 = arith.addf %89, %90 : vector<8x128xf32>
    %cst_44 = arith.constant 0.000000e+00 : f32
    %92 = vector.broadcast %cst_44 : f32 to vector<8x128xf32>
    %93 = arith.maximumf %91, %92 : vector<8x128xf32>
    %cst_45 = arith.constant 0.0104059391 : f32
    %94 = vector.broadcast %cst_45 : f32 to vector<8x128xf32>
    %95 = arith.mulf %93, %94 : vector<8x128xf32>
    %96 = arith.addf %87, %95 : vector<8x128xf32>
    %cst_46 = arith.constant 1.18099666 : f32
    %97 = vector.broadcast %cst_46 : f32 to vector<8x128xf32>
    %98 = arith.mulf %14, %97 : vector<8x128xf32>
    %cst_47 = arith.constant 0.0706874952 : f32
    %99 = vector.broadcast %cst_47 : f32 to vector<8x128xf32>
    %100 = arith.addf %98, %99 : vector<8x128xf32>
    %cst_48 = arith.constant 0.000000e+00 : f32
    %101 = vector.broadcast %cst_48 : f32 to vector<8x128xf32>
    %102 = arith.maximumf %100, %101 : vector<8x128xf32>
    %cst_49 = arith.constant 0.0828601047 : f32
    %103 = vector.broadcast %cst_49 : f32 to vector<8x128xf32>
    %104 = arith.mulf %102, %103 : vector<8x128xf32>
    %105 = arith.addf %96, %104 : vector<8x128xf32>
    %cst_50 = arith.constant -0.251631588 : f32
    %106 = vector.broadcast %cst_50 : f32 to vector<8x128xf32>
    %107 = arith.mulf %14, %106 : vector<8x128xf32>
    %cst_51 = arith.constant 0.0463613831 : f32
    %108 = vector.broadcast %cst_51 : f32 to vector<8x128xf32>
    %109 = arith.addf %107, %108 : vector<8x128xf32>
    %cst_52 = arith.constant 0.000000e+00 : f32
    %110 = vector.broadcast %cst_52 : f32 to vector<8x128xf32>
    %111 = arith.maximumf %109, %110 : vector<8x128xf32>
    %cst_53 = arith.constant -0.0917091519 : f32
    %112 = vector.broadcast %cst_53 : f32 to vector<8x128xf32>
    %113 = arith.mulf %111, %112 : vector<8x128xf32>
    %114 = arith.addf %105, %113 : vector<8x128xf32>
    %cst_54 = arith.constant -2.62525272 : f32
    %115 = vector.broadcast %cst_54 : f32 to vector<8x128xf32>
    %116 = arith.mulf %14, %115 : vector<8x128xf32>
    %cst_55 = arith.constant 0.08296372 : f32
    %117 = vector.broadcast %cst_55 : f32 to vector<8x128xf32>
    %118 = arith.addf %116, %117 : vector<8x128xf32>
    %cst_56 = arith.constant 0.000000e+00 : f32
    %119 = vector.broadcast %cst_56 : f32 to vector<8x128xf32>
    %120 = arith.maximumf %118, %119 : vector<8x128xf32>
    %cst_57 = arith.constant 0.0132884616 : f32
    %121 = vector.broadcast %cst_57 : f32 to vector<8x128xf32>
    %122 = arith.mulf %120, %121 : vector<8x128xf32>
    %123 = arith.addf %114, %122 : vector<8x128xf32>
    %cst_58 = arith.constant -0.216158241 : f32
    %124 = vector.broadcast %cst_58 : f32 to vector<8x128xf32>
    %125 = arith.mulf %14, %124 : vector<8x128xf32>
    %cst_59 = arith.constant -0.001230806 : f32
    %126 = vector.broadcast %cst_59 : f32 to vector<8x128xf32>
    %127 = arith.addf %125, %126 : vector<8x128xf32>
    %cst_60 = arith.constant 0.000000e+00 : f32
    %128 = vector.broadcast %cst_60 : f32 to vector<8x128xf32>
    %129 = arith.maximumf %127, %128 : vector<8x128xf32>
    %cst_61 = arith.constant 0.13147977 : f32
    %130 = vector.broadcast %cst_61 : f32 to vector<8x128xf32>
    %131 = arith.mulf %129, %130 : vector<8x128xf32>
    %132 = arith.addf %123, %131 : vector<8x128xf32>
    %cst_62 = arith.constant -0.875880957 : f32
    %133 = vector.broadcast %cst_62 : f32 to vector<8x128xf32>
    %134 = arith.mulf %14, %133 : vector<8x128xf32>
    %cst_63 = arith.constant -0.0193314534 : f32
    %135 = vector.broadcast %cst_63 : f32 to vector<8x128xf32>
    %136 = arith.addf %134, %135 : vector<8x128xf32>
    %cst_64 = arith.constant 0.000000e+00 : f32
    %137 = vector.broadcast %cst_64 : f32 to vector<8x128xf32>
    %138 = arith.maximumf %136, %137 : vector<8x128xf32>
    %cst_65 = arith.constant 0.077243194 : f32
    %139 = vector.broadcast %cst_65 : f32 to vector<8x128xf32>
    %140 = arith.mulf %138, %139 : vector<8x128xf32>
    %141 = arith.addf %132, %140 : vector<8x128xf32>
    %cst_66 = arith.constant 0.329052985 : f32
    %142 = vector.broadcast %cst_66 : f32 to vector<8x128xf32>
    %143 = arith.mulf %14, %142 : vector<8x128xf32>
    %cst_67 = arith.constant -0.042662438 : f32
    %144 = vector.broadcast %cst_67 : f32 to vector<8x128xf32>
    %145 = arith.addf %143, %144 : vector<8x128xf32>
    %cst_68 = arith.constant 0.000000e+00 : f32
    %146 = vector.broadcast %cst_68 : f32 to vector<8x128xf32>
    %147 = arith.maximumf %145, %146 : vector<8x128xf32>
    %cst_69 = arith.constant -0.0709956437 : f32
    %148 = vector.broadcast %cst_69 : f32 to vector<8x128xf32>
    %149 = arith.mulf %147, %148 : vector<8x128xf32>
    %150 = arith.addf %141, %149 : vector<8x128xf32>
    %cst_70 = arith.constant -0.840265095 : f32
    %151 = vector.broadcast %cst_70 : f32 to vector<8x128xf32>
    %152 = arith.mulf %14, %151 : vector<8x128xf32>
    %cst_71 = arith.constant 0.158378765 : f32
    %153 = vector.broadcast %cst_71 : f32 to vector<8x128xf32>
    %154 = arith.addf %152, %153 : vector<8x128xf32>
    %cst_72 = arith.constant 0.000000e+00 : f32
    %155 = vector.broadcast %cst_72 : f32 to vector<8x128xf32>
    %156 = arith.maximumf %154, %155 : vector<8x128xf32>
    %cst_73 = arith.constant -0.0548000783 : f32
    %157 = vector.broadcast %cst_73 : f32 to vector<8x128xf32>
    %158 = arith.mulf %156, %157 : vector<8x128xf32>
    %159 = arith.addf %150, %158 : vector<8x128xf32>
    %cst_74 = arith.constant -1.43590164 : f32
    %160 = vector.broadcast %cst_74 : f32 to vector<8x128xf32>
    %161 = arith.mulf %14, %160 : vector<8x128xf32>
    %cst_75 = arith.constant 5.269000e-03 : f32
    %162 = vector.broadcast %cst_75 : f32 to vector<8x128xf32>
    %163 = arith.addf %161, %162 : vector<8x128xf32>
    %cst_76 = arith.constant 0.000000e+00 : f32
    %164 = vector.broadcast %cst_76 : f32 to vector<8x128xf32>
    %165 = arith.maximumf %163, %164 : vector<8x128xf32>
    %cst_77 = arith.constant -0.0272329021 : f32
    %166 = vector.broadcast %cst_77 : f32 to vector<8x128xf32>
    %167 = arith.mulf %165, %166 : vector<8x128xf32>
    %168 = arith.addf %159, %167 : vector<8x128xf32>
    %cst_78 = arith.constant -2.29386616 : f32
    %169 = vector.broadcast %cst_78 : f32 to vector<8x128xf32>
    %170 = arith.mulf %14, %169 : vector<8x128xf32>
    %cst_79 = arith.constant -0.0427089781 : f32
    %171 = vector.broadcast %cst_79 : f32 to vector<8x128xf32>
    %172 = arith.addf %170, %171 : vector<8x128xf32>
    %cst_80 = arith.constant 0.000000e+00 : f32
    %173 = vector.broadcast %cst_80 : f32 to vector<8x128xf32>
    %174 = arith.maximumf %172, %173 : vector<8x128xf32>
    %cst_81 = arith.constant 0.0744194835 : f32
    %175 = vector.broadcast %cst_81 : f32 to vector<8x128xf32>
    %176 = arith.mulf %174, %175 : vector<8x128xf32>
    %177 = arith.addf %168, %176 : vector<8x128xf32>
    %cst_82 = arith.constant -0.477272302 : f32
    %178 = vector.broadcast %cst_82 : f32 to vector<8x128xf32>
    %179 = arith.mulf %14, %178 : vector<8x128xf32>
    %cst_83 = arith.constant 0.0729763731 : f32
    %180 = vector.broadcast %cst_83 : f32 to vector<8x128xf32>
    %181 = arith.addf %179, %180 : vector<8x128xf32>
    %cst_84 = arith.constant 0.000000e+00 : f32
    %182 = vector.broadcast %cst_84 : f32 to vector<8x128xf32>
    %183 = arith.maximumf %181, %182 : vector<8x128xf32>
    %cst_85 = arith.constant -0.105933882 : f32
    %184 = vector.broadcast %cst_85 : f32 to vector<8x128xf32>
    %185 = arith.mulf %183, %184 : vector<8x128xf32>
    %186 = arith.addf %177, %185 : vector<8x128xf32>
    %cst_86 = arith.constant -0.947411835 : f32
    %187 = vector.broadcast %cst_86 : f32 to vector<8x128xf32>
    %188 = arith.mulf %14, %187 : vector<8x128xf32>
    %cst_87 = arith.constant 0.0568173602 : f32
    %189 = vector.broadcast %cst_87 : f32 to vector<8x128xf32>
    %190 = arith.addf %188, %189 : vector<8x128xf32>
    %cst_88 = arith.constant 0.000000e+00 : f32
    %191 = vector.broadcast %cst_88 : f32 to vector<8x128xf32>
    %192 = arith.maximumf %190, %191 : vector<8x128xf32>
    %cst_89 = arith.constant 0.126834065 : f32
    %193 = vector.broadcast %cst_89 : f32 to vector<8x128xf32>
    %194 = arith.mulf %192, %193 : vector<8x128xf32>
    %195 = arith.addf %186, %194 : vector<8x128xf32>
    %cst_90 = arith.constant -0.0908318534 : f32
    %196 = vector.broadcast %cst_90 : f32 to vector<8x128xf32>
    %197 = arith.mulf %14, %196 : vector<8x128xf32>
    %cst_91 = arith.constant -0.0793681442 : f32
    %198 = vector.broadcast %cst_91 : f32 to vector<8x128xf32>
    %199 = arith.addf %197, %198 : vector<8x128xf32>
    %cst_92 = arith.constant 0.000000e+00 : f32
    %200 = vector.broadcast %cst_92 : f32 to vector<8x128xf32>
    %201 = arith.maximumf %199, %200 : vector<8x128xf32>
    %cst_93 = arith.constant -0.10850352 : f32
    %202 = vector.broadcast %cst_93 : f32 to vector<8x128xf32>
    %203 = arith.mulf %201, %202 : vector<8x128xf32>
    %204 = arith.addf %195, %203 : vector<8x128xf32>
    %cst_94 = arith.constant 2.201650e-01 : f32
    %205 = vector.broadcast %cst_94 : f32 to vector<8x128xf32>
    %206 = arith.mulf %14, %205 : vector<8x128xf32>
    %cst_95 = arith.constant 0.0517497472 : f32
    %207 = vector.broadcast %cst_95 : f32 to vector<8x128xf32>
    %208 = arith.addf %206, %207 : vector<8x128xf32>
    %cst_96 = arith.constant 0.000000e+00 : f32
    %209 = vector.broadcast %cst_96 : f32 to vector<8x128xf32>
    %210 = arith.maximumf %208, %209 : vector<8x128xf32>
    %cst_97 = arith.constant -0.01868999 : f32
    %211 = vector.broadcast %cst_97 : f32 to vector<8x128xf32>
    %212 = arith.mulf %210, %211 : vector<8x128xf32>
    %213 = arith.addf %204, %212 : vector<8x128xf32>
    %cst_98 = arith.constant 0.146301806 : f32
    %214 = vector.broadcast %cst_98 : f32 to vector<8x128xf32>
    %215 = arith.mulf %14, %214 : vector<8x128xf32>
    %cst_99 = arith.constant 0.0986870452 : f32
    %216 = vector.broadcast %cst_99 : f32 to vector<8x128xf32>
    %217 = arith.addf %215, %216 : vector<8x128xf32>
    %cst_100 = arith.constant 0.000000e+00 : f32
    %218 = vector.broadcast %cst_100 : f32 to vector<8x128xf32>
    %219 = arith.maximumf %217, %218 : vector<8x128xf32>
    %cst_101 = arith.constant -0.0618341155 : f32
    %220 = vector.broadcast %cst_101 : f32 to vector<8x128xf32>
    %221 = arith.mulf %219, %220 : vector<8x128xf32>
    %222 = arith.addf %213, %221 : vector<8x128xf32>
    %cst_102 = arith.constant -1.49244416 : f32
    %223 = vector.broadcast %cst_102 : f32 to vector<8x128xf32>
    %224 = arith.mulf %14, %223 : vector<8x128xf32>
    %cst_103 = arith.constant -0.0183233824 : f32
    %225 = vector.broadcast %cst_103 : f32 to vector<8x128xf32>
    %226 = arith.addf %224, %225 : vector<8x128xf32>
    %cst_104 = arith.constant 0.000000e+00 : f32
    %227 = vector.broadcast %cst_104 : f32 to vector<8x128xf32>
    %228 = arith.maximumf %226, %227 : vector<8x128xf32>
    %cst_105 = arith.constant -0.0649677143 : f32
    %229 = vector.broadcast %cst_105 : f32 to vector<8x128xf32>
    %230 = arith.mulf %228, %229 : vector<8x128xf32>
    %231 = arith.addf %222, %230 : vector<8x128xf32>
    %cst_106 = arith.constant -0.896499335 : f32
    %232 = vector.broadcast %cst_106 : f32 to vector<8x128xf32>
    %233 = arith.mulf %14, %232 : vector<8x128xf32>
    %cst_107 = arith.constant 3.0130145E-4 : f32
    %234 = vector.broadcast %cst_107 : f32 to vector<8x128xf32>
    %235 = arith.addf %233, %234 : vector<8x128xf32>
    %cst_108 = arith.constant 0.000000e+00 : f32
    %236 = vector.broadcast %cst_108 : f32 to vector<8x128xf32>
    %237 = arith.maximumf %235, %236 : vector<8x128xf32>
    %cst_109 = arith.constant -0.0774730518 : f32
    %238 = vector.broadcast %cst_109 : f32 to vector<8x128xf32>
    %239 = arith.mulf %237, %238 : vector<8x128xf32>
    %240 = arith.addf %231, %239 : vector<8x128xf32>
    %cst_110 = arith.constant -0.658937871 : f32
    %241 = vector.broadcast %cst_110 : f32 to vector<8x128xf32>
    %242 = arith.mulf %14, %241 : vector<8x128xf32>
    %cst_111 = arith.constant 0.0714374706 : f32
    %243 = vector.broadcast %cst_111 : f32 to vector<8x128xf32>
    %244 = arith.addf %242, %243 : vector<8x128xf32>
    %cst_112 = arith.constant 0.000000e+00 : f32
    %245 = vector.broadcast %cst_112 : f32 to vector<8x128xf32>
    %246 = arith.maximumf %244, %245 : vector<8x128xf32>
    %cst_113 = arith.constant -0.0412538126 : f32
    %247 = vector.broadcast %cst_113 : f32 to vector<8x128xf32>
    %248 = arith.mulf %246, %247 : vector<8x128xf32>
    %249 = arith.addf %240, %248 : vector<8x128xf32>
    %cst_114 = arith.constant 0.0223394278 : f32
    %250 = vector.broadcast %cst_114 : f32 to vector<8x128xf32>
    %251 = arith.mulf %14, %250 : vector<8x128xf32>
    %cst_115 = arith.constant 0.224548087 : f32
    %252 = vector.broadcast %cst_115 : f32 to vector<8x128xf32>
    %253 = arith.addf %251, %252 : vector<8x128xf32>
    %cst_116 = arith.constant 0.000000e+00 : f32
    %254 = vector.broadcast %cst_116 : f32 to vector<8x128xf32>
    %255 = arith.maximumf %253, %254 : vector<8x128xf32>
    %cst_117 = arith.constant 0.0988581255 : f32
    %256 = vector.broadcast %cst_117 : f32 to vector<8x128xf32>
    %257 = arith.mulf %255, %256 : vector<8x128xf32>
    %258 = arith.addf %249, %257 : vector<8x128xf32>
    %cst_118 = arith.constant 0.303018779 : f32
    %259 = vector.broadcast %cst_118 : f32 to vector<8x128xf32>
    %260 = arith.mulf %14, %259 : vector<8x128xf32>
    %cst_119 = arith.constant 0.242864713 : f32
    %261 = vector.broadcast %cst_119 : f32 to vector<8x128xf32>
    %262 = arith.addf %260, %261 : vector<8x128xf32>
    %cst_120 = arith.constant 0.000000e+00 : f32
    %263 = vector.broadcast %cst_120 : f32 to vector<8x128xf32>
    %264 = arith.maximumf %262, %263 : vector<8x128xf32>
    %cst_121 = arith.constant 0.119037062 : f32
    %265 = vector.broadcast %cst_121 : f32 to vector<8x128xf32>
    %266 = arith.mulf %264, %265 : vector<8x128xf32>
    %267 = arith.addf %258, %266 : vector<8x128xf32>
    %cst_122 = arith.constant -1.16425681 : f32
    %268 = vector.broadcast %cst_122 : f32 to vector<8x128xf32>
    %269 = arith.mulf %14, %268 : vector<8x128xf32>
    %cst_123 = arith.constant -0.121943809 : f32
    %270 = vector.broadcast %cst_123 : f32 to vector<8x128xf32>
    %271 = arith.addf %269, %270 : vector<8x128xf32>
    %cst_124 = arith.constant 0.000000e+00 : f32
    %272 = vector.broadcast %cst_124 : f32 to vector<8x128xf32>
    %273 = arith.maximumf %271, %272 : vector<8x128xf32>
    %cst_125 = arith.constant -0.036456544 : f32
    %274 = vector.broadcast %cst_125 : f32 to vector<8x128xf32>
    %275 = arith.mulf %273, %274 : vector<8x128xf32>
    %276 = arith.addf %267, %275 : vector<8x128xf32>
    %cst_126 = arith.constant -0.0572431684 : f32
    %277 = vector.broadcast %cst_126 : f32 to vector<8x128xf32>
    %278 = arith.mulf %14, %277 : vector<8x128xf32>
    %cst_127 = arith.constant 0.0125778457 : f32
    %279 = vector.broadcast %cst_127 : f32 to vector<8x128xf32>
    %280 = arith.addf %278, %279 : vector<8x128xf32>
    %cst_128 = arith.constant 0.000000e+00 : f32
    %281 = vector.broadcast %cst_128 : f32 to vector<8x128xf32>
    %282 = arith.maximumf %280, %281 : vector<8x128xf32>
    %cst_129 = arith.constant -0.16856572 : f32
    %283 = vector.broadcast %cst_129 : f32 to vector<8x128xf32>
    %284 = arith.mulf %282, %283 : vector<8x128xf32>
    %285 = arith.addf %276, %284 : vector<8x128xf32>
    %cst_130 = arith.constant -1.05618572 : f32
    %286 = vector.broadcast %cst_130 : f32 to vector<8x128xf32>
    %287 = arith.mulf %14, %286 : vector<8x128xf32>
    %cst_131 = arith.constant 0.179284751 : f32
    %288 = vector.broadcast %cst_131 : f32 to vector<8x128xf32>
    %289 = arith.addf %287, %288 : vector<8x128xf32>
    %cst_132 = arith.constant 0.000000e+00 : f32
    %290 = vector.broadcast %cst_132 : f32 to vector<8x128xf32>
    %291 = arith.maximumf %289, %290 : vector<8x128xf32>
    %cst_133 = arith.constant -0.169168547 : f32
    %292 = vector.broadcast %cst_133 : f32 to vector<8x128xf32>
    %293 = arith.mulf %291, %292 : vector<8x128xf32>
    %294 = arith.addf %285, %293 : vector<8x128xf32>
    %cst_134 = arith.constant -0.541645467 : f32
    %295 = vector.broadcast %cst_134 : f32 to vector<8x128xf32>
    %296 = arith.mulf %14, %295 : vector<8x128xf32>
    %cst_135 = arith.constant -0.0279110223 : f32
    %297 = vector.broadcast %cst_135 : f32 to vector<8x128xf32>
    %298 = arith.addf %296, %297 : vector<8x128xf32>
    %cst_136 = arith.constant 0.000000e+00 : f32
    %299 = vector.broadcast %cst_136 : f32 to vector<8x128xf32>
    %300 = arith.maximumf %298, %299 : vector<8x128xf32>
    %cst_137 = arith.constant -0.0363554135 : f32
    %301 = vector.broadcast %cst_137 : f32 to vector<8x128xf32>
    %302 = arith.mulf %300, %301 : vector<8x128xf32>
    %303 = arith.addf %294, %302 : vector<8x128xf32>
    %cst_138 = arith.constant 1.08591032 : f32
    %304 = vector.broadcast %cst_138 : f32 to vector<8x128xf32>
    %305 = arith.mulf %14, %304 : vector<8x128xf32>
    %cst_139 = arith.constant -0.0572791584 : f32
    %306 = vector.broadcast %cst_139 : f32 to vector<8x128xf32>
    %307 = arith.addf %305, %306 : vector<8x128xf32>
    %cst_140 = arith.constant 0.000000e+00 : f32
    %308 = vector.broadcast %cst_140 : f32 to vector<8x128xf32>
    %309 = arith.maximumf %307, %308 : vector<8x128xf32>
    %cst_141 = arith.constant 0.132236719 : f32
    %310 = vector.broadcast %cst_141 : f32 to vector<8x128xf32>
    %311 = arith.mulf %309, %310 : vector<8x128xf32>
    %312 = arith.addf %303, %311 : vector<8x128xf32>
    %cst_142 = arith.constant 1.56998014 : f32
    %313 = vector.broadcast %cst_142 : f32 to vector<8x128xf32>
    %314 = arith.mulf %14, %313 : vector<8x128xf32>
    %cst_143 = arith.constant 0.0939253792 : f32
    %315 = vector.broadcast %cst_143 : f32 to vector<8x128xf32>
    %316 = arith.addf %314, %315 : vector<8x128xf32>
    %cst_144 = arith.constant 0.000000e+00 : f32
    %317 = vector.broadcast %cst_144 : f32 to vector<8x128xf32>
    %318 = arith.maximumf %316, %317 : vector<8x128xf32>
    %cst_145 = arith.constant -0.00734722149 : f32
    %319 = vector.broadcast %cst_145 : f32 to vector<8x128xf32>
    %320 = arith.mulf %318, %319 : vector<8x128xf32>
    %321 = arith.addf %312, %320 : vector<8x128xf32>
    %cst_146 = arith.constant -0.91292864 : f32
    %322 = vector.broadcast %cst_146 : f32 to vector<8x128xf32>
    %323 = arith.mulf %14, %322 : vector<8x128xf32>
    %cst_147 = arith.constant -0.13320379 : f32
    %324 = vector.broadcast %cst_147 : f32 to vector<8x128xf32>
    %325 = arith.addf %323, %324 : vector<8x128xf32>
    %cst_148 = arith.constant 0.000000e+00 : f32
    %326 = vector.broadcast %cst_148 : f32 to vector<8x128xf32>
    %327 = arith.maximumf %325, %326 : vector<8x128xf32>
    %cst_149 = arith.constant -0.0930293425 : f32
    %328 = vector.broadcast %cst_149 : f32 to vector<8x128xf32>
    %329 = arith.mulf %327, %328 : vector<8x128xf32>
    %330 = arith.addf %321, %329 : vector<8x128xf32>
    %cst_150 = arith.constant -0.583604515 : f32
    %331 = vector.broadcast %cst_150 : f32 to vector<8x128xf32>
    %332 = arith.mulf %14, %331 : vector<8x128xf32>
    %cst_151 = arith.constant -0.161740705 : f32
    %333 = vector.broadcast %cst_151 : f32 to vector<8x128xf32>
    %334 = arith.addf %332, %333 : vector<8x128xf32>
    %cst_152 = arith.constant 0.000000e+00 : f32
    %335 = vector.broadcast %cst_152 : f32 to vector<8x128xf32>
    %336 = arith.maximumf %334, %335 : vector<8x128xf32>
    %cst_153 = arith.constant -0.0754300877 : f32
    %337 = vector.broadcast %cst_153 : f32 to vector<8x128xf32>
    %338 = arith.mulf %336, %337 : vector<8x128xf32>
    %339 = arith.addf %330, %338 : vector<8x128xf32>
    %cst_154 = arith.constant -0.554858863 : f32
    %340 = vector.broadcast %cst_154 : f32 to vector<8x128xf32>
    %341 = arith.mulf %14, %340 : vector<8x128xf32>
    %cst_155 = arith.constant -0.0366555117 : f32
    %342 = vector.broadcast %cst_155 : f32 to vector<8x128xf32>
    %343 = arith.addf %341, %342 : vector<8x128xf32>
    %cst_156 = arith.constant 0.000000e+00 : f32
    %344 = vector.broadcast %cst_156 : f32 to vector<8x128xf32>
    %345 = arith.maximumf %343, %344 : vector<8x128xf32>
    %cst_157 = arith.constant -0.22270152 : f32
    %346 = vector.broadcast %cst_157 : f32 to vector<8x128xf32>
    %347 = arith.mulf %345, %346 : vector<8x128xf32>
    %348 = arith.addf %339, %347 : vector<8x128xf32>
    %cst_158 = arith.constant -0.213823766 : f32
    %349 = vector.broadcast %cst_158 : f32 to vector<8x128xf32>
    %350 = arith.mulf %14, %349 : vector<8x128xf32>
    %cst_159 = arith.constant 0.109363906 : f32
    %351 = vector.broadcast %cst_159 : f32 to vector<8x128xf32>
    %352 = arith.addf %350, %351 : vector<8x128xf32>
    %cst_160 = arith.constant 0.000000e+00 : f32
    %353 = vector.broadcast %cst_160 : f32 to vector<8x128xf32>
    %354 = arith.maximumf %352, %353 : vector<8x128xf32>
    %cst_161 = arith.constant 3.29451432E-4 : f32
    %355 = vector.broadcast %cst_161 : f32 to vector<8x128xf32>
    %356 = arith.mulf %354, %355 : vector<8x128xf32>
    %357 = arith.addf %348, %356 : vector<8x128xf32>
    %cst_162 = arith.constant 1.40086627 : f32
    %358 = vector.broadcast %cst_162 : f32 to vector<8x128xf32>
    %359 = arith.mulf %14, %358 : vector<8x128xf32>
    %cst_163 = arith.constant 0.0181973353 : f32
    %360 = vector.broadcast %cst_163 : f32 to vector<8x128xf32>
    %361 = arith.addf %359, %360 : vector<8x128xf32>
    %cst_164 = arith.constant 0.000000e+00 : f32
    %362 = vector.broadcast %cst_164 : f32 to vector<8x128xf32>
    %363 = arith.maximumf %361, %362 : vector<8x128xf32>
    %cst_165 = arith.constant 0.0808407962 : f32
    %364 = vector.broadcast %cst_165 : f32 to vector<8x128xf32>
    %365 = arith.mulf %363, %364 : vector<8x128xf32>
    %366 = arith.addf %357, %365 : vector<8x128xf32>
    %cst_166 = arith.constant -0.787306666 : f32
    %367 = vector.broadcast %cst_166 : f32 to vector<8x128xf32>
    %368 = arith.mulf %14, %367 : vector<8x128xf32>
    %cst_167 = arith.constant -0.0914006158 : f32
    %369 = vector.broadcast %cst_167 : f32 to vector<8x128xf32>
    %370 = arith.addf %368, %369 : vector<8x128xf32>
    %cst_168 = arith.constant 0.000000e+00 : f32
    %371 = vector.broadcast %cst_168 : f32 to vector<8x128xf32>
    %372 = arith.maximumf %370, %371 : vector<8x128xf32>
    %cst_169 = arith.constant -0.00967813096 : f32
    %373 = vector.broadcast %cst_169 : f32 to vector<8x128xf32>
    %374 = arith.mulf %372, %373 : vector<8x128xf32>
    %375 = arith.addf %366, %374 : vector<8x128xf32>
    %cst_170 = arith.constant -2.08674669 : f32
    %376 = vector.broadcast %cst_170 : f32 to vector<8x128xf32>
    %377 = arith.mulf %14, %376 : vector<8x128xf32>
    %cst_171 = arith.constant 0.124210835 : f32
    %378 = vector.broadcast %cst_171 : f32 to vector<8x128xf32>
    %379 = arith.addf %377, %378 : vector<8x128xf32>
    %cst_172 = arith.constant 0.000000e+00 : f32
    %380 = vector.broadcast %cst_172 : f32 to vector<8x128xf32>
    %381 = arith.maximumf %379, %380 : vector<8x128xf32>
    %cst_173 = arith.constant -0.183796331 : f32
    %382 = vector.broadcast %cst_173 : f32 to vector<8x128xf32>
    %383 = arith.mulf %381, %382 : vector<8x128xf32>
    %384 = arith.addf %375, %383 : vector<8x128xf32>
    %cst_174 = arith.constant -0.234721616 : f32
    %385 = vector.broadcast %cst_174 : f32 to vector<8x128xf32>
    %386 = arith.mulf %14, %385 : vector<8x128xf32>
    %cst_175 = arith.constant -0.131440133 : f32
    %387 = vector.broadcast %cst_175 : f32 to vector<8x128xf32>
    %388 = arith.addf %386, %387 : vector<8x128xf32>
    %cst_176 = arith.constant 0.000000e+00 : f32
    %389 = vector.broadcast %cst_176 : f32 to vector<8x128xf32>
    %390 = arith.maximumf %388, %389 : vector<8x128xf32>
    %cst_177 = arith.constant -0.164943308 : f32
    %391 = vector.broadcast %cst_177 : f32 to vector<8x128xf32>
    %392 = arith.mulf %390, %391 : vector<8x128xf32>
    %393 = arith.addf %384, %392 : vector<8x128xf32>
    %cst_178 = arith.constant 1.6782763 : f32
    %394 = vector.broadcast %cst_178 : f32 to vector<8x128xf32>
    %395 = arith.mulf %14, %394 : vector<8x128xf32>
    %cst_179 = arith.constant 0.0864169523 : f32
    %396 = vector.broadcast %cst_179 : f32 to vector<8x128xf32>
    %397 = arith.addf %395, %396 : vector<8x128xf32>
    %cst_180 = arith.constant 0.000000e+00 : f32
    %398 = vector.broadcast %cst_180 : f32 to vector<8x128xf32>
    %399 = arith.maximumf %397, %398 : vector<8x128xf32>
    %cst_181 = arith.constant -0.0370282941 : f32
    %400 = vector.broadcast %cst_181 : f32 to vector<8x128xf32>
    %401 = arith.mulf %399, %400 : vector<8x128xf32>
    %402 = arith.addf %393, %401 : vector<8x128xf32>
    %cst_182 = arith.constant -0.341016501 : f32
    %403 = vector.broadcast %cst_182 : f32 to vector<8x128xf32>
    %404 = arith.mulf %14, %403 : vector<8x128xf32>
    %cst_183 = arith.constant -0.114595987 : f32
    %405 = vector.broadcast %cst_183 : f32 to vector<8x128xf32>
    %406 = arith.addf %404, %405 : vector<8x128xf32>
    %cst_184 = arith.constant 0.000000e+00 : f32
    %407 = vector.broadcast %cst_184 : f32 to vector<8x128xf32>
    %408 = arith.maximumf %406, %407 : vector<8x128xf32>
    %cst_185 = arith.constant -0.065387018 : f32
    %409 = vector.broadcast %cst_185 : f32 to vector<8x128xf32>
    %410 = arith.mulf %408, %409 : vector<8x128xf32>
    %411 = arith.addf %402, %410 : vector<8x128xf32>
    %cst_186 = arith.constant 0.216917664 : f32
    %412 = vector.broadcast %cst_186 : f32 to vector<8x128xf32>
    %413 = arith.mulf %14, %412 : vector<8x128xf32>
    %cst_187 = arith.constant -0.0476211049 : f32
    %414 = vector.broadcast %cst_187 : f32 to vector<8x128xf32>
    %415 = arith.addf %413, %414 : vector<8x128xf32>
    %cst_188 = arith.constant 0.000000e+00 : f32
    %416 = vector.broadcast %cst_188 : f32 to vector<8x128xf32>
    %417 = arith.maximumf %415, %416 : vector<8x128xf32>
    %cst_189 = arith.constant 0.076673448 : f32
    %418 = vector.broadcast %cst_189 : f32 to vector<8x128xf32>
    %419 = arith.mulf %417, %418 : vector<8x128xf32>
    %420 = arith.addf %411, %419 : vector<8x128xf32>
    %cst_190 = arith.constant -1.42458451 : f32
    %421 = vector.broadcast %cst_190 : f32 to vector<8x128xf32>
    %422 = arith.mulf %14, %421 : vector<8x128xf32>
    %cst_191 = arith.constant 0.121080235 : f32
    %423 = vector.broadcast %cst_191 : f32 to vector<8x128xf32>
    %424 = arith.addf %422, %423 : vector<8x128xf32>
    %cst_192 = arith.constant 0.000000e+00 : f32
    %425 = vector.broadcast %cst_192 : f32 to vector<8x128xf32>
    %426 = arith.maximumf %424, %425 : vector<8x128xf32>
    %cst_193 = arith.constant -1.022900e-01 : f32
    %427 = vector.broadcast %cst_193 : f32 to vector<8x128xf32>
    %428 = arith.mulf %426, %427 : vector<8x128xf32>
    %429 = arith.addf %420, %428 : vector<8x128xf32>
    %cst_194 = arith.constant -1.68239665 : f32
    %430 = vector.broadcast %cst_194 : f32 to vector<8x128xf32>
    %431 = arith.mulf %14, %430 : vector<8x128xf32>
    %cst_195 = arith.constant -0.121263944 : f32
    %432 = vector.broadcast %cst_195 : f32 to vector<8x128xf32>
    %433 = arith.addf %431, %432 : vector<8x128xf32>
    %cst_196 = arith.constant 0.000000e+00 : f32
    %434 = vector.broadcast %cst_196 : f32 to vector<8x128xf32>
    %435 = arith.maximumf %433, %434 : vector<8x128xf32>
    %cst_197 = arith.constant 0.0772534534 : f32
    %436 = vector.broadcast %cst_197 : f32 to vector<8x128xf32>
    %437 = arith.mulf %435, %436 : vector<8x128xf32>
    %438 = arith.addf %429, %437 : vector<8x128xf32>
    %cst_198 = arith.constant 0.30101338 : f32
    %439 = vector.broadcast %cst_198 : f32 to vector<8x128xf32>
    %440 = arith.mulf %14, %439 : vector<8x128xf32>
    %cst_199 = arith.constant -0.220205575 : f32
    %441 = vector.broadcast %cst_199 : f32 to vector<8x128xf32>
    %442 = arith.addf %440, %441 : vector<8x128xf32>
    %cst_200 = arith.constant 0.000000e+00 : f32
    %443 = vector.broadcast %cst_200 : f32 to vector<8x128xf32>
    %444 = arith.maximumf %442, %443 : vector<8x128xf32>
    %cst_201 = arith.constant 0.086024791 : f32
    %445 = vector.broadcast %cst_201 : f32 to vector<8x128xf32>
    %446 = arith.mulf %444, %445 : vector<8x128xf32>
    %447 = arith.addf %438, %446 : vector<8x128xf32>
    %cst_202 = arith.constant 2.21875715 : f32
    %448 = vector.broadcast %cst_202 : f32 to vector<8x128xf32>
    %449 = arith.mulf %14, %448 : vector<8x128xf32>
    %cst_203 = arith.constant 0.399551451 : f32
    %450 = vector.broadcast %cst_203 : f32 to vector<8x128xf32>
    %451 = arith.addf %449, %450 : vector<8x128xf32>
    %cst_204 = arith.constant 0.000000e+00 : f32
    %452 = vector.broadcast %cst_204 : f32 to vector<8x128xf32>
    %453 = arith.maximumf %451, %452 : vector<8x128xf32>
    %cst_205 = arith.constant 0.12124683 : f32
    %454 = vector.broadcast %cst_205 : f32 to vector<8x128xf32>
    %455 = arith.mulf %453, %454 : vector<8x128xf32>
    %456 = arith.addf %447, %455 : vector<8x128xf32>
    %cst_206 = arith.constant 0.979750692 : f32
    %457 = vector.broadcast %cst_206 : f32 to vector<8x128xf32>
    %458 = arith.mulf %14, %457 : vector<8x128xf32>
    %cst_207 = arith.constant -0.030319944 : f32
    %459 = vector.broadcast %cst_207 : f32 to vector<8x128xf32>
    %460 = arith.addf %458, %459 : vector<8x128xf32>
    %cst_208 = arith.constant 0.000000e+00 : f32
    %461 = vector.broadcast %cst_208 : f32 to vector<8x128xf32>
    %462 = arith.maximumf %460, %461 : vector<8x128xf32>
    %cst_209 = arith.constant -0.175107941 : f32
    %463 = vector.broadcast %cst_209 : f32 to vector<8x128xf32>
    %464 = arith.mulf %462, %463 : vector<8x128xf32>
    %465 = arith.addf %456, %464 : vector<8x128xf32>
    %cst_210 = arith.constant -0.574514449 : f32
    %466 = vector.broadcast %cst_210 : f32 to vector<8x128xf32>
    %467 = arith.mulf %14, %466 : vector<8x128xf32>
    %cst_211 = arith.constant -0.0680872425 : f32
    %468 = vector.broadcast %cst_211 : f32 to vector<8x128xf32>
    %469 = arith.addf %467, %468 : vector<8x128xf32>
    %cst_212 = arith.constant 0.000000e+00 : f32
    %470 = vector.broadcast %cst_212 : f32 to vector<8x128xf32>
    %471 = arith.maximumf %469, %470 : vector<8x128xf32>
    %cst_213 = arith.constant -0.0162774567 : f32
    %472 = vector.broadcast %cst_213 : f32 to vector<8x128xf32>
    %473 = arith.mulf %471, %472 : vector<8x128xf32>
    %474 = arith.addf %465, %473 : vector<8x128xf32>
    %cst_214 = arith.constant -0.198400751 : f32
    %475 = vector.broadcast %cst_214 : f32 to vector<8x128xf32>
    %476 = arith.mulf %14, %475 : vector<8x128xf32>
    %cst_215 = arith.constant 0.199384943 : f32
    %477 = vector.broadcast %cst_215 : f32 to vector<8x128xf32>
    %478 = arith.addf %476, %477 : vector<8x128xf32>
    %cst_216 = arith.constant 0.000000e+00 : f32
    %479 = vector.broadcast %cst_216 : f32 to vector<8x128xf32>
    %480 = arith.maximumf %478, %479 : vector<8x128xf32>
    %cst_217 = arith.constant 0.0292606335 : f32
    %481 = vector.broadcast %cst_217 : f32 to vector<8x128xf32>
    %482 = arith.mulf %480, %481 : vector<8x128xf32>
    %483 = arith.addf %474, %482 : vector<8x128xf32>
    %cst_218 = arith.constant -0.797372221 : f32
    %484 = vector.broadcast %cst_218 : f32 to vector<8x128xf32>
    %485 = arith.mulf %14, %484 : vector<8x128xf32>
    %cst_219 = arith.constant 0.203591928 : f32
    %486 = vector.broadcast %cst_219 : f32 to vector<8x128xf32>
    %487 = arith.addf %485, %486 : vector<8x128xf32>
    %cst_220 = arith.constant 0.000000e+00 : f32
    %488 = vector.broadcast %cst_220 : f32 to vector<8x128xf32>
    %489 = arith.maximumf %487, %488 : vector<8x128xf32>
    %cst_221 = arith.constant 0.113202833 : f32
    %490 = vector.broadcast %cst_221 : f32 to vector<8x128xf32>
    %491 = arith.mulf %489, %490 : vector<8x128xf32>
    %492 = arith.addf %483, %491 : vector<8x128xf32>
    %cst_222 = arith.constant 0.109872386 : f32
    %493 = vector.broadcast %cst_222 : f32 to vector<8x128xf32>
    %494 = arith.mulf %14, %493 : vector<8x128xf32>
    %cst_223 = arith.constant 7.292810e-02 : f32
    %495 = vector.broadcast %cst_223 : f32 to vector<8x128xf32>
    %496 = arith.addf %494, %495 : vector<8x128xf32>
    %cst_224 = arith.constant 0.000000e+00 : f32
    %497 = vector.broadcast %cst_224 : f32 to vector<8x128xf32>
    %498 = arith.maximumf %496, %497 : vector<8x128xf32>
    %cst_225 = arith.constant 0.0605857149 : f32
    %499 = vector.broadcast %cst_225 : f32 to vector<8x128xf32>
    %500 = arith.mulf %498, %499 : vector<8x128xf32>
    %501 = arith.addf %492, %500 : vector<8x128xf32>
    %cst_226 = arith.constant -0.864055156 : f32
    %502 = vector.broadcast %cst_226 : f32 to vector<8x128xf32>
    %503 = arith.mulf %14, %502 : vector<8x128xf32>
    %cst_227 = arith.constant 0.167564198 : f32
    %504 = vector.broadcast %cst_227 : f32 to vector<8x128xf32>
    %505 = arith.addf %503, %504 : vector<8x128xf32>
    %cst_228 = arith.constant 0.000000e+00 : f32
    %506 = vector.broadcast %cst_228 : f32 to vector<8x128xf32>
    %507 = arith.maximumf %505, %506 : vector<8x128xf32>
    %cst_229 = arith.constant 0.350032359 : f32
    %508 = vector.broadcast %cst_229 : f32 to vector<8x128xf32>
    %509 = arith.mulf %507, %508 : vector<8x128xf32>
    %510 = arith.addf %501, %509 : vector<8x128xf32>
    %cst_230 = arith.constant 0.747885466 : f32
    %511 = vector.broadcast %cst_230 : f32 to vector<8x128xf32>
    %512 = arith.mulf %14, %511 : vector<8x128xf32>
    %cst_231 = arith.constant -0.0717176124 : f32
    %513 = vector.broadcast %cst_231 : f32 to vector<8x128xf32>
    %514 = arith.addf %512, %513 : vector<8x128xf32>
    %cst_232 = arith.constant 0.000000e+00 : f32
    %515 = vector.broadcast %cst_232 : f32 to vector<8x128xf32>
    %516 = arith.maximumf %514, %515 : vector<8x128xf32>
    %cst_233 = arith.constant -0.0795498788 : f32
    %517 = vector.broadcast %cst_233 : f32 to vector<8x128xf32>
    %518 = arith.mulf %516, %517 : vector<8x128xf32>
    %519 = arith.addf %510, %518 : vector<8x128xf32>
    %cst_234 = arith.constant -0.372725815 : f32
    %520 = vector.broadcast %cst_234 : f32 to vector<8x128xf32>
    %521 = arith.mulf %14, %520 : vector<8x128xf32>
    %cst_235 = arith.constant 0.0150310276 : f32
    %522 = vector.broadcast %cst_235 : f32 to vector<8x128xf32>
    %523 = arith.addf %521, %522 : vector<8x128xf32>
    %cst_236 = arith.constant 0.000000e+00 : f32
    %524 = vector.broadcast %cst_236 : f32 to vector<8x128xf32>
    %525 = arith.maximumf %523, %524 : vector<8x128xf32>
    %cst_237 = arith.constant 0.0378796943 : f32
    %526 = vector.broadcast %cst_237 : f32 to vector<8x128xf32>
    %527 = arith.mulf %525, %526 : vector<8x128xf32>
    %528 = arith.addf %519, %527 : vector<8x128xf32>
    %cst_238 = arith.constant -0.651479602 : f32
    %529 = vector.broadcast %cst_238 : f32 to vector<8x128xf32>
    %530 = arith.mulf %14, %529 : vector<8x128xf32>
    %cst_239 = arith.constant 0.137966141 : f32
    %531 = vector.broadcast %cst_239 : f32 to vector<8x128xf32>
    %532 = arith.addf %530, %531 : vector<8x128xf32>
    %cst_240 = arith.constant 0.000000e+00 : f32
    %533 = vector.broadcast %cst_240 : f32 to vector<8x128xf32>
    %534 = arith.maximumf %532, %533 : vector<8x128xf32>
    %cst_241 = arith.constant -0.0241363458 : f32
    %535 = vector.broadcast %cst_241 : f32 to vector<8x128xf32>
    %536 = arith.mulf %534, %535 : vector<8x128xf32>
    %537 = arith.addf %528, %536 : vector<8x128xf32>
    %cst_242 = arith.constant -1.03613639 : f32
    %538 = vector.broadcast %cst_242 : f32 to vector<8x128xf32>
    %539 = arith.mulf %14, %538 : vector<8x128xf32>
    %cst_243 = arith.constant -0.0271060113 : f32
    %540 = vector.broadcast %cst_243 : f32 to vector<8x128xf32>
    %541 = arith.addf %539, %540 : vector<8x128xf32>
    %cst_244 = arith.constant 0.000000e+00 : f32
    %542 = vector.broadcast %cst_244 : f32 to vector<8x128xf32>
    %543 = arith.maximumf %541, %542 : vector<8x128xf32>
    %cst_245 = arith.constant 0.415820897 : f32
    %544 = vector.broadcast %cst_245 : f32 to vector<8x128xf32>
    %545 = arith.mulf %543, %544 : vector<8x128xf32>
    %546 = arith.addf %537, %545 : vector<8x128xf32>
    %cst_246 = arith.constant 1.35759819 : f32
    %547 = vector.broadcast %cst_246 : f32 to vector<8x128xf32>
    %548 = arith.mulf %14, %547 : vector<8x128xf32>
    %cst_247 = arith.constant 0.0518169589 : f32
    %549 = vector.broadcast %cst_247 : f32 to vector<8x128xf32>
    %550 = arith.addf %548, %549 : vector<8x128xf32>
    %cst_248 = arith.constant 0.000000e+00 : f32
    %551 = vector.broadcast %cst_248 : f32 to vector<8x128xf32>
    %552 = arith.maximumf %550, %551 : vector<8x128xf32>
    %cst_249 = arith.constant 0.0514343269 : f32
    %553 = vector.broadcast %cst_249 : f32 to vector<8x128xf32>
    %554 = arith.mulf %552, %553 : vector<8x128xf32>
    %555 = arith.addf %546, %554 : vector<8x128xf32>
    %cst_250 = arith.constant -0.0329372026 : f32
    %556 = vector.broadcast %cst_250 : f32 to vector<8x128xf32>
    %557 = arith.mulf %14, %556 : vector<8x128xf32>
    %cst_251 = arith.constant 0.11895185 : f32
    %558 = vector.broadcast %cst_251 : f32 to vector<8x128xf32>
    %559 = arith.addf %557, %558 : vector<8x128xf32>
    %cst_252 = arith.constant 0.000000e+00 : f32
    %560 = vector.broadcast %cst_252 : f32 to vector<8x128xf32>
    %561 = arith.maximumf %559, %560 : vector<8x128xf32>
    %cst_253 = arith.constant -0.00407895632 : f32
    %562 = vector.broadcast %cst_253 : f32 to vector<8x128xf32>
    %563 = arith.mulf %561, %562 : vector<8x128xf32>
    %564 = arith.addf %555, %563 : vector<8x128xf32>
    %cst_254 = arith.constant 0.460573256 : f32
    %565 = vector.broadcast %cst_254 : f32 to vector<8x128xf32>
    %566 = arith.mulf %14, %565 : vector<8x128xf32>
    %cst_255 = arith.constant 0.00475346716 : f32
    %567 = vector.broadcast %cst_255 : f32 to vector<8x128xf32>
    %568 = arith.addf %566, %567 : vector<8x128xf32>
    %cst_256 = arith.constant 0.000000e+00 : f32
    %569 = vector.broadcast %cst_256 : f32 to vector<8x128xf32>
    %570 = arith.maximumf %568, %569 : vector<8x128xf32>
    %cst_257 = arith.constant -0.12757507 : f32
    %571 = vector.broadcast %cst_257 : f32 to vector<8x128xf32>
    %572 = arith.mulf %570, %571 : vector<8x128xf32>
    %573 = arith.addf %564, %572 : vector<8x128xf32>
    %cst_258 = arith.constant -0.311683238 : f32
    %574 = vector.broadcast %cst_258 : f32 to vector<8x128xf32>
    %575 = arith.mulf %14, %574 : vector<8x128xf32>
    %cst_259 = arith.constant 0.126727611 : f32
    %576 = vector.broadcast %cst_259 : f32 to vector<8x128xf32>
    %577 = arith.addf %575, %576 : vector<8x128xf32>
    %cst_260 = arith.constant 0.000000e+00 : f32
    %578 = vector.broadcast %cst_260 : f32 to vector<8x128xf32>
    %579 = arith.maximumf %577, %578 : vector<8x128xf32>
    %cst_261 = arith.constant -0.113688096 : f32
    %580 = vector.broadcast %cst_261 : f32 to vector<8x128xf32>
    %581 = arith.mulf %579, %580 : vector<8x128xf32>
    %582 = arith.addf %573, %581 : vector<8x128xf32>
    %cst_262 = arith.constant -0.102402359 : f32
    %583 = vector.broadcast %cst_262 : f32 to vector<8x128xf32>
    %584 = arith.mulf %14, %583 : vector<8x128xf32>
    %cst_263 = arith.constant -0.08799541 : f32
    %585 = vector.broadcast %cst_263 : f32 to vector<8x128xf32>
    %586 = arith.addf %584, %585 : vector<8x128xf32>
    %cst_264 = arith.constant 0.000000e+00 : f32
    %587 = vector.broadcast %cst_264 : f32 to vector<8x128xf32>
    %588 = arith.maximumf %586, %587 : vector<8x128xf32>
    %cst_265 = arith.constant -0.0254525281 : f32
    %589 = vector.broadcast %cst_265 : f32 to vector<8x128xf32>
    %590 = arith.mulf %588, %589 : vector<8x128xf32>
    %591 = arith.addf %582, %590 : vector<8x128xf32>
    %cst_266 = arith.constant 5.000000e-01 : f32
    %592 = vector.broadcast %cst_266 : f32 to vector<8x128xf32>
    %593 = arith.mulf %592, %591 : vector<8x128xf32>
    %594 = math.tanh %593 : vector<8x128xf32>
    %cst_267 = arith.constant 5.000000e+01 : f32
    %595 = vector.broadcast %cst_267 : f32 to vector<8x128xf32>
    %596 = arith.mulf %595, %594 : vector<8x128xf32>
    %cst_268 = arith.constant 5.000000e+01 : f32
    %597 = vector.broadcast %cst_268 : f32 to vector<8x128xf32>
    %598 = arith.addf %596, %597 : vector<8x128xf32>
    %c0_269 = arith.constant 0 : index
    %c0_270 = arith.constant 0 : index
    %599 = vector.load %arg7[%c0_269, %c0_270] : memref<8x128xf32, #tpu.memory_space<vmem>>, vector<8x128xf32>
    tpu.vector_store %arg7[%c0_269, %c0_270], %598 {strides = array<i32>} : memref<8x128xf32, #tpu.memory_space<vmem>>, vector<8x128xf32>,
    return
  }
  func.func @transform_0(%arg0: i32, %arg1: i32) -> (i32, i32) {
    %c0_i32 = arith.constant 0 : i32
    %c0_i32_0 = arith.constant 0 : i32
    return %arg0, %c0_i32 : i32, i32
  }
  func.func @transform_1(%arg0: i32, %arg1: i32) -> (i32, i32) {
    %c0_i32 = arith.constant 0 : i32
    %c0_i32_0 = arith.constant 0 : i32
    %c0_i32_1 = arith.constant 0 : i32
    return %c0_i32, %c0_i32_0 : i32, i32
  }
  func.func @transform_2(%arg0: i32, %arg1: i32) -> (i32, i32) {
    %c0_i32 = arith.constant 0 : i32
    %c0_i32_0 = arith.constant 0 : i32
    %c0_i32_1 = arith.constant 0 : i32
    return %c0_i32, %c0_i32_0 : i32, i32
  }
  func.func @transform_3(%arg0: i32, %arg1: i32) -> (i32, i32) {
    %c0_i32 = arith.constant 0 : i32
    %c0_i32_0 = arith.constant 0 : i32
    return %c0_i32, %arg1 : i32, i32
  }
  func.func @transform_4(%arg0: i32, %arg1: i32) -> (i32, i32) {
    %c0_i32 = arith.constant 0 : i32
    %c0_i32_0 = arith.constant 0 : i32
    return %c0_i32, %arg1 : i32, i32
  }
  func.func @transform_5(%arg0: i32, %arg1: i32) -> (i32, i32) {
    %c0_i32 = arith.constant 0 : i32
    return %arg0, %arg1 : i32, i32
  }
}

</mosaic_0001>

<bundles_post_ra>
// kernel: tpu_custom_call.1
= control target key start
LH: loop header
LB: loop body
LE: loop exit
PB: predicated region body
PF: predicated region fallthrough
CT: control target
= control target key end

     0   :  { %10 = vsyncpa [#allocation5], 0  ;;  %s6512_s0 = inlined_call_operand.hbm [shape: bf16[8,2048], index: 0, kind: input, shape index: {}]   ;;  %s6513_s1 = inlined_call_operand.hbm [shape: bf16[2048,512], index: 1, kind: input, shape index: {}]   ;;  %s6514_s2 = inlined_call_operand.hbm [shape: f32[1,512], index: 2, kind: input, shape index: {}]   ;;  %s6515_s3 = inlined_call_operand.hbm [shape: bf16[512,128], index: 3, kind: input, shape index: {}]   ;;  %s6516_s4 = inlined_call_operand.hbm [shape: f32[1,128], index: 4, kind: input, shape index: {}]   ;;  %s6517_s5 = inlined_call_operand.hbm [shape: f32[8,128], index: 5, kind: output, shape index: {}]  }
   0x1   :  { %11 = vsyncpa [#allocation8], 0 }
   0x2   :  { %12 = vsyncpa [#allocation11], 0 }
   0x3   :  { %13 = vsyncpa [#allocation6], 0  ;;  %s6291_s18 = smov [#allocation7]   ;;  %s6151_s22 = scalar_lea.hbm %s6513_s1, 65536 }
   0x4   :  { %s29_s19 = sshll.u32 %s6291_s18, 4  ;;  %p6152_p0 = scmp.ne.s32.totalorder %s6513_s1, %s6151_s22  ;;  %s30_s19 = int_to_ptr.vmem [resolvable:$true] %s29_s19 }
   0x5   :  { %p6155_p1 = scmp.lt.u32.totalorder %s6151_s22, %s6513_s1 }
   0x7   :  { %p6157_p2 = pnand %p6155_p1, %p6152_p0 }
   0x9   :  { %6160 = shalt.err (!%p6157_p2)
}
   0xa   :  { %s6161_s27 = scalar_lea.vmem %s30_s19, 65536  ;;  %p6166_p4 = scmp.lt.s32.totalorder %s30_s19, %s30_s19 }
   0xb   :  { %p6162_p3 = scmp.ne.s32.totalorder %s30_s19, %s6161_s27  ;;  %p6167_p5 = scmp.lt.s32.totalorder %s6161_s27, %s6161_s27 }
   0xd   :  { %p6168_p6 = por %p6167_p5, %p6166_p4 }
   0xf   :  { %p6169_p7 = pnand %p6168_p6, %p6162_p3 }
  0x11   :  { %6172 = shalt.err (!%p6169_p7)
}
  0x12   :  { %s6292_s28 = smov 256   ;;  %s6293_s29 = smov 16  }
  0x13   :  { %35 = dma.hbm_to_vmem [thread:$0]  %s6513_s1, 65536, %s30_s19, [#allocation8], %s6292_s28, %s6292_s28, %s6293_s29  }
  0x14   :  { %s6294_s7 = smov [#allocation10]   ;;  %s6173_s11 = scalar_lea.hbm %s6515_s3, 4096 }
  0x15   :  { %s51_s8 = sshll.u32 %s6294_s7, 4  ;;  %p6174_p8 = scmp.ne.s32.totalorder %s6515_s3, %s6173_s11  ;;  %s52_s8 = int_to_ptr.vmem [resolvable:$true] %s51_s8 }
  0x16   :  { %p6177_p9 = scmp.lt.u32.totalorder %s6173_s11, %s6515_s3 }
  0x18   :  { %p6179_p10 = pnand %p6177_p9, %p6174_p8 }
  0x1a   :  { %6182 = shalt.err (!%p6179_p10)
}
  0x1b   :  { %s6183_s16 = scalar_lea.vmem %s52_s8, 4096  ;;  %p6188_p12 = scmp.lt.s32.totalorder %s52_s8, %s52_s8 }
  0x1c   :  { %p6184_p11 = scmp.ne.s32.totalorder %s52_s8, %s6183_s16  ;;  %p6189_p13 = scmp.lt.s32.totalorder %s6183_s16, %s6183_s16 }
  0x1e   :  { %p6190_p0 = por %p6189_p13, %p6188_p12 }
  0x20   :  { %p6191_p1 = pnand %p6190_p0, %p6184_p11 }
  0x22   :  { %6194 = shalt.err (!%p6191_p1)
}
  0x23   :  { %s6295_s1 = smov 64   ;;  %s6296_s17 = smov 4  }
  0x24   :  { %57 = dma.hbm_to_vmem [thread:$0]  %s6515_s3, 4096, %s52_s8, [#allocation11], %s6295_s1, %s6295_s1, %s6296_s17  }
  0x25   :  { %s6297_s20 = smov [#allocation4]   ;;  %s6298_s22 = smov [#allocation9]  }
  0x26   :  { %s20_s21 = sshll.u32 %s6297_s20, 4  ;;  %s42_s23 = sshll.u32 %s6298_s22, 4  ;;  %s21_s21 = int_to_ptr.vmem [resolvable:$true] %s20_s21  ;;  %s43_s23 = int_to_ptr.vmem [resolvable:$true] %s42_s23 }
  0x27   :  { %s6195_s26 = scalar_lea.hbm %s6512_s0, 1024 }
  0x28   :  { %p6196_p2 = scmp.ne.s32.totalorder %s6512_s0, %s6195_s26  ;;  %p6199_p3 = scmp.lt.u32.totalorder %s6195_s26, %s6512_s0 }
  0x2a   :  { %p6201_p4 = pnand %p6199_p3, %p6196_p2 }
  0x2c   :  { %6204 = shalt.err (!%p6201_p4)
}
  0x2d   :  { %s6205_s3 = scalar_lea.vmem %s21_s21, 1024  ;;  %p6210_p6 = scmp.lt.s32.totalorder %s21_s21, %s21_s21 }
  0x2e   :  { %p6206_p5 = scmp.ne.s32.totalorder %s21_s21, %s6205_s3  ;;  %p6211_p7 = scmp.lt.s32.totalorder %s6205_s3, %s6205_s3 }
  0x30   :  { %p6212_p8 = por %p6211_p7, %p6210_p6 }
  0x32   :  { %p6213_p9 = pnand %p6212_p8, %p6206_p5 }
  0x34   :  { %6216 = shalt.err (!%p6213_p9)
}
  0x35   :  { %23 = dma.hbm_to_vmem [thread:$0]  %s6512_s0, 1024, %s21_s21, [#allocation5]  }
  0x36   :  { %s6217_s10 = scalar_lea.hbm %s6514_s2, 64 }
  0x37   :  { %p6218_p10 = scmp.ne.s32.totalorder %s6514_s2, %s6217_s10  ;;  %p6221_p11 = scmp.lt.u32.totalorder %s6217_s10, %s6514_s2 }
  0x39   :  { %p6223_p12 = pnand %p6221_p11, %p6218_p10 }
  0x3b   :  { %6226 = shalt.err (!%p6223_p12)
}
  0x3c   :  { %s6227_s15 = scalar_lea.vmem %s43_s23, 64  ;;  %p6232_p0 = scmp.lt.s32.totalorder %s43_s23, %s43_s23 }
  0x3d   :  { %p6228_p13 = scmp.ne.s32.totalorder %s43_s23, %s6227_s15  ;;  %p6233_p1 = scmp.lt.s32.totalorder %s6227_s15, %s6227_s15 }
  0x3f   :  { %p6234_p2 = por %p6233_p1, %p6232_p0 }
  0x41   :  { %p6235_p3 = pnand %p6234_p2, %p6228_p13 }
  0x43   :  { %6238 = shalt.err (!%p6235_p3)
}
  0x44   :  { %45 = dma.hbm_to_vmem [thread:$0]  %s6514_s2, 64, %s43_s23, [#allocation8]  }
  0x45   :  { %s6299_s1 = smov [#allocation12]   ;;  %s6239_s20 = scalar_lea.hbm %s6516_s4, 16 }
  0x46   :  { %s64_s17 = sshll.u32 %s6299_s1, 4  ;;  %p6240_p4 = scmp.ne.s32.totalorder %s6516_s4, %s6239_s20  ;;  %s65_s17 = int_to_ptr.vmem [resolvable:$true] %s64_s17 }
  0x47   :  { %p6243_p5 = scmp.lt.u32.totalorder %s6239_s20, %s6516_s4 }
  0x49   :  { %p6245_p6 = pnand %p6243_p5, %p6240_p4 }
  0x4b   :  { %6248 = shalt.err (!%p6245_p6)
}
  0x4c   :  { %s6249_s26 = scalar_lea.vmem %s65_s17, 16  ;;  %s6253_s2 = scalar_lea.vmem %s65_s17, 32 }
  0x4d   :  { %p6250_p7 = scmp.ne.s32.totalorder %s65_s17, %s6249_s26  ;;  %p6254_p8 = scmp.lt.s32.totalorder %s65_s17, %s65_s17 }
  0x4e   :  { %p6255_p9 = scmp.lt.s32.totalorder %s6253_s2, %s6249_s26 }
  0x50   :  { %p6256_p10 = por %p6255_p9, %p6254_p8 }
  0x52   :  { %p6257_p11 = pnand %p6256_p10, %p6250_p7 }
  0x54   :  { %6260 = shalt.err (!%p6257_p11)
}
  0x55   :  { %67 = dma.hbm_to_vmem [thread:$0]  %s6516_s4, 16, %s65_s17, [#allocation11]  }
  0x56   :  { %6283 = dma.done.wait [#allocation5], 1024  }
  0x57   :  { %6284 = vsyncadd [#allocation5], 4294966272 }
  0x58   :  { %6285 = dma.done.wait [#allocation8], 65600  }
  0x59   :  { %6286 = vsyncadd [#allocation8], 4294901696 }
  0x5a   :  { %6287 = dma.done.wait [#allocation11], 4112  }
  0x5b   :  { %6288 = vsyncadd [#allocation11], 4294963184  ;;  %v5331_v0 = vld [vmem:[#allocation7 + $0x4] ss:$16 sps:$4 sm:$0xff]   ;;  %v5333_v1 = vld [vmem:[#allocation7 + $0xc] ss:$16 sps:$4 sm:$0xff]  }
  0x5c   :  { %3246 = vmatprep.subr.bf16.mxu0 %v5331_v0  ;;  %v5335_v2 = vld [vmem:[#allocation7] ss:$16 sps:$4 sm:$0xff]   ;;  %v5336_v3 = vld [vmem:[#allocation7 + $0x8] ss:$16 sps:$4 sm:$0xff]   ;;  %3574 = vmatprep.subr.bf16.mxu1 %v5333_v1  ;;  %v5337_v4 = vld [vmem:[#allocation7 + $0x24] ss:$16 sps:$4 sm:$0xff]  }
  0x5d   :  { %3247 = vmatpush1.bf16.msra.mxu0 %v5335_v2  ;;  %3575 = vmatpush1.bf16.msra.mxu1 %v5336_v3  ;;  %v5339_v5 = vld [vmem:[#allocation7 + $0x2c] ss:$16 sps:$4 sm:$0xff]   ;;  %v5341_v6 = vld [vmem:[#allocation7 + $0x20] ss:$16 sps:$4 sm:$0xff]   ;;  %v5342_v7 = vld [vmem:[#allocation7 + $0x28] ss:$16 sps:$4 sm:$0xff]  }
  0x5e   :  { %3248 = vmatprep.subr.bf16.mxu0 %v5337_v4  ;;  %3576 = vmatprep.subr.bf16.mxu1 %v5339_v5  ;;  %v5343_v8 = vld [vmem:[#allocation7 + $0x44] ss:$16 sps:$4 sm:$0xff]   ;;  %v5345_v9 = vld [vmem:[#allocation7 + $0x4c] ss:$16 sps:$4 sm:$0xff]   ;;  %v5347_v10 = vld [vmem:[#allocation7 + $0x40] ss:$16 sps:$4 sm:$0xff]  }
  0x5f   :  { %v5348_v11 = vld [vmem:[#allocation7 + $0x48] ss:$16 sps:$4 sm:$0xff]   ;;  %v5349_v12 = vld [vmem:[#allocation7 + $0x64] ss:$16 sps:$4 sm:$0xff]   ;;  %v5351_v13 = vld [vmem:[#allocation7 + $0x6c] ss:$16 sps:$4 sm:$0xff]  }
  0x60   :  { %v5353_v14 = vld [vmem:[#allocation7 + $0x60] ss:$16 sps:$4 sm:$0xff]   ;;  %v5354_v15 = vld [vmem:[#allocation7 + $0x68] ss:$16 sps:$4 sm:$0xff]   ;;  %v5355_v16 = vld [vmem:[#allocation7 + $0x84] ss:$16 sps:$4 sm:$0xff]  }
  0x61   :  { %3249 = vmatpush1.bf16.msra.mxu0 %v5341_v6  ;;  %3577 = vmatpush1.bf16.msra.mxu1 %v5342_v7  ;;  %v5357_v17 = vld [vmem:[#allocation7 + $0x8c] ss:$16 sps:$4 sm:$0xff]   ;;  %v5359_v18 = vld [vmem:[#allocation7 + $0x80] ss:$16 sps:$4 sm:$0xff]   ;;  %v5360_v19 = vld [vmem:[#allocation7 + $0x88] ss:$16 sps:$4 sm:$0xff]  }
  0x62   :  { %3250 = vmatprep.subr.bf16.mxu0 %v5343_v8  ;;  %3578 = vmatprep.subr.bf16.mxu1 %v5345_v9  ;;  %v5361_v20 = vld [vmem:[#allocation7 + $0xa4] ss:$16 sps:$4 sm:$0xff]   ;;  %v5363_v21 = vld [vmem:[#allocation7 + $0xac] ss:$16 sps:$4 sm:$0xff]   ;;  %v5365_v22 = vld [vmem:[#allocation7 + $0xa0] ss:$16 sps:$4 sm:$0xff]  }
  0x63   :  { %v5366_v23 = vld [vmem:[#allocation7 + $0xa8] ss:$16 sps:$4 sm:$0xff]   ;;  %v5367_v24 = vld [vmem:[#allocation7 + $0xc4] ss:$16 sps:$4 sm:$0xff]   ;;  %v5369_v25 = vld [vmem:[#allocation7 + $0xcc] ss:$16 sps:$4 sm:$0xff]  }
  0x64   :  { %v5371_v26 = vld [vmem:[#allocation7 + $0xc0] ss:$16 sps:$4 sm:$0xff]   ;;  %v5372_v27 = vld [vmem:[#allocation7 + $0xc8] ss:$16 sps:$4 sm:$0xff]   ;;  %v5373_v28 = vld [vmem:[#allocation7 + $0xe4] ss:$16 sps:$4 sm:$0xff]  }
  0x65   :  { %3251 = vmatpush1.bf16.msra.mxu0 %v5347_v10  ;;  %3579 = vmatpush1.bf16.msra.mxu1 %v5348_v11  ;;  %v5375_v29 = vld [vmem:[#allocation7 + $0xec] ss:$16 sps:$4 sm:$0xff]   ;;  %v5377_v30 = vld [vmem:[#allocation7 + $0xe0] ss:$16 sps:$4 sm:$0xff]   ;;  %v5378_v31 = vld [vmem:[#allocation7 + $0xe8] ss:$16 sps:$4 sm:$0xff]  }
  0x66   :  { %3252 = vmatprep.subr.bf16.mxu0 %v5349_v12  ;;  %3580 = vmatprep.subr.bf16.mxu1 %v5351_v13  ;;  %v5379_v32 = vld [vmem:[#allocation7 + $0x104] ss:$16 sps:$4 sm:$0xff]   ;;  %v5381_v33 = vld [vmem:[#allocation7 + $0x10c] ss:$16 sps:$4 sm:$0xff]   ;;  %v5383_v34 = vld [vmem:[#allocation7 + $0x100] ss:$16 sps:$4 sm:$0xff]  }
  0x67   :  { %v5384_v35 = vld [vmem:[#allocation7 + $0x108] ss:$16 sps:$4 sm:$0xff]   ;;  %v5385_v36 = vld [vmem:[#allocation7 + $0x124] ss:$16 sps:$4 sm:$0xff]   ;;  %v5387_v37 = vld [vmem:[#allocation7 + $0x12c] ss:$16 sps:$4 sm:$0xff]  }
  0x68   :  { %v5389_v38 = vld [vmem:[#allocation7 + $0x120] ss:$16 sps:$4 sm:$0xff]   ;;  %v5390_v39 = vld [vmem:[#allocation7 + $0x128] ss:$16 sps:$4 sm:$0xff]   ;;  %v5391_v40 = vld [vmem:[#allocation7 + $0x144] ss:$16 sps:$4 sm:$0xff]  }
  0x69   :  { %3253 = vmatpush1.bf16.msra.mxu0 %v5353_v14  ;;  %3581 = vmatpush1.bf16.msra.mxu1 %v5354_v15  ;;  %v5393_v41 = vld [vmem:[#allocation7 + $0x14c] ss:$16 sps:$4 sm:$0xff]   ;;  %v5395_v42 = vld [vmem:[#allocation7 + $0x140] ss:$16 sps:$4 sm:$0xff]   ;;  %v5396_v43 = vld [vmem:[#allocation7 + $0x148] ss:$16 sps:$4 sm:$0xff]  }
  0x6a   :  { %3254 = vmatprep.subr.bf16.mxu0 %v5355_v16  ;;  %3582 = vmatprep.subr.bf16.mxu1 %v5357_v17  ;;  %v5397_v44 = vld [vmem:[#allocation7 + $0x164] ss:$16 sps:$4 sm:$0xff]   ;;  %v5399_v45 = vld [vmem:[#allocation7 + $0x16c] ss:$16 sps:$4 sm:$0xff]   ;;  %v5401_v47 = vld [vmem:[#allocation7 + $0x160] ss:$16 sps:$4 sm:$0xff]  }
  0x6b   :  { %v88_v46 = vld [vmem:[#allocation4] sm:$0xff]  ;;  %v5402_v49 = vld [vmem:[#allocation7 + $0x168] ss:$16 sps:$4 sm:$0xff]   ;;  %v5405_v51 = vld [vmem:[#allocation7 + $0x18c] ss:$16 sps:$4 sm:$0xff]   ;;  %vm3911_vm0 = vcmask 7168  }
  0x6c   :  { %v4643_v48 = vcombine.high %v88_v46, %v88_v46  ;;  %v5403_v50 = vld [vmem:[#allocation7 + $0x184] ss:$16 sps:$4 sm:$0xff]   ;;  %v5407_v52 = vld [vmem:[#allocation7 + $0x180] ss:$16 sps:$4 sm:$0xff]   ;;  %v5408_v53 = vld [vmem:[#allocation7 + $0x188] ss:$16 sps:$4 sm:$0xff]   ;;  %v4642_v4 = vcombine.low %v88_v46, %v88_v46 }
  0x6d   :  { %3255 = vmatpush1.bf16.msra.mxu0 %v5359_v18  ;;  %3583 = vmatpush1.bf16.msra.mxu1 %v5360_v19  ;;  %v5409_v54 = vld [vmem:[#allocation7 + $0x1a4] ss:$16 sps:$4 sm:$0xff]   ;;  %v5411_v55 = vld [vmem:[#allocation7 + $0x1ac] ss:$16 sps:$4 sm:$0xff]   ;;  %v5413_v56 = vld [vmem:[#allocation7 + $0x1a0] ss:$16 sps:$4 sm:$0xff]  }
  0x6e   :  { %3256 = vmatprep.subr.bf16.mxu0 %v5361_v20  ;;  %3584 = vmatprep.subr.bf16.mxu1 %v5363_v21  ;;  %v5414_v57 = vld [vmem:[#allocation7 + $0x1a8] ss:$16 sps:$4 sm:$0xff]   ;;  %v5415_v58 = vld [vmem:[#allocation7 + $0x1c4] ss:$16 sps:$4 sm:$0xff]   ;;  %v5417_v59 = vld [vmem:[#allocation7 + $0x1cc] ss:$16 sps:$4 sm:$0xff]  }
  0x6f   :  { %3278 = vmatprep.mubr.bf16.mxu0 %v4643_v48  ;;  %3606 = vmatprep.mubr.bf16.mxu1 %v4643_v48  ;;  %v5419_v60 = vld [vmem:[#allocation7 + $0x1c0] ss:$16 sps:$4 sm:$0xff]   ;;  %v5420_v61 = vld [vmem:[#allocation7 + $0x1c8] ss:$16 sps:$4 sm:$0xff]   ;;  %v5421_v62 = vld [vmem:[#allocation7 + $0x1e4] ss:$16 sps:$4 sm:$0xff]  }
  0x70   :  { %v5423_v63 = vld [vmem:[#allocation7 + $0x1ec] ss:$16 sps:$4 sm:$0xff]   ;;  %v5425_v0 = vld [vmem:[#allocation7 + $0x1e0] ss:$16 sps:$4 sm:$0xff]   ;;  %v5426_v1 = vld [vmem:[#allocation7 + $0x1e8] ss:$16 sps:$4 sm:$0xff]  }
  0x71   :  { %3257 = vmatpush1.bf16.msra.mxu0 %v5365_v22  ;;  %3585 = vmatpush1.bf16.msra.mxu1 %v5366_v23  ;;  %v5431_v2 = vld [vmem:[#allocation7 + $0x204] ss:$16 sps:$4 sm:$0xff]   ;;  %v5434_v3 = vld [vmem:[#allocation7 + $0x20c] ss:$16 sps:$4 sm:$0xff]   ;;  %v5429_v5 = vld [vmem:[#allocation7 + $0x200] ss:$16 sps:$4 sm:$0xff]  }
  0x72   :  { %3258 = vmatprep.subr.bf16.mxu0 %v5367_v24  ;;  %3586 = vmatprep.subr.bf16.mxu1 %v5369_v25  ;;  %v5432_v6 = vld [vmem:[#allocation7 + $0x208] ss:$16 sps:$4 sm:$0xff]   ;;  %v5437_v7 = vld [vmem:[#allocation7 + $0x224] ss:$16 sps:$4 sm:$0xff]   ;;  %v5440_v8 = vld [vmem:[#allocation7 + $0x22c] ss:$16 sps:$4 sm:$0xff]  }
  0x73   :  { %v5435_v9 = vld [vmem:[#allocation7 + $0x220] ss:$16 sps:$4 sm:$0xff]   ;;  %v5438_v10 = vld [vmem:[#allocation7 + $0x228] ss:$16 sps:$4 sm:$0xff]   ;;  %v5443_v11 = vld [vmem:[#allocation7 + $0x244] ss:$16 sps:$4 sm:$0xff]  }
  0x74   :  { %v5446_v12 = vld [vmem:[#allocation7 + $0x24c] ss:$16 sps:$4 sm:$0xff]   ;;  %v5441_v13 = vld [vmem:[#allocation7 + $0x240] ss:$16 sps:$4 sm:$0xff]   ;;  %v5444_v14 = vld [vmem:[#allocation7 + $0x248] ss:$16 sps:$4 sm:$0xff]  }
  0x75   :  { %3259 = vmatpush1.bf16.msra.mxu0 %v5371_v26  ;;  %3587 = vmatpush1.bf16.msra.mxu1 %v5372_v27  ;;  %v5449_v15 = vld [vmem:[#allocation7 + $0x264] ss:$16 sps:$4 sm:$0xff]   ;;  %v5452_v16 = vld [vmem:[#allocation7 + $0x26c] ss:$16 sps:$4 sm:$0xff]   ;;  %v5447_v17 = vld [vmem:[#allocation7 + $0x260] ss:$16 sps:$4 sm:$0xff]  }
  0x76   :  { %3260 = vmatprep.subr.bf16.mxu0 %v5373_v28  ;;  %3588 = vmatprep.subr.bf16.mxu1 %v5375_v29  ;;  %v5450_v18 = vld [vmem:[#allocation7 + $0x268] ss:$16 sps:$4 sm:$0xff]   ;;  %v5455_v19 = vld [vmem:[#allocation7 + $0x284] ss:$16 sps:$4 sm:$0xff]   ;;  %v5458_v20 = vld [vmem:[#allocation7 + $0x28c] ss:$16 sps:$4 sm:$0xff]  }
  0x77   :  { %v5453_v21 = vld [vmem:[#allocation7 + $0x280] ss:$16 sps:$4 sm:$0xff]   ;;  %v5456_v22 = vld [vmem:[#allocation7 + $0x288] ss:$16 sps:$4 sm:$0xff]   ;;  %v5461_v23 = vld [vmem:[#allocation7 + $0x2a4] ss:$16 sps:$4 sm:$0xff]  }
  0x78   :  { %v5464_v24 = vld [vmem:[#allocation7 + $0x2ac] ss:$16 sps:$4 sm:$0xff]   ;;  %v5459_v25 = vld [vmem:[#allocation7 + $0x2a0] ss:$16 sps:$4 sm:$0xff]   ;;  %v5462_v26 = vld [vmem:[#allocation7 + $0x2a8] ss:$16 sps:$4 sm:$0xff]  }
  0x79   :  { %3261 = vmatpush1.bf16.msra.mxu0 %v5377_v30  ;;  %3589 = vmatpush1.bf16.msra.mxu1 %v5378_v31  ;;  %v5467_v27 = vld [vmem:[#allocation7 + $0x2c4] ss:$16 sps:$4 sm:$0xff]   ;;  %v5470_v28 = vld [vmem:[#allocation7 + $0x2cc] ss:$16 sps:$4 sm:$0xff]   ;;  %v5465_v31 = vld [vmem:[#allocation7 + $0x2c0] ss:$16 sps:$4 sm:$0xff]  }
  0x7a   :  { %3262 = vmatprep.subr.bf16.mxu0 %v5379_v32  ;;  %3590 = vmatprep.subr.bf16.mxu1 %v5381_v33  ;;  %v6392_v29 = vld [vmem:[#allocation4 + $0x8] sm:$0xff]  ;;  %v5473_v33 = vld [vmem:[#allocation7 + $0x2e4] ss:$16 sps:$4 sm:$0xff]   ;;  %s6301_s4 = smov [#allocation13]  }
  0x7b   :  { %v4645_v30 = vcombine.high %v6392_v29, %v6392_v29  ;;  %v5468_v32 = vld [vmem:[#allocation7 + $0x2c8] ss:$16 sps:$4 sm:$0xff]   ;;  %v5494_v46 = vld [vmem:[#allocation7 + $0x34c] ss:$16 sps:$4 sm:$0xff]   ;;  %s4631_s28 = sshll.u32 %s6301_s4, 4  ;;  %s4632_s28 = int_to_ptr.vmem [resolvable:$true] %s4631_s28 }
  0x7c   :  { %v5492_v48 = vld [vmem:[#allocation7 + $0x348] ss:$16 sps:$4 sm:$0xff]   ;;  %s6261_s29 = scalar_lea.vmem %s4632_s28, 128  ;;  %p6266_p13 = scmp.lt.s32.totalorder %s4632_s28, %s4632_s28 }
  0x7d   :  { %3263 = vmatpush1.bf16.msra.mxu0 %v5383_v34  ;;  %3591 = vmatpush1.bf16.msra.mxu1 %v5384_v35  ;;  %v5476_v34 = vld [vmem:[#allocation7 + $0x2ec] ss:$16 sps:$4 sm:$0xff]   ;;  %v5471_v35 = vld [vmem:[#allocation7 + $0x2e0] ss:$16 sps:$4 sm:$0xff]   ;;  %p6262_p12 = scmp.ne.s32.totalorder %s4632_s28, %s6261_s29  ;;  %p6267_p0 = scmp.lt.s32.totalorder %s6261_s29, %s6261_s29 }
  0x7e   :  { %3264 = vmatprep.subr.bf16.mxu0 %v5385_v36  ;;  %3592 = vmatprep.subr.bf16.mxu1 %v5387_v37  ;;  %v5474_v36 = vld [vmem:[#allocation7 + $0x2e8] ss:$16 sps:$4 sm:$0xff]   ;;  %v5479_v37 = vld [vmem:[#allocation7 + $0x304] ss:$16 sps:$4 sm:$0xff]  }
  0x7f   :  { %p6268_p1 = por %p6267_p0, %p6266_p13 }
  0x81   :  { %3265 = vmatpush1.bf16.msra.mxu0 %v5389_v38  ;;  %3593 = vmatpush1.bf16.msra.mxu1 %v5390_v39  ;;  %v5482_v38 = vld [vmem:[#allocation7 + $0x30c] ss:$16 sps:$4 sm:$0xff]   ;;  %v5477_v39 = vld [vmem:[#allocation7 + $0x300] ss:$16 sps:$4 sm:$0xff]   ;;  %p6269_p2 = pnand %p6268_p1, %p6262_p12 }
  0x82   :  { %3266 = vmatprep.subr.bf16.mxu0 %v5391_v40  ;;  %3594 = vmatprep.subr.bf16.mxu1 %v5393_v41  ;;  %v5480_v40 = vld [vmem:[#allocation7 + $0x308] ss:$16 sps:$4 sm:$0xff]   ;;  %v5485_v41 = vld [vmem:[#allocation7 + $0x324] ss:$16 sps:$4 sm:$0xff]  }
  0x85   :  { %3267 = vmatpush1.bf16.msra.mxu0 %v5395_v42  ;;  %3595 = vmatpush1.bf16.msra.mxu1 %v5396_v43  ;;  %v5488_v42 = vld [vmem:[#allocation7 + $0x32c] ss:$16 sps:$4 sm:$0xff]   ;;  %v5483_v43 = vld [vmem:[#allocation7 + $0x320] ss:$16 sps:$4 sm:$0xff]  }
  0x86   :  { %3268 = vmatprep.subr.bf16.mxu0 %v5397_v44  ;;  %3596 = vmatprep.subr.bf16.mxu1 %v5399_v45  ;;  %v5486_v44 = vld [vmem:[#allocation7 + $0x328] ss:$16 sps:$4 sm:$0xff]   ;;  %v5491_v45 = vld [vmem:[#allocation7 + $0x344] ss:$16 sps:$4 sm:$0xff]  }
  0x89   :  { %3269 = vmatpush1.bf16.msra.mxu0 %v5401_v47  ;;  %3597 = vmatpush1.bf16.msra.mxu1 %v5402_v49  ;;  %v5489_v47 = vld [vmem:[#allocation7 + $0x340] ss:$16 sps:$4 sm:$0xff]   ;;  %v5497_v49 = vld [vmem:[#allocation7 + $0x364] ss:$16 sps:$4 sm:$0xff]  }
  0x8a   :  { %3270 = vmatprep.subr.bf16.mxu0 %v5403_v50  ;;  %3598 = vmatprep.subr.bf16.mxu1 %v5405_v51  ;;  %v5500_v50 = vld [vmem:[#allocation7 + $0x36c] ss:$16 sps:$4 sm:$0xff]   ;;  %v5495_v51 = vld [vmem:[#allocation7 + $0x360] ss:$16 sps:$4 sm:$0xff]  }
  0x8d   :  { %3271 = vmatpush1.bf16.msra.mxu0 %v5407_v52  ;;  %3599 = vmatpush1.bf16.msra.mxu1 %v5408_v53  ;;  %v5498_v52 = vld [vmem:[#allocation7 + $0x368] ss:$16 sps:$4 sm:$0xff]   ;;  %v5503_v53 = vld [vmem:[#allocation7 + $0x384] ss:$16 sps:$4 sm:$0xff]  }
  0x8e   :  { %3272 = vmatprep.subr.bf16.mxu0 %v5409_v54  ;;  %3600 = vmatprep.subr.bf16.mxu1 %v5411_v55  ;;  %v5506_v54 = vld [vmem:[#allocation7 + $0x38c] ss:$16 sps:$4 sm:$0xff]   ;;  %v5501_v55 = vld [vmem:[#allocation7 + $0x380] ss:$16 sps:$4 sm:$0xff]  }
  0x91   :  { %3273 = vmatpush1.bf16.msra.mxu0 %v5413_v56  ;;  %3601 = vmatpush1.bf16.msra.mxu1 %v5414_v57  ;;  %v5504_v56 = vld [vmem:[#allocation7 + $0x388] ss:$16 sps:$4 sm:$0xff]   ;;  %v5509_v57 = vld [vmem:[#allocation7 + $0x3a4] ss:$16 sps:$4 sm:$0xff]  }
  0x92   :  { %3274 = vmatprep.subr.bf16.mxu0 %v5415_v58  ;;  %3602 = vmatprep.subr.bf16.mxu1 %v5417_v59  ;;  %v5512_v58 = vld [vmem:[#allocation7 + $0x3ac] ss:$16 sps:$4 sm:$0xff]   ;;  %v5507_v59 = vld [vmem:[#allocation7 + $0x3a0] ss:$16 sps:$4 sm:$0xff]  }
  0x95   :  { %3275 = vmatpush1.bf16.msra.mxu0 %v5419_v60  ;;  %3603 = vmatpush1.bf16.msra.mxu1 %v5420_v61  ;;  %v5510_v60 = vld [vmem:[#allocation7 + $0x3a8] ss:$16 sps:$4 sm:$0xff]   ;;  %v5515_v61 = vld [vmem:[#allocation7 + $0x3c4] ss:$16 sps:$4 sm:$0xff]  }
  0x96   :  { %3276 = vmatprep.subr.bf16.mxu0 %v5421_v62  ;;  %3604 = vmatprep.subr.bf16.mxu1 %v5423_v63  ;;  %v5518_v62 = vld [vmem:[#allocation7 + $0x3cc] ss:$16 sps:$4 sm:$0xff]   ;;  %v5513_v63 = vld [vmem:[#allocation7 + $0x3c0] ss:$16 sps:$4 sm:$0xff]  }
  0x99   :  { %3277 = vmatpush1.bf16.msra.mxu0 %v5425_v0  ;;  %3605 = vmatpush1.bf16.msra.mxu1 %v5426_v1  ;;  %v5516_v0 = vld [vmem:[#allocation7 + $0x3c8] ss:$16 sps:$4 sm:$0xff]   ;;  %v5521_v1 = vld [vmem:[#allocation7 + $0x3e4] ss:$16 sps:$4 sm:$0xff]  }
  0x9a   :  { %3287 = vmatprep.subr.bf16.mxu0 %v5431_v2  ;;  %3615 = vmatprep.subr.bf16.mxu1 %v5434_v3  ;;  %v5524_v2 = vld [vmem:[#allocation7 + $0x3ec] ss:$16 sps:$4 sm:$0xff]   ;;  %v5519_v3 = vld [vmem:[#allocation7 + $0x3e0] ss:$16 sps:$4 sm:$0xff]  }
  0x9c   :  { %3279 = vmatmul.mubr.bf16.vlgmr.msra.gmra.mrb[0].mxu0 %v4642_v4  ;;  %3607 = vmatmul.mubr.bf16.vlgmr.msra.gmra.mrb[0].mxu1 %v4642_v4  ;;  %v5522_v4 = vld [vmem:[#allocation7 + $0x3e8] ss:$16 sps:$4 sm:$0xff]  }
  0x9d   :  { %3288 = vmatpush1.bf16.msra.mxu0 %v5429_v5  ;;  %3616 = vmatpush1.bf16.msra.mxu1 %v5432_v6  ;;  %v5529_v5 = vld [vmem:[#allocation7 + $0x404] ss:$16 sps:$4 sm:$0xff]   ;;  %v5532_v6 = vld [vmem:[#allocation7 + $0x40c] ss:$16 sps:$4 sm:$0xff]  }
  0x9e   :  { %3289 = vmatprep.subr.bf16.mxu0 %v5437_v7  ;;  %3617 = vmatprep.subr.bf16.mxu1 %v5440_v8  ;;  %v4644_v7 = vcombine.low %v6392_v29, %v6392_v29  ;;  %v5527_v8 = vld [vmem:[#allocation7 + $0x400] ss:$16 sps:$4 sm:$0xff]   ;;  %v5562_v29 = vld [vmem:[#allocation7 + $0x4ac] ss:$16 sps:$4 sm:$0xff]  }
  0x9f   :  { %3319 = vmatprep.mubr.bf16.mxu0 %v4645_v30  ;;  %3647 = vmatprep.mubr.bf16.mxu1 %v4645_v30  ;;  %v5557_v30 = vld [vmem:[#allocation7 + $0x4a0] ss:$16 sps:$4 sm:$0xff]  }
  0xa1   :  { %3290 = vmatpush1.bf16.msra.mxu0 %v5435_v9  ;;  %3618 = vmatpush1.bf16.msra.mxu1 %v5438_v10  ;;  %v5530_v9 = vld [vmem:[#allocation7 + $0x408] ss:$16 sps:$4 sm:$0xff]   ;;  %v5535_v10 = vld [vmem:[#allocation7 + $0x424] ss:$16 sps:$4 sm:$0xff]  }
  0xa2   :  { %3291 = vmatprep.subr.bf16.mxu0 %v5443_v11  ;;  %3619 = vmatprep.subr.bf16.mxu1 %v5446_v12  ;;  %v6398_v11 = vld [vmem:[#allocation4 + $0x10] sm:$0xff]  ;;  %v5538_v12 = vld [vmem:[#allocation7 + $0x42c] ss:$16 sps:$4 sm:$0xff]  }
  0xa5   :  { %3292 = vmatpush1.bf16.msra.mxu0 %v5441_v13  ;;  %3620 = vmatpush1.bf16.msra.mxu1 %v5444_v14  ;;  %v4647_v13 = vcombine.high %v6398_v11, %v6398_v11  ;;  %v5533_v14 = vld [vmem:[#allocation7 + $0x420] ss:$16 sps:$4 sm:$0xff]  }
  0xa6   :  { %3293 = vmatprep.subr.bf16.mxu0 %v5449_v15  ;;  %3621 = vmatprep.subr.bf16.mxu1 %v5452_v16  ;;  %v5536_v15 = vld [vmem:[#allocation7 + $0x428] ss:$16 sps:$4 sm:$0xff]   ;;  %v5541_v16 = vld [vmem:[#allocation7 + $0x444] ss:$16 sps:$4 sm:$0xff]  }
  0xa9   :  { %3294 = vmatpush1.bf16.msra.mxu0 %v5447_v17  ;;  %3622 = vmatpush1.bf16.msra.mxu1 %v5450_v18  ;;  %v5544_v17 = vld [vmem:[#allocation7 + $0x44c] ss:$16 sps:$4 sm:$0xff]   ;;  %v5539_v18 = vld [vmem:[#allocation7 + $0x440] ss:$16 sps:$4 sm:$0xff]  }
  0xaa   :  { %3295 = vmatprep.subr.bf16.mxu0 %v5455_v19  ;;  %3623 = vmatprep.subr.bf16.mxu1 %v5458_v20  ;;  %v5542_v19 = vld [vmem:[#allocation7 + $0x448] ss:$16 sps:$4 sm:$0xff]   ;;  %v5547_v20 = vld [vmem:[#allocation7 + $0x464] ss:$16 sps:$4 sm:$0xff]  }
  0xad   :  { %3296 = vmatpush1.bf16.msra.mxu0 %v5453_v21  ;;  %3624 = vmatpush1.bf16.msra.mxu1 %v5456_v22  ;;  %v5550_v21 = vld [vmem:[#allocation7 + $0x46c] ss:$16 sps:$4 sm:$0xff]   ;;  %v5545_v22 = vld [vmem:[#allocation7 + $0x460] ss:$16 sps:$4 sm:$0xff]  }
  0xae   :  { %3297 = vmatprep.subr.bf16.mxu0 %v5461_v23  ;;  %3625 = vmatprep.subr.bf16.mxu1 %v5464_v24  ;;  %v5548_v23 = vld [vmem:[#allocation7 + $0x468] ss:$16 sps:$4 sm:$0xff]   ;;  %v5553_v24 = vld [vmem:[#allocation7 + $0x484] ss:$16 sps:$4 sm:$0xff]  }
  0xb1   :  { %3298 = vmatpush1.bf16.msra.mxu0 %v5459_v25  ;;  %3626 = vmatpush1.bf16.msra.mxu1 %v5462_v26  ;;  %v5556_v25 = vld [vmem:[#allocation7 + $0x48c] ss:$16 sps:$4 sm:$0xff]   ;;  %v5551_v26 = vld [vmem:[#allocation7 + $0x480] ss:$16 sps:$4 sm:$0xff]  }
  0xb2   :  { %3299 = vmatprep.subr.bf16.mxu0 %v5467_v27  ;;  %3627 = vmatprep.subr.bf16.mxu1 %v5470_v28  ;;  %v5554_v27 = vld [vmem:[#allocation7 + $0x488] ss:$16 sps:$4 sm:$0xff]   ;;  %v5559_v28 = vld [vmem:[#allocation7 + $0x4a4] ss:$16 sps:$4 sm:$0xff]  }
  0xb5   :  { %3300 = vmatpush1.bf16.msra.mxu0 %v5465_v31  ;;  %3628 = vmatpush1.bf16.msra.mxu1 %v5468_v32  ;;  %v5560_v31 = vld [vmem:[#allocation7 + $0x4a8] ss:$16 sps:$4 sm:$0xff]   ;;  %v5565_v32 = vld [vmem:[#allocation7 + $0x4c4] ss:$16 sps:$4 sm:$0xff]  }
  0xb6   :  { %3301 = vmatprep.subr.bf16.mxu0 %v5473_v33  ;;  %3629 = vmatprep.subr.bf16.mxu1 %v5476_v34  ;;  %v5568_v33 = vld [vmem:[#allocation7 + $0x4cc] ss:$16 sps:$4 sm:$0xff]   ;;  %v5563_v34 = vld [vmem:[#allocation7 + $0x4c0] ss:$16 sps:$4 sm:$0xff]  }
  0xb9   :  { %3302 = vmatpush1.bf16.msra.mxu0 %v5471_v35  ;;  %3630 = vmatpush1.bf16.msra.mxu1 %v5474_v36  ;;  %v5566_v35 = vld [vmem:[#allocation7 + $0x4c8] ss:$16 sps:$4 sm:$0xff]   ;;  %v5571_v36 = vld [vmem:[#allocation7 + $0x4e4] ss:$16 sps:$4 sm:$0xff]  }
  0xba   :  { %3303 = vmatprep.subr.bf16.mxu0 %v5479_v37  ;;  %3631 = vmatprep.subr.bf16.mxu1 %v5482_v38  ;;  %v5574_v37 = vld [vmem:[#allocation7 + $0x4ec] ss:$16 sps:$4 sm:$0xff]   ;;  %v5569_v38 = vld [vmem:[#allocation7 + $0x4e0] ss:$16 sps:$4 sm:$0xff]  }
  0xbd   :  { %3304 = vmatpush1.bf16.msra.mxu0 %v5477_v39  ;;  %3632 = vmatpush1.bf16.msra.mxu1 %v5480_v40  ;;  %v5572_v39 = vld [vmem:[#allocation7 + $0x4e8] ss:$16 sps:$4 sm:$0xff]   ;;  %v5577_v40 = vld [vmem:[#allocation7 + $0x504] ss:$16 sps:$4 sm:$0xff]  }
  0xbe   :  { %3305 = vmatprep.subr.bf16.mxu0 %v5485_v41  ;;  %3633 = vmatprep.subr.bf16.mxu1 %v5488_v42  ;;  %v5580_v41 = vld [vmem:[#allocation7 + $0x50c] ss:$16 sps:$4 sm:$0xff]   ;;  %v5575_v42 = vld [vmem:[#allocation7 + $0x500] ss:$16 sps:$4 sm:$0xff]  }
  0xc1   :  { %3306 = vmatpush1.bf16.msra.mxu0 %v5483_v43  ;;  %3634 = vmatpush1.bf16.msra.mxu1 %v5486_v44  ;;  %v5578_v43 = vld [vmem:[#allocation7 + $0x508] ss:$16 sps:$4 sm:$0xff]   ;;  %v5583_v44 = vld [vmem:[#allocation7 + $0x524] ss:$16 sps:$4 sm:$0xff]  }
  0xc2   :  { %3307 = vmatprep.subr.bf16.mxu0 %v5491_v45  ;;  %3635 = vmatprep.subr.bf16.mxu1 %v5494_v46  ;;  %v5586_v45 = vld [vmem:[#allocation7 + $0x52c] ss:$16 sps:$4 sm:$0xff]   ;;  %v5581_v46 = vld [vmem:[#allocation7 + $0x520] ss:$16 sps:$4 sm:$0xff]  }
  0xc5   :  { %3308 = vmatpush1.bf16.msra.mxu0 %v5489_v47  ;;  %3636 = vmatpush1.bf16.msra.mxu1 %v5492_v48  ;;  %v5584_v47 = vld [vmem:[#allocation7 + $0x528] ss:$16 sps:$4 sm:$0xff]   ;;  %v5589_v48 = vld [vmem:[#allocation7 + $0x544] ss:$16 sps:$4 sm:$0xff]  }
  0xc6   :  { %3309 = vmatprep.subr.bf16.mxu0 %v5497_v49  ;;  %3637 = vmatprep.subr.bf16.mxu1 %v5500_v50  ;;  %v5592_v49 = vld [vmem:[#allocation7 + $0x54c] ss:$16 sps:$4 sm:$0xff]   ;;  %v5587_v50 = vld [vmem:[#allocation7 + $0x540] ss:$16 sps:$4 sm:$0xff]  }
  0xc9   :  { %3310 = vmatpush1.bf16.msra.mxu0 %v5495_v51  ;;  %3638 = vmatpush1.bf16.msra.mxu1 %v5498_v52  ;;  %v5590_v51 = vld [vmem:[#allocation7 + $0x548] ss:$16 sps:$4 sm:$0xff]   ;;  %v5595_v52 = vld [vmem:[#allocation7 + $0x564] ss:$16 sps:$4 sm:$0xff]  }
  0xca   :  { %3311 = vmatprep.subr.bf16.mxu0 %v5503_v53  ;;  %3639 = vmatprep.subr.bf16.mxu1 %v5506_v54  ;;  %v5598_v53 = vld [vmem:[#allocation7 + $0x56c] ss:$16 sps:$4 sm:$0xff]   ;;  %v5593_v54 = vld [vmem:[#allocation7 + $0x560] ss:$16 sps:$4 sm:$0xff]  }
  0xcd   :  { %3312 = vmatpush1.bf16.msra.mxu0 %v5501_v55  ;;  %3640 = vmatpush1.bf16.msra.mxu1 %v5504_v56  ;;  %v5596_v55 = vld [vmem:[#allocation7 + $0x568] ss:$16 sps:$4 sm:$0xff]   ;;  %v5601_v56 = vld [vmem:[#allocation7 + $0x584] ss:$16 sps:$4 sm:$0xff]  }
  0xce   :  { %3313 = vmatprep.subr.bf16.mxu0 %v5509_v57  ;;  %3641 = vmatprep.subr.bf16.mxu1 %v5512_v58  ;;  %v5604_v57 = vld [vmem:[#allocation7 + $0x58c] ss:$16 sps:$4 sm:$0xff]   ;;  %v5599_v58 = vld [vmem:[#allocation7 + $0x580] ss:$16 sps:$4 sm:$0xff]  }
  0xd1   :  { %3314 = vmatpush1.bf16.msra.mxu0 %v5507_v59  ;;  %3642 = vmatpush1.bf16.msra.mxu1 %v5510_v60  ;;  %v5602_v59 = vld [vmem:[#allocation7 + $0x588] ss:$16 sps:$4 sm:$0xff]   ;;  %v5607_v60 = vld [vmem:[#allocation7 + $0x5a4] ss:$16 sps:$4 sm:$0xff]  }
  0xd2   :  { %3315 = vmatprep.subr.bf16.mxu0 %v5515_v61  ;;  %3643 = vmatprep.subr.bf16.mxu1 %v5518_v62  ;;  %v5610_v61 = vld [vmem:[#allocation7 + $0x5ac] ss:$16 sps:$4 sm:$0xff]   ;;  %v5605_v62 = vld [vmem:[#allocation7 + $0x5a0] ss:$16 sps:$4 sm:$0xff]  }
  0xd5   :  { %3316 = vmatpush1.bf16.msra.mxu0 %v5513_v63  ;;  %3644 = vmatpush1.bf16.msra.mxu1 %v5516_v0  ;;  %v5608_v63 = vld [vmem:[#allocation7 + $0x5a8] ss:$16 sps:$4 sm:$0xff]   ;;  %v5613_v0 = vld [vmem:[#allocation7 + $0x5c4] ss:$16 sps:$4 sm:$0xff]  }
  0xd6   :  { %3317 = vmatprep.subr.bf16.mxu0 %v5521_v1  ;;  %3645 = vmatprep.subr.bf16.mxu1 %v5524_v2  ;;  %v5616_v1 = vld [vmem:[#allocation7 + $0x5cc] ss:$16 sps:$4 sm:$0xff]   ;;  %v5611_v2 = vld [vmem:[#allocation7 + $0x5c0] ss:$16 sps:$4 sm:$0xff]  }
  0xd9   :  { %3318 = vmatpush1.bf16.msra.mxu0 %v5519_v3  ;;  %3646 = vmatpush1.bf16.msra.mxu1 %v5522_v4  ;;  %v5614_v3 = vld [vmem:[#allocation7 + $0x5c8] ss:$16 sps:$4 sm:$0xff]   ;;  %v5619_v4 = vld [vmem:[#allocation7 + $0x5e4] ss:$16 sps:$4 sm:$0xff]  }
  0xda   :  { %3328 = vmatprep.subr.bf16.mxu0 %v5529_v5  ;;  %3656 = vmatprep.subr.bf16.mxu1 %v5532_v6  ;;  %v5622_v5 = vld [vmem:[#allocation7 + $0x5ec] ss:$16 sps:$4 sm:$0xff]   ;;  %v5617_v6 = vld [vmem:[#allocation7 + $0x5e0] ss:$16 sps:$4 sm:$0xff]  }
  0xdc   :  { %3320 = vmatmul.mubr.bf16.vlgmr.msra.gmra.mrb[0].mxu0 %v4644_v7  ;;  %3648 = vmatmul.mubr.bf16.vlgmr.msra.gmra.mrb[0].mxu1 %v4644_v7  ;;  %v5620_v7 = vld [vmem:[#allocation7 + $0x5e8] ss:$16 sps:$4 sm:$0xff]  }
  0xdd   :  { %3329 = vmatpush1.bf16.msra.mxu0 %v5527_v8  ;;  %3657 = vmatpush1.bf16.msra.mxu1 %v5530_v9  ;;  %v5627_v8 = vld [vmem:[#allocation7 + $0x604] ss:$16 sps:$4 sm:$0xff]   ;;  %v5630_v9 = vld [vmem:[#allocation7 + $0x60c] ss:$16 sps:$4 sm:$0xff]  }
  0xde   :  { %3330 = vmatprep.subr.bf16.mxu0 %v5535_v10  ;;  %3658 = vmatprep.subr.bf16.mxu1 %v5538_v12  ;;  %v5625_v10 = vld [vmem:[#allocation7 + $0x600] ss:$16 sps:$4 sm:$0xff]   ;;  %v4646_v12 = vcombine.low %v6398_v11, %v6398_v11  ;;  %v5642_v11 = vld [vmem:[#allocation7 + $0x64c] ss:$16 sps:$4 sm:$0xff]  }
  0xdf   :  { %3360 = vmatprep.mubr.bf16.mxu0 %v4647_v13  ;;  %3688 = vmatprep.mubr.bf16.mxu1 %v4647_v13  ;;  %v5628_v13 = vld [vmem:[#allocation7 + $0x608] ss:$16 sps:$4 sm:$0xff]  }
  0xe1   :  { %3331 = vmatpush1.bf16.msra.mxu0 %v5533_v14  ;;  %3659 = vmatpush1.bf16.msra.mxu1 %v5536_v15  ;;  %v6404_v14 = vld [vmem:[#allocation4 + $0x18] sm:$0xff]  ;;  %v5633_v15 = vld [vmem:[#allocation7 + $0x624] ss:$16 sps:$4 sm:$0xff]  }
  0xe2   :  { %3332 = vmatprep.subr.bf16.mxu0 %v5541_v16  ;;  %3660 = vmatprep.subr.bf16.mxu1 %v5544_v17  ;;  %v5636_v16 = vld [vmem:[#allocation7 + $0x62c] ss:$16 sps:$4 sm:$0xff]   ;;  %v4649_v17 = vcombine.high %v6404_v14, %v6404_v14 }
  0xe5   :  { %3333 = vmatpush1.bf16.msra.mxu0 %v5539_v18  ;;  %3661 = vmatpush1.bf16.msra.mxu1 %v5542_v19  ;;  %v5631_v18 = vld [vmem:[#allocation7 + $0x620] ss:$16 sps:$4 sm:$0xff]   ;;  %v5634_v19 = vld [vmem:[#allocation7 + $0x628] ss:$16 sps:$4 sm:$0xff]  }
  0xe6   :  { %3334 = vmatprep.subr.bf16.mxu0 %v5547_v20  ;;  %3662 = vmatprep.subr.bf16.mxu1 %v5550_v21  ;;  %v5639_v20 = vld [vmem:[#allocation7 + $0x644] ss:$16 sps:$4 sm:$0xff]   ;;  %v5637_v21 = vld [vmem:[#allocation7 + $0x640] ss:$16 sps:$4 sm:$0xff]  }
  0xe9   :  { %3335 = vmatpush1.bf16.msra.mxu0 %v5545_v22  ;;  %3663 = vmatpush1.bf16.msra.mxu1 %v5548_v23  ;;  %v5640_v22 = vld [vmem:[#allocation7 + $0x648] ss:$16 sps:$4 sm:$0xff]   ;;  %v5645_v23 = vld [vmem:[#allocation7 + $0x664] ss:$16 sps:$4 sm:$0xff]  }
  0xea   :  { %3336 = vmatprep.subr.bf16.mxu0 %v5553_v24  ;;  %3664 = vmatprep.subr.bf16.mxu1 %v5556_v25  ;;  %v5648_v24 = vld [vmem:[#allocation7 + $0x66c] ss:$16 sps:$4 sm:$0xff]   ;;  %v5643_v25 = vld [vmem:[#allocation7 + $0x660] ss:$16 sps:$4 sm:$0xff]  }
  0xed   :  { %3337 = vmatpush1.bf16.msra.mxu0 %v5551_v26  ;;  %3665 = vmatpush1.bf16.msra.mxu1 %v5554_v27  ;;  %v5646_v26 = vld [vmem:[#allocation7 + $0x668] ss:$16 sps:$4 sm:$0xff]   ;;  %v5651_v27 = vld [vmem:[#allocation7 + $0x684] ss:$16 sps:$4 sm:$0xff]  }
  0xee   :  { %3338 = vmatprep.subr.bf16.mxu0 %v5559_v28  ;;  %3666 = vmatprep.subr.bf16.mxu1 %v5562_v29  ;;  %v5654_v28 = vld [vmem:[#allocation7 + $0x68c] ss:$16 sps:$4 sm:$0xff]   ;;  %v5649_v29 = vld [vmem:[#allocation7 + $0x680] ss:$16 sps:$4 sm:$0xff]  }
  0xf1   :  { %3339 = vmatpush1.bf16.msra.mxu0 %v5557_v30  ;;  %3667 = vmatpush1.bf16.msra.mxu1 %v5560_v31  ;;  %v5652_v30 = vld [vmem:[#allocation7 + $0x688] ss:$16 sps:$4 sm:$0xff]   ;;  %v5657_v31 = vld [vmem:[#allocation7 + $0x6a4] ss:$16 sps:$4 sm:$0xff]  }
  0xf2   :  { %3340 = vmatprep.subr.bf16.mxu0 %v5565_v32  ;;  %3668 = vmatprep.subr.bf16.mxu1 %v5568_v33  ;;  %v5660_v32 = vld [vmem:[#allocation7 + $0x6ac] ss:$16 sps:$4 sm:$0xff]   ;;  %v5655_v33 = vld [vmem:[#allocation7 + $0x6a0] ss:$16 sps:$4 sm:$0xff]  }
  0xf5   :  { %3341 = vmatpush1.bf16.msra.mxu0 %v5563_v34  ;;  %3669 = vmatpush1.bf16.msra.mxu1 %v5566_v35  ;;  %v5658_v34 = vld [vmem:[#allocation7 + $0x6a8] ss:$16 sps:$4 sm:$0xff]   ;;  %v5663_v35 = vld [vmem:[#allocation7 + $0x6c4] ss:$16 sps:$4 sm:$0xff]  }
  0xf6   :  { %3342 = vmatprep.subr.bf16.mxu0 %v5571_v36  ;;  %3670 = vmatprep.subr.bf16.mxu1 %v5574_v37  ;;  %v5666_v36 = vld [vmem:[#allocation7 + $0x6cc] ss:$16 sps:$4 sm:$0xff]   ;;  %v5661_v37 = vld [vmem:[#allocation7 + $0x6c0] ss:$16 sps:$4 sm:$0xff]  }
  0xf9   :  { %3343 = vmatpush1.bf16.msra.mxu0 %v5569_v38  ;;  %3671 = vmatpush1.bf16.msra.mxu1 %v5572_v39  ;;  %v5664_v38 = vld [vmem:[#allocation7 + $0x6c8] ss:$16 sps:$4 sm:$0xff]   ;;  %v5669_v39 = vld [vmem:[#allocation7 + $0x6e4] ss:$16 sps:$4 sm:$0xff]  }
  0xfa   :  { %3344 = vmatprep.subr.bf16.mxu0 %v5577_v40  ;;  %3672 = vmatprep.subr.bf16.mxu1 %v5580_v41  ;;  %v5672_v40 = vld [vmem:[#allocation7 + $0x6ec] ss:$16 sps:$4 sm:$0xff]   ;;  %v5667_v41 = vld [vmem:[#allocation7 + $0x6e0] ss:$16 sps:$4 sm:$0xff]  }
  0xfd   :  { %3345 = vmatpush1.bf16.msra.mxu0 %v5575_v42  ;;  %3673 = vmatpush1.bf16.msra.mxu1 %v5578_v43  ;;  %v5670_v42 = vld [vmem:[#allocation7 + $0x6e8] ss:$16 sps:$4 sm:$0xff]   ;;  %v5675_v43 = vld [vmem:[#allocation7 + $0x704] ss:$16 sps:$4 sm:$0xff]  }
  0xfe   :  { %3346 = vmatprep.subr.bf16.mxu0 %v5583_v44  ;;  %3674 = vmatprep.subr.bf16.mxu1 %v5586_v45  ;;  %v5678_v44 = vld [vmem:[#allocation7 + $0x70c] ss:$16 sps:$4 sm:$0xff]   ;;  %v5673_v45 = vld [vmem:[#allocation7 + $0x700] ss:$16 sps:$4 sm:$0xff]  }
 0x101   :  { %3347 = vmatpush1.bf16.msra.mxu0 %v5581_v46  ;;  %3675 = vmatpush1.bf16.msra.mxu1 %v5584_v47  ;;  %v5676_v46 = vld [vmem:[#allocation7 + $0x708] ss:$16 sps:$4 sm:$0xff]   ;;  %v5681_v47 = vld [vmem:[#allocation7 + $0x724] ss:$16 sps:$4 sm:$0xff]  }
 0x102   :  { %3348 = vmatprep.subr.bf16.mxu0 %v5589_v48  ;;  %3676 = vmatprep.subr.bf16.mxu1 %v5592_v49  ;;  %v5684_v48 = vld [vmem:[#allocation7 + $0x72c] ss:$16 sps:$4 sm:$0xff]   ;;  %v5679_v49 = vld [vmem:[#allocation7 + $0x720] ss:$16 sps:$4 sm:$0xff]  }
 0x105   :  { %3349 = vmatpush1.bf16.msra.mxu0 %v5587_v50  ;;  %3677 = vmatpush1.bf16.msra.mxu1 %v5590_v51  ;;  %v5682_v50 = vld [vmem:[#allocation7 + $0x728] ss:$16 sps:$4 sm:$0xff]   ;;  %v5687_v51 = vld [vmem:[#allocation7 + $0x744] ss:$16 sps:$4 sm:$0xff]  }
 0x106   :  { %3350 = vmatprep.subr.bf16.mxu0 %v5595_v52  ;;  %3678 = vmatprep.subr.bf16.mxu1 %v5598_v53  ;;  %v5690_v52 = vld [vmem:[#allocation7 + $0x74c] ss:$16 sps:$4 sm:$0xff]   ;;  %v5685_v53 = vld [vmem:[#allocation7 + $0x740] ss:$16 sps:$4 sm:$0xff]  }
 0x109   :  { %3351 = vmatpush1.bf16.msra.mxu0 %v5593_v54  ;;  %3679 = vmatpush1.bf16.msra.mxu1 %v5596_v55  ;;  %v5688_v54 = vld [vmem:[#allocation7 + $0x748] ss:$16 sps:$4 sm:$0xff]   ;;  %v5693_v55 = vld [vmem:[#allocation7 + $0x764] ss:$16 sps:$4 sm:$0xff]  }
 0x10a   :  { %3352 = vmatprep.subr.bf16.mxu0 %v5601_v56  ;;  %3680 = vmatprep.subr.bf16.mxu1 %v5604_v57  ;;  %v5696_v56 = vld [vmem:[#allocation7 + $0x76c] ss:$16 sps:$4 sm:$0xff]   ;;  %v5691_v57 = vld [vmem:[#allocation7 + $0x760] ss:$16 sps:$4 sm:$0xff]  }
 0x10d   :  { %3353 = vmatpush1.bf16.msra.mxu0 %v5599_v58  ;;  %3681 = vmatpush1.bf16.msra.mxu1 %v5602_v59  ;;  %v5694_v58 = vld [vmem:[#allocation7 + $0x768] ss:$16 sps:$4 sm:$0xff]   ;;  %v5699_v59 = vld [vmem:[#allocation7 + $0x784] ss:$16 sps:$4 sm:$0xff]  }
 0x10e   :  { %3354 = vmatprep.subr.bf16.mxu0 %v5607_v60  ;;  %3682 = vmatprep.subr.bf16.mxu1 %v5610_v61  ;;  %v5702_v60 = vld [vmem:[#allocation7 + $0x78c] ss:$16 sps:$4 sm:$0xff]   ;;  %v5697_v61 = vld [vmem:[#allocation7 + $0x780] ss:$16 sps:$4 sm:$0xff]  }
 0x111   :  { %3355 = vmatpush1.bf16.msra.mxu0 %v5605_v62  ;;  %3683 = vmatpush1.bf16.msra.mxu1 %v5608_v63  ;;  %v5700_v62 = vld [vmem:[#allocation7 + $0x788] ss:$16 sps:$4 sm:$0xff]   ;;  %v5705_v63 = vld [vmem:[#allocation7 + $0x7a4] ss:$16 sps:$4 sm:$0xff]  }
 0x112   :  { %3356 = vmatprep.subr.bf16.mxu0 %v5613_v0  ;;  %3684 = vmatprep.subr.bf16.mxu1 %v5616_v1  ;;  %v5708_v0 = vld [vmem:[#allocation7 + $0x7ac] ss:$16 sps:$4 sm:$0xff]   ;;  %v5703_v1 = vld [vmem:[#allocation7 + $0x7a0] ss:$16 sps:$4 sm:$0xff]  }
 0x115   :  { %3357 = vmatpush1.bf16.msra.mxu0 %v5611_v2  ;;  %3685 = vmatpush1.bf16.msra.mxu1 %v5614_v3  ;;  %v5706_v2 = vld [vmem:[#allocation7 + $0x7a8] ss:$16 sps:$4 sm:$0xff]   ;;  %v5711_v3 = vld [vmem:[#allocation7 + $0x7c4] ss:$16 sps:$4 sm:$0xff]  }
 0x116   :  { %3358 = vmatprep.subr.bf16.mxu0 %v5619_v4  ;;  %3686 = vmatprep.subr.bf16.mxu1 %v5622_v5  ;;  %v5714_v4 = vld [vmem:[#allocation7 + $0x7cc] ss:$16 sps:$4 sm:$0xff]   ;;  %v5709_v5 = vld [vmem:[#allocation7 + $0x7c0] ss:$16 sps:$4 sm:$0xff]  }
 0x119   :  { %3359 = vmatpush1.bf16.msra.mxu0 %v5617_v6  ;;  %3687 = vmatpush1.bf16.msra.mxu1 %v5620_v7  ;;  %v5712_v6 = vld [vmem:[#allocation7 + $0x7c8] ss:$16 sps:$4 sm:$0xff]   ;;  %v5717_v7 = vld [vmem:[#allocation7 + $0x7e4] ss:$16 sps:$4 sm:$0xff]  }
 0x11a   :  { %3369 = vmatprep.subr.bf16.mxu0 %v5627_v8  ;;  %3697 = vmatprep.subr.bf16.mxu1 %v5630_v9  ;;  %v5720_v8 = vld [vmem:[#allocation7 + $0x7ec] ss:$16 sps:$4 sm:$0xff]   ;;  %v5715_v9 = vld [vmem:[#allocation7 + $0x7e0] ss:$16 sps:$4 sm:$0xff]  }
 0x11c   :  { %3361 = vmatmul.mubr.bf16.vlgmr.msra.gmra.mrb[0].mxu0 %v4646_v12  ;;  %3689 = vmatmul.mubr.bf16.vlgmr.msra.gmra.mrb[0].mxu1 %v4646_v12  ;;  %v5725_v12 = vld [vmem:[#allocation7 + $0x804] ss:$16 sps:$4 sm:$0xff]  }
 0x11d   :  { %3370 = vmatpush1.bf16.msra.mxu0 %v5625_v10  ;;  %3698 = vmatpush1.bf16.msra.mxu1 %v5628_v13  ;;  %v5718_v10 = vld [vmem:[#allocation7 + $0x7e8] ss:$16 sps:$4 sm:$0xff]   ;;  %v5728_v13 = vld [vmem:[#allocation7 + $0x80c] ss:$16 sps:$4 sm:$0xff]  }
 0x11e   :  { %3371 = vmatprep.subr.bf16.mxu0 %v5633_v15  ;;  %3699 = vmatprep.subr.bf16.mxu1 %v5636_v16  ;;  %v5723_v15 = vld [vmem:[#allocation7 + $0x800] ss:$16 sps:$4 sm:$0xff]   ;;  %v4648_v16 = vcombine.low %v6404_v14, %v6404_v14  ;;  %v5737_v14 = vld [vmem:[#allocation7 + $0x844] ss:$16 sps:$4 sm:$0xff]  }
 0x11f   :  { %3401 = vmatprep.mubr.bf16.mxu0 %v4649_v17  ;;  %3729 = vmatprep.mubr.bf16.mxu1 %v4649_v17  ;;  %v6410_v17 = vld [vmem:[#allocation4 + $0x20] sm:$0xff] }
 0x121   :  { %3372 = vmatpush1.bf16.msra.mxu0 %v5631_v18  ;;  %3700 = vmatpush1.bf16.msra.mxu1 %v5634_v19  ;;  %v5726_v18 = vld [vmem:[#allocation7 + $0x808] ss:$16 sps:$4 sm:$0xff]   ;;  %v5731_v19 = vld [vmem:[#allocation7 + $0x824] ss:$16 sps:$4 sm:$0xff]  }
 0x122   :  { %3373 = vmatprep.subr.bf16.mxu0 %v5639_v20  ;;  %3701 = vmatprep.subr.bf16.mxu1 %v5642_v11  ;;  %v5734_v20 = vld [vmem:[#allocation7 + $0x82c] ss:$16 sps:$4 sm:$0xff]   ;;  %v4651_v11 = vcombine.high %v6410_v17, %v6410_v17 }
 0x125   :  { %3374 = vmatpush1.bf16.msra.mxu0 %v5637_v21  ;;  %3702 = vmatpush1.bf16.msra.mxu1 %v5640_v22  ;;  %v5729_v21 = vld [vmem:[#allocation7 + $0x820] ss:$16 sps:$4 sm:$0xff]   ;;  %v5732_v22 = vld [vmem:[#allocation7 + $0x828] ss:$16 sps:$4 sm:$0xff]  }
 0x126   :  { %3375 = vmatprep.subr.bf16.mxu0 %v5645_v23  ;;  %3703 = vmatprep.subr.bf16.mxu1 %v5648_v24  ;;  %v5740_v23 = vld [vmem:[#allocation7 + $0x84c] ss:$16 sps:$4 sm:$0xff]   ;;  %v5735_v24 = vld [vmem:[#allocation7 + $0x840] ss:$16 sps:$4 sm:$0xff]  }
 0x129   :  { %3376 = vmatpush1.bf16.msra.mxu0 %v5643_v25  ;;  %3704 = vmatpush1.bf16.msra.mxu1 %v5646_v26  ;;  %v5738_v25 = vld [vmem:[#allocation7 + $0x848] ss:$16 sps:$4 sm:$0xff]   ;;  %v5743_v26 = vld [vmem:[#allocation7 + $0x864] ss:$16 sps:$4 sm:$0xff]  }
 0x12a   :  { %3377 = vmatprep.subr.bf16.mxu0 %v5651_v27  ;;  %3705 = vmatprep.subr.bf16.mxu1 %v5654_v28  ;;  %v5746_v27 = vld [vmem:[#allocation7 + $0x86c] ss:$16 sps:$4 sm:$0xff]   ;;  %v5741_v28 = vld [vmem:[#allocation7 + $0x860] ss:$16 sps:$4 sm:$0xff]  }
 0x12d   :  { %3378 = vmatpush1.bf16.msra.mxu0 %v5649_v29  ;;  %3706 = vmatpush1.bf16.msra.mxu1 %v5652_v30  ;;  %v5744_v29 = vld [vmem:[#allocation7 + $0x868] ss:$16 sps:$4 sm:$0xff]   ;;  %v5749_v30 = vld [vmem:[#allocation7 + $0x884] ss:$16 sps:$4 sm:$0xff]  }
 0x12e   :  { %3379 = vmatprep.subr.bf16.mxu0 %v5657_v31  ;;  %3707 = vmatprep.subr.bf16.mxu1 %v5660_v32  ;;  %v5752_v31 = vld [vmem:[#allocation7 + $0x88c] ss:$16 sps:$4 sm:$0xff]   ;;  %v5747_v32 = vld [vmem:[#allocation7 + $0x880] ss:$16 sps:$4 sm:$0xff]  }
 0x131   :  { %3380 = vmatpush1.bf16.msra.mxu0 %v5655_v33  ;;  %3708 = vmatpush1.bf16.msra.mxu1 %v5658_v34  ;;  %v5750_v33 = vld [vmem:[#allocation7 + $0x888] ss:$16 sps:$4 sm:$0xff]   ;;  %v5755_v34 = vld [vmem:[#allocation7 + $0x8a4] ss:$16 sps:$4 sm:$0xff]  }
 0x132   :  { %3381 = vmatprep.subr.bf16.mxu0 %v5663_v35  ;;  %3709 = vmatprep.subr.bf16.mxu1 %v5666_v36  ;;  %v5758_v35 = vld [vmem:[#allocation7 + $0x8ac] ss:$16 sps:$4 sm:$0xff]   ;;  %v5753_v36 = vld [vmem:[#allocation7 + $0x8a0] ss:$16 sps:$4 sm:$0xff]  }
 0x135   :  { %3382 = vmatpush1.bf16.msra.mxu0 %v5661_v37  ;;  %3710 = vmatpush1.bf16.msra.mxu1 %v5664_v38  ;;  %v5756_v37 = vld [vmem:[#allocation7 + $0x8a8] ss:$16 sps:$4 sm:$0xff]   ;;  %v5761_v38 = vld [vmem:[#allocation7 + $0x8c4] ss:$16 sps:$4 sm:$0xff]  }
 0x136   :  { %3383 = vmatprep.subr.bf16.mxu0 %v5669_v39  ;;  %3711 = vmatprep.subr.bf16.mxu1 %v5672_v40  ;;  %v5764_v39 = vld [vmem:[#allocation7 + $0x8cc] ss:$16 sps:$4 sm:$0xff]   ;;  %v5759_v40 = vld [vmem:[#allocation7 + $0x8c0] ss:$16 sps:$4 sm:$0xff]  }
 0x139   :  { %3384 = vmatpush1.bf16.msra.mxu0 %v5667_v41  ;;  %3712 = vmatpush1.bf16.msra.mxu1 %v5670_v42  ;;  %v5762_v41 = vld [vmem:[#allocation7 + $0x8c8] ss:$16 sps:$4 sm:$0xff]   ;;  %v5767_v42 = vld [vmem:[#allocation7 + $0x8e4] ss:$16 sps:$4 sm:$0xff]  }
 0x13a   :  { %3385 = vmatprep.subr.bf16.mxu0 %v5675_v43  ;;  %3713 = vmatprep.subr.bf16.mxu1 %v5678_v44  ;;  %v5770_v43 = vld [vmem:[#allocation7 + $0x8ec] ss:$16 sps:$4 sm:$0xff]   ;;  %v5765_v44 = vld [vmem:[#allocation7 + $0x8e0] ss:$16 sps:$4 sm:$0xff]  }
 0x13d   :  { %3386 = vmatpush1.bf16.msra.mxu0 %v5673_v45  ;;  %3714 = vmatpush1.bf16.msra.mxu1 %v5676_v46  ;;  %v5768_v45 = vld [vmem:[#allocation7 + $0x8e8] ss:$16 sps:$4 sm:$0xff]   ;;  %v5773_v46 = vld [vmem:[#allocation7 + $0x904] ss:$16 sps:$4 sm:$0xff]  }
 0x13e   :  { %3387 = vmatprep.subr.bf16.mxu0 %v5681_v47  ;;  %3715 = vmatprep.subr.bf16.mxu1 %v5684_v48  ;;  %v5776_v47 = vld [vmem:[#allocation7 + $0x90c] ss:$16 sps:$4 sm:$0xff]   ;;  %v5771_v48 = vld [vmem:[#allocation7 + $0x900] ss:$16 sps:$4 sm:$0xff]  }
 0x141   :  { %3388 = vmatpush1.bf16.msra.mxu0 %v5679_v49  ;;  %3716 = vmatpush1.bf16.msra.mxu1 %v5682_v50  ;;  %v5774_v49 = vld [vmem:[#allocation7 + $0x908] ss:$16 sps:$4 sm:$0xff]   ;;  %v5779_v50 = vld [vmem:[#allocation7 + $0x924] ss:$16 sps:$4 sm:$0xff]  }
 0x142   :  { %3389 = vmatprep.subr.bf16.mxu0 %v5687_v51  ;;  %3717 = vmatprep.subr.bf16.mxu1 %v5690_v52  ;;  %v5782_v51 = vld [vmem:[#allocation7 + $0x92c] ss:$16 sps:$4 sm:$0xff]   ;;  %v5777_v52 = vld [vmem:[#allocation7 + $0x920] ss:$16 sps:$4 sm:$0xff]  }
 0x145   :  { %3390 = vmatpush1.bf16.msra.mxu0 %v5685_v53  ;;  %3718 = vmatpush1.bf16.msra.mxu1 %v5688_v54  ;;  %v5780_v53 = vld [vmem:[#allocation7 + $0x928] ss:$16 sps:$4 sm:$0xff]   ;;  %v5785_v54 = vld [vmem:[#allocation7 + $0x944] ss:$16 sps:$4 sm:$0xff]  }
 0x146   :  { %3391 = vmatprep.subr.bf16.mxu0 %v5693_v55  ;;  %3719 = vmatprep.subr.bf16.mxu1 %v5696_v56  ;;  %v5788_v55 = vld [vmem:[#allocation7 + $0x94c] ss:$16 sps:$4 sm:$0xff]   ;;  %v5783_v56 = vld [vmem:[#allocation7 + $0x940] ss:$16 sps:$4 sm:$0xff]  }
 0x149   :  { %3392 = vmatpush1.bf16.msra.mxu0 %v5691_v57  ;;  %3720 = vmatpush1.bf16.msra.mxu1 %v5694_v58  ;;  %v5786_v57 = vld [vmem:[#allocation7 + $0x948] ss:$16 sps:$4 sm:$0xff]   ;;  %v5791_v58 = vld [vmem:[#allocation7 + $0x964] ss:$16 sps:$4 sm:$0xff]  }
 0x14a   :  { %3393 = vmatprep.subr.bf16.mxu0 %v5699_v59  ;;  %3721 = vmatprep.subr.bf16.mxu1 %v5702_v60  ;;  %v5794_v59 = vld [vmem:[#allocation7 + $0x96c] ss:$16 sps:$4 sm:$0xff]   ;;  %v5789_v60 = vld [vmem:[#allocation7 + $0x960] ss:$16 sps:$4 sm:$0xff]  }
 0x14d   :  { %3394 = vmatpush1.bf16.msra.mxu0 %v5697_v61  ;;  %3722 = vmatpush1.bf16.msra.mxu1 %v5700_v62  ;;  %v5792_v61 = vld [vmem:[#allocation7 + $0x968] ss:$16 sps:$4 sm:$0xff]   ;;  %v5797_v62 = vld [vmem:[#allocation7 + $0x984] ss:$16 sps:$4 sm:$0xff]  }
 0x14e   :  { %3395 = vmatprep.subr.bf16.mxu0 %v5705_v63  ;;  %3723 = vmatprep.subr.bf16.mxu1 %v5708_v0  ;;  %v5800_v63 = vld [vmem:[#allocation7 + $0x98c] ss:$16 sps:$4 sm:$0xff]   ;;  %v5795_v0 = vld [vmem:[#allocation7 + $0x980] ss:$16 sps:$4 sm:$0xff]  }
 0x151   :  { %3396 = vmatpush1.bf16.msra.mxu0 %v5703_v1  ;;  %3724 = vmatpush1.bf16.msra.mxu1 %v5706_v2  ;;  %v5798_v1 = vld [vmem:[#allocation7 + $0x988] ss:$16 sps:$4 sm:$0xff]   ;;  %v5803_v2 = vld [vmem:[#allocation7 + $0x9a4] ss:$16 sps:$4 sm:$0xff]  }
 0x152   :  { %3397 = vmatprep.subr.bf16.mxu0 %v5711_v3  ;;  %3725 = vmatprep.subr.bf16.mxu1 %v5714_v4  ;;  %v5806_v3 = vld [vmem:[#allocation7 + $0x9ac] ss:$16 sps:$4 sm:$0xff]   ;;  %v5801_v4 = vld [vmem:[#allocation7 + $0x9a0] ss:$16 sps:$4 sm:$0xff]  }
 0x155   :  { %3398 = vmatpush1.bf16.msra.mxu0 %v5709_v5  ;;  %3726 = vmatpush1.bf16.msra.mxu1 %v5712_v6  ;;  %v5804_v5 = vld [vmem:[#allocation7 + $0x9a8] ss:$16 sps:$4 sm:$0xff]   ;;  %v5809_v6 = vld [vmem:[#allocation7 + $0x9c4] ss:$16 sps:$4 sm:$0xff]  }
 0x156   :  { %3399 = vmatprep.subr.bf16.mxu0 %v5717_v7  ;;  %3727 = vmatprep.subr.bf16.mxu1 %v5720_v8  ;;  %v5812_v7 = vld [vmem:[#allocation7 + $0x9cc] ss:$16 sps:$4 sm:$0xff]   ;;  %v5807_v8 = vld [vmem:[#allocation7 + $0x9c0] ss:$16 sps:$4 sm:$0xff]  }
 0x159   :  { %3400 = vmatpush1.bf16.msra.mxu0 %v5715_v9  ;;  %3728 = vmatpush1.bf16.msra.mxu1 %v5718_v10  ;;  %v5810_v9 = vld [vmem:[#allocation7 + $0x9c8] ss:$16 sps:$4 sm:$0xff]   ;;  %v5815_v10 = vld [vmem:[#allocation7 + $0x9e4] ss:$16 sps:$4 sm:$0xff]  }
 0x15a   :  { %3410 = vmatprep.subr.bf16.mxu0 %v5725_v12  ;;  %3738 = vmatprep.subr.bf16.mxu1 %v5728_v13  ;;  %v5818_v12 = vld [vmem:[#allocation7 + $0x9ec] ss:$16 sps:$4 sm:$0xff]   ;;  %v5813_v13 = vld [vmem:[#allocation7 + $0x9e0] ss:$16 sps:$4 sm:$0xff]  }
 0x15c   :  { %3402 = vmatmul.mubr.bf16.vlgmr.msra.gmra.mrb[0].mxu0 %v4648_v16  ;;  %3730 = vmatmul.mubr.bf16.vlgmr.msra.gmra.mrb[0].mxu1 %v4648_v16  ;;  %v5823_v16 = vld [vmem:[#allocation7 + $0xa04] ss:$16 sps:$4 sm:$0xff]  }
 0x15d   :  { %3411 = vmatpush1.bf16.msra.mxu0 %v5723_v15  ;;  %3739 = vmatpush1.bf16.msra.mxu1 %v5726_v18  ;;  %v5816_v15 = vld [vmem:[#allocation7 + $0x9e8] ss:$16 sps:$4 sm:$0xff]   ;;  %v5826_v18 = vld [vmem:[#allocation7 + $0xa0c] ss:$16 sps:$4 sm:$0xff]  }
 0x15e   :  { %3412 = vmatprep.subr.bf16.mxu0 %v5731_v19  ;;  %3740 = vmatprep.subr.bf16.mxu1 %v5734_v20  ;;  %v6414_v19 = vld [vmem:[#allocation4 + $0x28] sm:$0xff]  ;;  %v4650_v20 = vcombine.low %v6410_v17, %v6410_v17  ;;  %v5835_v17 = vld [vmem:[#allocation7 + $0xa44] ss:$16 sps:$4 sm:$0xff]  }
 0x15f   :  { %3442 = vmatprep.mubr.bf16.mxu0 %v4651_v11  ;;  %3770 = vmatprep.mubr.bf16.mxu1 %v4651_v11  ;;  %v5821_v11 = vld [vmem:[#allocation7 + $0xa00] ss:$16 sps:$4 sm:$0xff]  }
 0x161   :  { %3413 = vmatpush1.bf16.msra.mxu0 %v5729_v21  ;;  %3741 = vmatpush1.bf16.msra.mxu1 %v5732_v22  ;;  %v5824_v21 = vld [vmem:[#allocation7 + $0xa08] ss:$16 sps:$4 sm:$0xff]   ;;  %v5829_v22 = vld [vmem:[#allocation7 + $0xa24] ss:$16 sps:$4 sm:$0xff]  }
 0x162   :  { %3414 = vmatprep.subr.bf16.mxu0 %v5737_v14  ;;  %3742 = vmatprep.subr.bf16.mxu1 %v5740_v23  ;;  %v5832_v14 = vld [vmem:[#allocation7 + $0xa2c] ss:$16 sps:$4 sm:$0xff]   ;;  %v4653_v23 = vcombine.high %v6414_v19, %v6414_v19 }
 0x165   :  { %3415 = vmatpush1.bf16.msra.mxu0 %v5735_v24  ;;  %3743 = vmatpush1.bf16.msra.mxu1 %v5738_v25  ;;  %v5827_v24 = vld [vmem:[#allocation7 + $0xa20] ss:$16 sps:$4 sm:$0xff]   ;;  %v5830_v25 = vld [vmem:[#allocation7 + $0xa28] ss:$16 sps:$4 sm:$0xff]  }
 0x166   :  { %3416 = vmatprep.subr.bf16.mxu0 %v5743_v26  ;;  %3744 = vmatprep.subr.bf16.mxu1 %v5746_v27  ;;  %v5838_v26 = vld [vmem:[#allocation7 + $0xa4c] ss:$16 sps:$4 sm:$0xff]   ;;  %v5833_v27 = vld [vmem:[#allocation7 + $0xa40] ss:$16 sps:$4 sm:$0xff]  }
 0x169   :  { %3417 = vmatpush1.bf16.msra.mxu0 %v5741_v28  ;;  %3745 = vmatpush1.bf16.msra.mxu1 %v5744_v29  ;;  %v5836_v28 = vld [vmem:[#allocation7 + $0xa48] ss:$16 sps:$4 sm:$0xff]   ;;  %v5841_v29 = vld [vmem:[#allocation7 + $0xa64] ss:$16 sps:$4 sm:$0xff]  }
 0x16a   :  { %3418 = vmatprep.subr.bf16.mxu0 %v5749_v30  ;;  %3746 = vmatprep.subr.bf16.mxu1 %v5752_v31  ;;  %v5844_v30 = vld [vmem:[#allocation7 + $0xa6c] ss:$16 sps:$4 sm:$0xff]   ;;  %v5839_v31 = vld [vmem:[#allocation7 + $0xa60] ss:$16 sps:$4 sm:$0xff]  }
 0x16d   :  { %3419 = vmatpush1.bf16.msra.mxu0 %v5747_v32  ;;  %3747 = vmatpush1.bf16.msra.mxu1 %v5750_v33  ;;  %v5842_v32 = vld [vmem:[#allocation7 + $0xa68] ss:$16 sps:$4 sm:$0xff]   ;;  %v5847_v33 = vld [vmem:[#allocation7 + $0xa84] ss:$16 sps:$4 sm:$0xff]  }
 0x16e   :  { %3420 = vmatprep.subr.bf16.mxu0 %v5755_v34  ;;  %3748 = vmatprep.subr.bf16.mxu1 %v5758_v35  ;;  %v5850_v34 = vld [vmem:[#allocation7 + $0xa8c] ss:$16 sps:$4 sm:$0xff]   ;;  %v5845_v35 = vld [vmem:[#allocation7 + $0xa80] ss:$16 sps:$4 sm:$0xff]  }
 0x171   :  { %3421 = vmatpush1.bf16.msra.mxu0 %v5753_v36  ;;  %3749 = vmatpush1.bf16.msra.mxu1 %v5756_v37  ;;  %v5848_v36 = vld [vmem:[#allocation7 + $0xa88] ss:$16 sps:$4 sm:$0xff]   ;;  %v5853_v37 = vld [vmem:[#allocation7 + $0xaa4] ss:$16 sps:$4 sm:$0xff]  }
 0x172   :  { %3422 = vmatprep.subr.bf16.mxu0 %v5761_v38  ;;  %3750 = vmatprep.subr.bf16.mxu1 %v5764_v39  ;;  %v5856_v38 = vld [vmem:[#allocation7 + $0xaac] ss:$16 sps:$4 sm:$0xff]   ;;  %v5851_v39 = vld [vmem:[#allocation7 + $0xaa0] ss:$16 sps:$4 sm:$0xff]  }
 0x175   :  { %3423 = vmatpush1.bf16.msra.mxu0 %v5759_v40  ;;  %3751 = vmatpush1.bf16.msra.mxu1 %v5762_v41  ;;  %v5854_v40 = vld [vmem:[#allocation7 + $0xaa8] ss:$16 sps:$4 sm:$0xff]   ;;  %v5859_v41 = vld [vmem:[#allocation7 + $0xac4] ss:$16 sps:$4 sm:$0xff]  }
 0x176   :  { %3424 = vmatprep.subr.bf16.mxu0 %v5767_v42  ;;  %3752 = vmatprep.subr.bf16.mxu1 %v5770_v43  ;;  %v5862_v42 = vld [vmem:[#allocation7 + $0xacc] ss:$16 sps:$4 sm:$0xff]   ;;  %v5857_v43 = vld [vmem:[#allocation7 + $0xac0] ss:$16 sps:$4 sm:$0xff]  }
 0x179   :  { %3425 = vmatpush1.bf16.msra.mxu0 %v5765_v44  ;;  %3753 = vmatpush1.bf16.msra.mxu1 %v5768_v45  ;;  %v5860_v44 = vld [vmem:[#allocation7 + $0xac8] ss:$16 sps:$4 sm:$0xff]   ;;  %v5865_v45 = vld [vmem:[#allocation7 + $0xae4] ss:$16 sps:$4 sm:$0xff]  }
 0x17a   :  { %3426 = vmatprep.subr.bf16.mxu0 %v5773_v46  ;;  %3754 = vmatprep.subr.bf16.mxu1 %v5776_v47  ;;  %v5868_v46 = vld [vmem:[#allocation7 + $0xaec] ss:$16 sps:$4 sm:$0xff]   ;;  %v5863_v47 = vld [vmem:[#allocation7 + $0xae0] ss:$16 sps:$4 sm:$0xff]  }
 0x17d   :  { %3427 = vmatpush1.bf16.msra.mxu0 %v5771_v48  ;;  %3755 = vmatpush1.bf16.msra.mxu1 %v5774_v49  ;;  %v5866_v48 = vld [vmem:[#allocation7 + $0xae8] ss:$16 sps:$4 sm:$0xff]   ;;  %v5871_v49 = vld [vmem:[#allocation7 + $0xb04] ss:$16 sps:$4 sm:$0xff]  }
 0x17e   :  { %3428 = vmatprep.subr.bf16.mxu0 %v5779_v50  ;;  %3756 = vmatprep.subr.bf16.mxu1 %v5782_v51  ;;  %v5874_v50 = vld [vmem:[#allocation7 + $0xb0c] ss:$16 sps:$4 sm:$0xff]   ;;  %v5869_v51 = vld [vmem:[#allocation7 + $0xb00] ss:$16 sps:$4 sm:$0xff]  }
 0x181   :  { %3429 = vmatpush1.bf16.msra.mxu0 %v5777_v52  ;;  %3757 = vmatpush1.bf16.msra.mxu1 %v5780_v53  ;;  %v5872_v52 = vld [vmem:[#allocation7 + $0xb08] ss:$16 sps:$4 sm:$0xff]   ;;  %v5877_v53 = vld [vmem:[#allocation7 + $0xb24] ss:$16 sps:$4 sm:$0xff]  }
 0x182   :  { %3430 = vmatprep.subr.bf16.mxu0 %v5785_v54  ;;  %3758 = vmatprep.subr.bf16.mxu1 %v5788_v55  ;;  %v5880_v54 = vld [vmem:[#allocation7 + $0xb2c] ss:$16 sps:$4 sm:$0xff]   ;;  %v5875_v55 = vld [vmem:[#allocation7 + $0xb20] ss:$16 sps:$4 sm:$0xff]  }
 0x185   :  { %3431 = vmatpush1.bf16.msra.mxu0 %v5783_v56  ;;  %3759 = vmatpush1.bf16.msra.mxu1 %v5786_v57  ;;  %v5878_v56 = vld [vmem:[#allocation7 + $0xb28] ss:$16 sps:$4 sm:$0xff]   ;;  %v5883_v57 = vld [vmem:[#allocation7 + $0xb44] ss:$16 sps:$4 sm:$0xff]  }
 0x186   :  { %3432 = vmatprep.subr.bf16.mxu0 %v5791_v58  ;;  %3760 = vmatprep.subr.bf16.mxu1 %v5794_v59  ;;  %v5886_v58 = vld [vmem:[#allocation7 + $0xb4c] ss:$16 sps:$4 sm:$0xff]   ;;  %v5881_v59 = vld [vmem:[#allocation7 + $0xb40] ss:$16 sps:$4 sm:$0xff]  }
 0x189   :  { %3433 = vmatpush1.bf16.msra.mxu0 %v5789_v60  ;;  %3761 = vmatpush1.bf16.msra.mxu1 %v5792_v61  ;;  %v5884_v60 = vld [vmem:[#allocation7 + $0xb48] ss:$16 sps:$4 sm:$0xff]   ;;  %v5889_v61 = vld [vmem:[#allocation7 + $0xb64] ss:$16 sps:$4 sm:$0xff]  }
 0x18a   :  { %3434 = vmatprep.subr.bf16.mxu0 %v5797_v62  ;;  %3762 = vmatprep.subr.bf16.mxu1 %v5800_v63  ;;  %v5892_v62 = vld [vmem:[#allocation7 + $0xb6c] ss:$16 sps:$4 sm:$0xff]   ;;  %v5887_v63 = vld [vmem:[#allocation7 + $0xb60] ss:$16 sps:$4 sm:$0xff]  }
 0x18d   :  { %3435 = vmatpush1.bf16.msra.mxu0 %v5795_v0  ;;  %3763 = vmatpush1.bf16.msra.mxu1 %v5798_v1  ;;  %v5890_v0 = vld [vmem:[#allocation7 + $0xb68] ss:$16 sps:$4 sm:$0xff]   ;;  %v5895_v1 = vld [vmem:[#allocation7 + $0xb84] ss:$16 sps:$4 sm:$0xff]  }
 0x18e   :  { %3436 = vmatprep.subr.bf16.mxu0 %v5803_v2  ;;  %3764 = vmatprep.subr.bf16.mxu1 %v5806_v3  ;;  %v5898_v2 = vld [vmem:[#allocation7 + $0xb8c] ss:$16 sps:$4 sm:$0xff]   ;;  %v5893_v3 = vld [vmem:[#allocation7 + $0xb80] ss:$16 sps:$4 sm:$0xff]  }
 0x191   :  { %3437 = vmatpush1.bf16.msra.mxu0 %v5801_v4  ;;  %3765 = vmatpush1.bf16.msra.mxu1 %v5804_v5  ;;  %v5896_v4 = vld [vmem:[#allocation7 + $0xb88] ss:$16 sps:$4 sm:$0xff]   ;;  %v5901_v5 = vld [vmem:[#allocation7 + $0xba4] ss:$16 sps:$4 sm:$0xff]  }
 0x192   :  { %3438 = vmatprep.subr.bf16.mxu0 %v5809_v6  ;;  %3766 = vmatprep.subr.bf16.mxu1 %v5812_v7  ;;  %v5904_v6 = vld [vmem:[#allocation7 + $0xbac] ss:$16 sps:$4 sm:$0xff]   ;;  %v5899_v7 = vld [vmem:[#allocation7 + $0xba0] ss:$16 sps:$4 sm:$0xff]  }
 0x195   :  { %3439 = vmatpush1.bf16.msra.mxu0 %v5807_v8  ;;  %3767 = vmatpush1.bf16.msra.mxu1 %v5810_v9  ;;  %v5902_v8 = vld [vmem:[#allocation7 + $0xba8] ss:$16 sps:$4 sm:$0xff]   ;;  %v5907_v9 = vld [vmem:[#allocation7 + $0xbc4] ss:$16 sps:$4 sm:$0xff]  }
 0x196   :  { %3440 = vmatprep.subr.bf16.mxu0 %v5815_v10  ;;  %3768 = vmatprep.subr.bf16.mxu1 %v5818_v12  ;;  %v5910_v10 = vld [vmem:[#allocation7 + $0xbcc] ss:$16 sps:$4 sm:$0xff]   ;;  %v5905_v12 = vld [vmem:[#allocation7 + $0xbc0] ss:$16 sps:$4 sm:$0xff]  }
 0x199   :  { %3441 = vmatpush1.bf16.msra.mxu0 %v5813_v13  ;;  %3769 = vmatpush1.bf16.msra.mxu1 %v5816_v15  ;;  %v5908_v13 = vld [vmem:[#allocation7 + $0xbc8] ss:$16 sps:$4 sm:$0xff]   ;;  %v5913_v15 = vld [vmem:[#allocation7 + $0xbe4] ss:$16 sps:$4 sm:$0xff]  }
 0x19a   :  { %3451 = vmatprep.subr.bf16.mxu0 %v5823_v16  ;;  %3779 = vmatprep.subr.bf16.mxu1 %v5826_v18  ;;  %v5916_v16 = vld [vmem:[#allocation7 + $0xbec] ss:$16 sps:$4 sm:$0xff]   ;;  %v5911_v18 = vld [vmem:[#allocation7 + $0xbe0] ss:$16 sps:$4 sm:$0xff]  }
 0x19c   :  { %3443 = vmatmul.mubr.bf16.vlgmr.msra.gmra.mrb[0].mxu0 %v4650_v20  ;;  %3771 = vmatmul.mubr.bf16.vlgmr.msra.gmra.mrb[0].mxu1 %v4650_v20  ;;  %v5914_v20 = vld [vmem:[#allocation7 + $0xbe8] ss:$16 sps:$4 sm:$0xff]  }
 0x19d   :  { %3452 = vmatpush1.bf16.msra.mxu0 %v5821_v11  ;;  %3780 = vmatpush1.bf16.msra.mxu1 %v5824_v21  ;;  %v5921_v11 = vld [vmem:[#allocation7 + $0xc04] ss:$16 sps:$4 sm:$0xff]   ;;  %v5924_v21 = vld [vmem:[#allocation7 + $0xc0c] ss:$16 sps:$4 sm:$0xff]  }
 0x19e   :  { %3453 = vmatprep.subr.bf16.mxu0 %v5829_v22  ;;  %3781 = vmatprep.subr.bf16.mxu1 %v5832_v14  ;;  %v4652_v22 = vcombine.low %v6414_v19, %v6414_v19  ;;  %v6422_v14 = vld [vmem:[#allocation4 + $0x30] sm:$0xff] }
 0x19f   :  { %3483 = vmatprep.mubr.bf16.mxu0 %v4653_v23  ;;  %3811 = vmatprep.mubr.bf16.mxu1 %v4653_v23  ;;  %v5919_v23 = vld [vmem:[#allocation7 + $0xc00] ss:$16 sps:$4 sm:$0xff]   ;;  %v5933_v19 = vld [vmem:[#allocation7 + $0xc44] ss:$16 sps:$4 sm:$0xff]  }
 0x1a1   :  { %3454 = vmatpush1.bf16.msra.mxu0 %v5827_v24  ;;  %3782 = vmatpush1.bf16.msra.mxu1 %v5830_v25  ;;  %v5922_v24 = vld [vmem:[#allocation7 + $0xc08] ss:$16 sps:$4 sm:$0xff]   ;;  %v5927_v25 = vld [vmem:[#allocation7 + $0xc24] ss:$16 sps:$4 sm:$0xff]  }
 0x1a2   :  { %3455 = vmatprep.subr.bf16.mxu0 %v5835_v17  ;;  %3783 = vmatprep.subr.bf16.mxu1 %v5838_v26  ;;  %v5930_v17 = vld [vmem:[#allocation7 + $0xc2c] ss:$16 sps:$4 sm:$0xff]   ;;  %v4655_v26 = vcombine.high %v6422_v14, %v6422_v14 }
 0x1a5   :  { %3456 = vmatpush1.bf16.msra.mxu0 %v5833_v27  ;;  %3784 = vmatpush1.bf16.msra.mxu1 %v5836_v28  ;;  %v5925_v27 = vld [vmem:[#allocation7 + $0xc20] ss:$16 sps:$4 sm:$0xff]   ;;  %v5928_v28 = vld [vmem:[#allocation7 + $0xc28] ss:$16 sps:$4 sm:$0xff]  }
 0x1a6   :  { %3457 = vmatprep.subr.bf16.mxu0 %v5841_v29  ;;  %3785 = vmatprep.subr.bf16.mxu1 %v5844_v30  ;;  %v5936_v29 = vld [vmem:[#allocation7 + $0xc4c] ss:$16 sps:$4 sm:$0xff]   ;;  %v5931_v30 = vld [vmem:[#allocation7 + $0xc40] ss:$16 sps:$4 sm:$0xff]  }
 0x1a9   :  { %3458 = vmatpush1.bf16.msra.mxu0 %v5839_v31  ;;  %3786 = vmatpush1.bf16.msra.mxu1 %v5842_v32  ;;  %v5934_v31 = vld [vmem:[#allocation7 + $0xc48] ss:$16 sps:$4 sm:$0xff]   ;;  %v5939_v32 = vld [vmem:[#allocation7 + $0xc64] ss:$16 sps:$4 sm:$0xff]  }
 0x1aa   :  { %3459 = vmatprep.subr.bf16.mxu0 %v5847_v33  ;;  %3787 = vmatprep.subr.bf16.mxu1 %v5850_v34  ;;  %v5942_v33 = vld [vmem:[#allocation7 + $0xc6c] ss:$16 sps:$4 sm:$0xff]   ;;  %v5937_v34 = vld [vmem:[#allocation7 + $0xc60] ss:$16 sps:$4 sm:$0xff]  }
 0x1ad   :  { %3460 = vmatpush1.bf16.msra.mxu0 %v5845_v35  ;;  %3788 = vmatpush1.bf16.msra.mxu1 %v5848_v36  ;;  %v5940_v35 = vld [vmem:[#allocation7 + $0xc68] ss:$16 sps:$4 sm:$0xff]   ;;  %v5945_v36 = vld [vmem:[#allocation7 + $0xc84] ss:$16 sps:$4 sm:$0xff]  }
 0x1ae   :  { %3461 = vmatprep.subr.bf16.mxu0 %v5853_v37  ;;  %3789 = vmatprep.subr.bf16.mxu1 %v5856_v38  ;;  %v5948_v37 = vld [vmem:[#allocation7 + $0xc8c] ss:$16 sps:$4 sm:$0xff]   ;;  %v5943_v38 = vld [vmem:[#allocation7 + $0xc80] ss:$16 sps:$4 sm:$0xff]  }
 0x1b1   :  { %3462 = vmatpush1.bf16.msra.mxu0 %v5851_v39  ;;  %3790 = vmatpush1.bf16.msra.mxu1 %v5854_v40  ;;  %v5946_v39 = vld [vmem:[#allocation7 + $0xc88] ss:$16 sps:$4 sm:$0xff]   ;;  %v5951_v40 = vld [vmem:[#allocation7 + $0xca4] ss:$16 sps:$4 sm:$0xff]  }
 0x1b2   :  { %3463 = vmatprep.subr.bf16.mxu0 %v5859_v41  ;;  %3791 = vmatprep.subr.bf16.mxu1 %v5862_v42  ;;  %v5954_v41 = vld [vmem:[#allocation7 + $0xcac] ss:$16 sps:$4 sm:$0xff]   ;;  %v5949_v42 = vld [vmem:[#allocation7 + $0xca0] ss:$16 sps:$4 sm:$0xff]  }
 0x1b5   :  { %3464 = vmatpush1.bf16.msra.mxu0 %v5857_v43  ;;  %3792 = vmatpush1.bf16.msra.mxu1 %v5860_v44  ;;  %v5952_v43 = vld [vmem:[#allocation7 + $0xca8] ss:$16 sps:$4 sm:$0xff]   ;;  %v5957_v44 = vld [vmem:[#allocation7 + $0xcc4] ss:$16 sps:$4 sm:$0xff]  }
 0x1b6   :  { %3465 = vmatprep.subr.bf16.mxu0 %v5865_v45  ;;  %3793 = vmatprep.subr.bf16.mxu1 %v5868_v46  ;;  %v5960_v45 = vld [vmem:[#allocation7 + $0xccc] ss:$16 sps:$4 sm:$0xff]   ;;  %v5955_v46 = vld [vmem:[#allocation7 + $0xcc0] ss:$16 sps:$4 sm:$0xff]  }
 0x1b9   :  { %3466 = vmatpush1.bf16.msra.mxu0 %v5863_v47  ;;  %3794 = vmatpush1.bf16.msra.mxu1 %v5866_v48  ;;  %v5958_v47 = vld [vmem:[#allocation7 + $0xcc8] ss:$16 sps:$4 sm:$0xff]   ;;  %v5963_v48 = vld [vmem:[#allocation7 + $0xce4] ss:$16 sps:$4 sm:$0xff]  }
 0x1ba   :  { %3467 = vmatprep.subr.bf16.mxu0 %v5871_v49  ;;  %3795 = vmatprep.subr.bf16.mxu1 %v5874_v50  ;;  %v5966_v49 = vld [vmem:[#allocation7 + $0xcec] ss:$16 sps:$4 sm:$0xff]   ;;  %v5961_v50 = vld [vmem:[#allocation7 + $0xce0] ss:$16 sps:$4 sm:$0xff]  }
 0x1bd   :  { %3468 = vmatpush1.bf16.msra.mxu0 %v5869_v51  ;;  %3796 = vmatpush1.bf16.msra.mxu1 %v5872_v52  ;;  %v5964_v51 = vld [vmem:[#allocation7 + $0xce8] ss:$16 sps:$4 sm:$0xff]   ;;  %v5969_v52 = vld [vmem:[#allocation7 + $0xd04] ss:$16 sps:$4 sm:$0xff]  }
 0x1be   :  { %3469 = vmatprep.subr.bf16.mxu0 %v5877_v53  ;;  %3797 = vmatprep.subr.bf16.mxu1 %v5880_v54  ;;  %v5972_v53 = vld [vmem:[#allocation7 + $0xd0c] ss:$16 sps:$4 sm:$0xff]   ;;  %v5967_v54 = vld [vmem:[#allocation7 + $0xd00] ss:$16 sps:$4 sm:$0xff]  }
 0x1c1   :  { %3470 = vmatpush1.bf16.msra.mxu0 %v5875_v55  ;;  %3798 = vmatpush1.bf16.msra.mxu1 %v5878_v56  ;;  %v5970_v55 = vld [vmem:[#allocation7 + $0xd08] ss:$16 sps:$4 sm:$0xff]   ;;  %v5975_v56 = vld [vmem:[#allocation7 + $0xd24] ss:$16 sps:$4 sm:$0xff]  }
 0x1c2   :  { %3471 = vmatprep.subr.bf16.mxu0 %v5883_v57  ;;  %3799 = vmatprep.subr.bf16.mxu1 %v5886_v58  ;;  %v5978_v57 = vld [vmem:[#allocation7 + $0xd2c] ss:$16 sps:$4 sm:$0xff]   ;;  %v5973_v58 = vld [vmem:[#allocation7 + $0xd20] ss:$16 sps:$4 sm:$0xff]  }
 0x1c5   :  { %3472 = vmatpush1.bf16.msra.mxu0 %v5881_v59  ;;  %3800 = vmatpush1.bf16.msra.mxu1 %v5884_v60  ;;  %v5976_v59 = vld [vmem:[#allocation7 + $0xd28] ss:$16 sps:$4 sm:$0xff]   ;;  %v5981_v60 = vld [vmem:[#allocation7 + $0xd44] ss:$16 sps:$4 sm:$0xff]  }
 0x1c6   :  { %3473 = vmatprep.subr.bf16.mxu0 %v5889_v61  ;;  %3801 = vmatprep.subr.bf16.mxu1 %v5892_v62  ;;  %v5984_v61 = vld [vmem:[#allocation7 + $0xd4c] ss:$16 sps:$4 sm:$0xff]   ;;  %v5979_v62 = vld [vmem:[#allocation7 + $0xd40] ss:$16 sps:$4 sm:$0xff]  }
 0x1c9   :  { %3474 = vmatpush1.bf16.msra.mxu0 %v5887_v63  ;;  %3802 = vmatpush1.bf16.msra.mxu1 %v5890_v0  ;;  %v5982_v63 = vld [vmem:[#allocation7 + $0xd48] ss:$16 sps:$4 sm:$0xff]   ;;  %v5987_v0 = vld [vmem:[#allocation7 + $0xd64] ss:$16 sps:$4 sm:$0xff]  }
 0x1ca   :  { %3475 = vmatprep.subr.bf16.mxu0 %v5895_v1  ;;  %3803 = vmatprep.subr.bf16.mxu1 %v5898_v2  ;;  %v5990_v1 = vld [vmem:[#allocation7 + $0xd6c] ss:$16 sps:$4 sm:$0xff]   ;;  %v5985_v2 = vld [vmem:[#allocation7 + $0xd60] ss:$16 sps:$4 sm:$0xff]  }
 0x1cd   :  { %3476 = vmatpush1.bf16.msra.mxu0 %v5893_v3  ;;  %3804 = vmatpush1.bf16.msra.mxu1 %v5896_v4  ;;  %v5988_v3 = vld [vmem:[#allocation7 + $0xd68] ss:$16 sps:$4 sm:$0xff]   ;;  %v5993_v4 = vld [vmem:[#allocation7 + $0xd84] ss:$16 sps:$4 sm:$0xff]  }
 0x1ce   :  { %3477 = vmatprep.subr.bf16.mxu0 %v5901_v5  ;;  %3805 = vmatprep.subr.bf16.mxu1 %v5904_v6  ;;  %v5996_v5 = vld [vmem:[#allocation7 + $0xd8c] ss:$16 sps:$4 sm:$0xff]   ;;  %v5991_v6 = vld [vmem:[#allocation7 + $0xd80] ss:$16 sps:$4 sm:$0xff]  }
 0x1d1   :  { %3478 = vmatpush1.bf16.msra.mxu0 %v5899_v7  ;;  %3806 = vmatpush1.bf16.msra.mxu1 %v5902_v8  ;;  %v5994_v7 = vld [vmem:[#allocation7 + $0xd88] ss:$16 sps:$4 sm:$0xff]   ;;  %v5999_v8 = vld [vmem:[#allocation7 + $0xda4] ss:$16 sps:$4 sm:$0xff]  }
 0x1d2   :  { %3479 = vmatprep.subr.bf16.mxu0 %v5907_v9  ;;  %3807 = vmatprep.subr.bf16.mxu1 %v5910_v10  ;;  %v6002_v9 = vld [vmem:[#allocation7 + $0xdac] ss:$16 sps:$4 sm:$0xff]   ;;  %v5997_v10 = vld [vmem:[#allocation7 + $0xda0] ss:$16 sps:$4 sm:$0xff]  }
 0x1d5   :  { %3480 = vmatpush1.bf16.msra.mxu0 %v5905_v12  ;;  %3808 = vmatpush1.bf16.msra.mxu1 %v5908_v13  ;;  %v6000_v12 = vld [vmem:[#allocation7 + $0xda8] ss:$16 sps:$4 sm:$0xff]   ;;  %v6005_v13 = vld [vmem:[#allocation7 + $0xdc4] ss:$16 sps:$4 sm:$0xff]  }
 0x1d6   :  { %3481 = vmatprep.subr.bf16.mxu0 %v5913_v15  ;;  %3809 = vmatprep.subr.bf16.mxu1 %v5916_v16  ;;  %v6008_v15 = vld [vmem:[#allocation7 + $0xdcc] ss:$16 sps:$4 sm:$0xff]   ;;  %v6003_v16 = vld [vmem:[#allocation7 + $0xdc0] ss:$16 sps:$4 sm:$0xff]  }
 0x1d9   :  { %3482 = vmatpush1.bf16.msra.mxu0 %v5911_v18  ;;  %3810 = vmatpush1.bf16.msra.mxu1 %v5914_v20  ;;  %v6006_v18 = vld [vmem:[#allocation7 + $0xdc8] ss:$16 sps:$4 sm:$0xff]   ;;  %v6011_v20 = vld [vmem:[#allocation7 + $0xde4] ss:$16 sps:$4 sm:$0xff]  }
 0x1da   :  { %3492 = vmatprep.subr.bf16.mxu0 %v5921_v11  ;;  %3820 = vmatprep.subr.bf16.mxu1 %v5924_v21  ;;  %v6014_v11 = vld [vmem:[#allocation7 + $0xdec] ss:$16 sps:$4 sm:$0xff]   ;;  %v6009_v21 = vld [vmem:[#allocation7 + $0xde0] ss:$16 sps:$4 sm:$0xff]  }
 0x1dc   :  { %3484 = vmatmul.mubr.bf16.vlgmr.msra.gmra.mrb[0].mxu0 %v4652_v22  ;;  %3812 = vmatmul.mubr.bf16.vlgmr.msra.gmra.mrb[0].mxu1 %v4652_v22  ;;  %v6012_v22 = vld [vmem:[#allocation7 + $0xde8] ss:$16 sps:$4 sm:$0xff]  }
 0x1dd   :  { %3493 = vmatpush1.bf16.msra.mxu0 %v5919_v23  ;;  %3821 = vmatpush1.bf16.msra.mxu1 %v5922_v24  ;;  %v6019_v23 = vld [vmem:[#allocation7 + $0xe04] ss:$16 sps:$4 sm:$0xff]   ;;  %v6022_v24 = vld [vmem:[#allocation7 + $0xe0c] ss:$16 sps:$4 sm:$0xff]  }
 0x1de   :  { %3494 = vmatprep.subr.bf16.mxu0 %v5927_v25  ;;  %3822 = vmatprep.subr.bf16.mxu1 %v5930_v17  ;;  %v4654_v25 = vcombine.low %v6422_v14, %v6422_v14  ;;  %v6428_v17 = vld [vmem:[#allocation4 + $0x38] sm:$0xff]  ;;  %v6031_v14 = vld [vmem:[#allocation7 + $0xe44] ss:$16 sps:$4 sm:$0xff]  }
 0x1df   :  { %3524 = vmatprep.mubr.bf16.mxu0 %v4655_v26  ;;  %3852 = vmatprep.mubr.bf16.mxu1 %v4655_v26  ;;  %v6017_v26 = vld [vmem:[#allocation7 + $0xe00] ss:$16 sps:$4 sm:$0xff]  }
 0x1e1   :  { %3495 = vmatpush1.bf16.msra.mxu0 %v5925_v27  ;;  %3823 = vmatpush1.bf16.msra.mxu1 %v5928_v28  ;;  %v6020_v27 = vld [vmem:[#allocation7 + $0xe08] ss:$16 sps:$4 sm:$0xff]   ;;  %v6025_v28 = vld [vmem:[#allocation7 + $0xe24] ss:$16 sps:$4 sm:$0xff]  }
 0x1e2   :  { %3496 = vmatprep.subr.bf16.mxu0 %v5933_v19  ;;  %3824 = vmatprep.subr.bf16.mxu1 %v5936_v29  ;;  %v6028_v19 = vld [vmem:[#allocation7 + $0xe2c] ss:$16 sps:$4 sm:$0xff]   ;;  %v4657_v29 = vcombine.high %v6428_v17, %v6428_v17 }
 0x1e5   :  { %3497 = vmatpush1.bf16.msra.mxu0 %v5931_v30  ;;  %3825 = vmatpush1.bf16.msra.mxu1 %v5934_v31  ;;  %v6023_v30 = vld [vmem:[#allocation7 + $0xe20] ss:$16 sps:$4 sm:$0xff]   ;;  %v6026_v31 = vld [vmem:[#allocation7 + $0xe28] ss:$16 sps:$4 sm:$0xff]  }
 0x1e6   :  { %3498 = vmatprep.subr.bf16.mxu0 %v5939_v32  ;;  %3826 = vmatprep.subr.bf16.mxu1 %v5942_v33  ;;  %v6034_v32 = vld [vmem:[#allocation7 + $0xe4c] ss:$16 sps:$4 sm:$0xff]   ;;  %v6029_v33 = vld [vmem:[#allocation7 + $0xe40] ss:$16 sps:$4 sm:$0xff]  }
 0x1e9   :  { %3499 = vmatpush1.bf16.msra.mxu0 %v5937_v34  ;;  %3827 = vmatpush1.bf16.msra.mxu1 %v5940_v35  ;;  %v6032_v34 = vld [vmem:[#allocation7 + $0xe48] ss:$16 sps:$4 sm:$0xff]   ;;  %v6037_v35 = vld [vmem:[#allocation7 + $0xe64] ss:$16 sps:$4 sm:$0xff]  }
 0x1ea   :  { %3500 = vmatprep.subr.bf16.mxu0 %v5945_v36  ;;  %3828 = vmatprep.subr.bf16.mxu1 %v5948_v37  ;;  %v6040_v36 = vld [vmem:[#allocation7 + $0xe6c] ss:$16 sps:$4 sm:$0xff]   ;;  %v6035_v37 = vld [vmem:[#allocation7 + $0xe60] ss:$16 sps:$4 sm:$0xff]  }
 0x1ed   :  { %3501 = vmatpush1.bf16.msra.mxu0 %v5943_v38  ;;  %3829 = vmatpush1.bf16.msra.mxu1 %v5946_v39  ;;  %v6038_v38 = vld [vmem:[#allocation7 + $0xe68] ss:$16 sps:$4 sm:$0xff]   ;;  %v6043_v39 = vld [vmem:[#allocation7 + $0xe84] ss:$16 sps:$4 sm:$0xff]  }
 0x1ee   :  { %3502 = vmatprep.subr.bf16.mxu0 %v5951_v40  ;;  %3830 = vmatprep.subr.bf16.mxu1 %v5954_v41  ;;  %v6046_v40 = vld [vmem:[#allocation7 + $0xe8c] ss:$16 sps:$4 sm:$0xff]   ;;  %v6041_v41 = vld [vmem:[#allocation7 + $0xe80] ss:$16 sps:$4 sm:$0xff]  }
 0x1f1   :  { %3503 = vmatpush1.bf16.msra.mxu0 %v5949_v42  ;;  %3831 = vmatpush1.bf16.msra.mxu1 %v5952_v43  ;;  %v6044_v42 = vld [vmem:[#allocation7 + $0xe88] ss:$16 sps:$4 sm:$0xff]   ;;  %v6049_v43 = vld [vmem:[#allocation7 + $0xea4] ss:$16 sps:$4 sm:$0xff]  }
 0x1f2   :  { %3504 = vmatprep.subr.bf16.mxu0 %v5957_v44  ;;  %3832 = vmatprep.subr.bf16.mxu1 %v5960_v45  ;;  %v6052_v44 = vld [vmem:[#allocation7 + $0xeac] ss:$16 sps:$4 sm:$0xff]   ;;  %v6047_v45 = vld [vmem:[#allocation7 + $0xea0] ss:$16 sps:$4 sm:$0xff]  }
 0x1f5   :  { %3505 = vmatpush1.bf16.msra.mxu0 %v5955_v46  ;;  %3833 = vmatpush1.bf16.msra.mxu1 %v5958_v47  ;;  %v6050_v46 = vld [vmem:[#allocation7 + $0xea8] ss:$16 sps:$4 sm:$0xff]   ;;  %v6055_v47 = vld [vmem:[#allocation7 + $0xec4] ss:$16 sps:$4 sm:$0xff]  }
 0x1f6   :  { %3506 = vmatprep.subr.bf16.mxu0 %v5963_v48  ;;  %3834 = vmatprep.subr.bf16.mxu1 %v5966_v49  ;;  %v6058_v48 = vld [vmem:[#allocation7 + $0xecc] ss:$16 sps:$4 sm:$0xff]   ;;  %v6053_v49 = vld [vmem:[#allocation7 + $0xec0] ss:$16 sps:$4 sm:$0xff]  }
 0x1f9   :  { %3507 = vmatpush1.bf16.msra.mxu0 %v5961_v50  ;;  %3835 = vmatpush1.bf16.msra.mxu1 %v5964_v51  ;;  %v6056_v50 = vld [vmem:[#allocation7 + $0xec8] ss:$16 sps:$4 sm:$0xff]   ;;  %v6061_v51 = vld [vmem:[#allocation7 + $0xee4] ss:$16 sps:$4 sm:$0xff]  }
 0x1fa   :  { %3508 = vmatprep.subr.bf16.mxu0 %v5969_v52  ;;  %3836 = vmatprep.subr.bf16.mxu1 %v5972_v53  ;;  %v6064_v52 = vld [vmem:[#allocation7 + $0xeec] ss:$16 sps:$4 sm:$0xff]   ;;  %v6059_v53 = vld [vmem:[#allocation7 + $0xee0] ss:$16 sps:$4 sm:$0xff]  }
 0x1fd   :  { %3509 = vmatpush1.bf16.msra.mxu0 %v5967_v54  ;;  %3837 = vmatpush1.bf16.msra.mxu1 %v5970_v55  ;;  %v6062_v54 = vld [vmem:[#allocation7 + $0xee8] ss:$16 sps:$4 sm:$0xff]   ;;  %v6067_v55 = vld [vmem:[#allocation7 + $0xf04] ss:$16 sps:$4 sm:$0xff]  }
 0x1fe   :  { %3510 = vmatprep.subr.bf16.mxu0 %v5975_v56  ;;  %3838 = vmatprep.subr.bf16.mxu1 %v5978_v57  ;;  %v6070_v56 = vld [vmem:[#allocation7 + $0xf0c] ss:$16 sps:$4 sm:$0xff]   ;;  %v6065_v57 = vld [vmem:[#allocation7 + $0xf00] ss:$16 sps:$4 sm:$0xff]  }
 0x201   :  { %3511 = vmatpush1.bf16.msra.mxu0 %v5973_v58  ;;  %3839 = vmatpush1.bf16.msra.mxu1 %v5976_v59  ;;  %v6068_v58 = vld [vmem:[#allocation7 + $0xf08] ss:$16 sps:$4 sm:$0xff]   ;;  %v6073_v59 = vld [vmem:[#allocation7 + $0xf24] ss:$16 sps:$4 sm:$0xff]  }
 0x202   :  { %3512 = vmatprep.subr.bf16.mxu0 %v5981_v60  ;;  %3840 = vmatprep.subr.bf16.mxu1 %v5984_v61  ;;  %v6076_v60 = vld [vmem:[#allocation7 + $0xf2c] ss:$16 sps:$4 sm:$0xff]   ;;  %v6071_v61 = vld [vmem:[#allocation7 + $0xf20] ss:$16 sps:$4 sm:$0xff]  }
 0x205   :  { %3513 = vmatpush1.bf16.msra.mxu0 %v5979_v62  ;;  %3841 = vmatpush1.bf16.msra.mxu1 %v5982_v63  ;;  %v6074_v62 = vld [vmem:[#allocation7 + $0xf28] ss:$16 sps:$4 sm:$0xff]   ;;  %v6079_v63 = vld [vmem:[#allocation7 + $0xf44] ss:$16 sps:$4 sm:$0xff]  }
 0x206   :  { %3514 = vmatprep.subr.bf16.mxu0 %v5987_v0  ;;  %3842 = vmatprep.subr.bf16.mxu1 %v5990_v1  ;;  %v6082_v0 = vld [vmem:[#allocation7 + $0xf4c] ss:$16 sps:$4 sm:$0xff]   ;;  %v6077_v1 = vld [vmem:[#allocation7 + $0xf40] ss:$16 sps:$4 sm:$0xff]  }
 0x209   :  { %3515 = vmatpush1.bf16.msra.mxu0 %v5985_v2  ;;  %3843 = vmatpush1.bf16.msra.mxu1 %v5988_v3  ;;  %v6080_v2 = vld [vmem:[#allocation7 + $0xf48] ss:$16 sps:$4 sm:$0xff]   ;;  %v6085_v3 = vld [vmem:[#allocation7 + $0xf64] ss:$16 sps:$4 sm:$0xff]  }
 0x20a   :  { %3516 = vmatprep.subr.bf16.mxu0 %v5993_v4  ;;  %3844 = vmatprep.subr.bf16.mxu1 %v5996_v5  ;;  %v6088_v4 = vld [vmem:[#allocation7 + $0xf6c] ss:$16 sps:$4 sm:$0xff]   ;;  %v6083_v5 = vld [vmem:[#allocation7 + $0xf60] ss:$16 sps:$4 sm:$0xff]  }
 0x20d   :  { %3517 = vmatpush1.bf16.msra.mxu0 %v5991_v6  ;;  %3845 = vmatpush1.bf16.msra.mxu1 %v5994_v7  ;;  %v6086_v6 = vld [vmem:[#allocation7 + $0xf68] ss:$16 sps:$4 sm:$0xff]   ;;  %v6091_v7 = vld [vmem:[#allocation7 + $0xf84] ss:$16 sps:$4 sm:$0xff]  }
 0x20e   :  { %3518 = vmatprep.subr.bf16.mxu0 %v5999_v8  ;;  %3846 = vmatprep.subr.bf16.mxu1 %v6002_v9  ;;  %v6094_v8 = vld [vmem:[#allocation7 + $0xf8c] ss:$16 sps:$4 sm:$0xff]   ;;  %v6089_v9 = vld [vmem:[#allocation7 + $0xf80] ss:$16 sps:$4 sm:$0xff]  }
 0x211   :  { %3519 = vmatpush1.bf16.msra.mxu0 %v5997_v10  ;;  %3847 = vmatpush1.bf16.msra.mxu1 %v6000_v12  ;;  %v6092_v10 = vld [vmem:[#allocation7 + $0xf88] ss:$16 sps:$4 sm:$0xff]   ;;  %v6097_v12 = vld [vmem:[#allocation7 + $0xfa4] ss:$16 sps:$4 sm:$0xff]  }
 0x212   :  { %3520 = vmatprep.subr.bf16.mxu0 %v6005_v13  ;;  %3848 = vmatprep.subr.bf16.mxu1 %v6008_v15  ;;  %v6100_v13 = vld [vmem:[#allocation7 + $0xfac] ss:$16 sps:$4 sm:$0xff]   ;;  %v6095_v15 = vld [vmem:[#allocation7 + $0xfa0] ss:$16 sps:$4 sm:$0xff]  }
 0x215   :  { %3521 = vmatpush1.bf16.msra.mxu0 %v6003_v16  ;;  %3849 = vmatpush1.bf16.msra.mxu1 %v6006_v18  ;;  %v6098_v16 = vld [vmem:[#allocation7 + $0xfa8] ss:$16 sps:$4 sm:$0xff]   ;;  %v6103_v18 = vld [vmem:[#allocation7 + $0xfc4] ss:$16 sps:$4 sm:$0xff]  }
 0x216   :  { %3522 = vmatprep.subr.bf16.mxu0 %v6011_v20  ;;  %3850 = vmatprep.subr.bf16.mxu1 %v6014_v11  ;;  %v6106_v20 = vld [vmem:[#allocation7 + $0xfcc] ss:$16 sps:$4 sm:$0xff]   ;;  %v6101_v11 = vld [vmem:[#allocation7 + $0xfc0] ss:$16 sps:$4 sm:$0xff]  }
 0x219   :  { %3523 = vmatpush1.bf16.msra.mxu0 %v6009_v21  ;;  %3851 = vmatpush1.bf16.msra.mxu1 %v6012_v22  ;;  %v6104_v21 = vld [vmem:[#allocation7 + $0xfc8] ss:$16 sps:$4 sm:$0xff]   ;;  %v6109_v22 = vld [vmem:[#allocation7 + $0xfe4] ss:$16 sps:$4 sm:$0xff]  }
 0x21a   :  { %3533 = vmatprep.subr.bf16.mxu0 %v6019_v23  ;;  %3861 = vmatprep.subr.bf16.mxu1 %v6022_v24  ;;  %v6112_v23 = vld [vmem:[#allocation7 + $0xfec] ss:$16 sps:$4 sm:$0xff]   ;;  %v6107_v24 = vld [vmem:[#allocation7 + $0xfe0] ss:$16 sps:$4 sm:$0xff]  }
 0x21c   :  { %3525 = vmatmul.mubr.bf16.vlgmr.msra.gmra.mrb[0].mxu0 %v4654_v25  ;;  %3853 = vmatmul.mubr.bf16.vlgmr.msra.gmra.mrb[0].mxu1 %v4654_v25  ;;  %v6110_v25 = vld [vmem:[#allocation7 + $0xfe8] ss:$16 sps:$4 sm:$0xff]  }
 0x21d   :  { %3534 = vmatpush1.bf16.msra.mxu0 %v6017_v26  ;;  %3862 = vmatpush1.bf16.msra.mxu1 %v6020_v27  ;;  %v6115_v26 = vld [vmem:[#allocation10 + $0x40] sm:$0xff]  }
 0x21e   :  { %3535 = vmatprep.subr.bf16.mxu0 %v6025_v28  ;;  %3863 = vmatprep.subr.bf16.mxu1 %v6028_v19  ;;  %v6116_v27 = vld [vmem:[#allocation10 + $0xc0] sm:$0xff]   ;;  %v4656_v28 = vcombine.low %v6428_v17, %v6428_v17  ;;  %v6125_v17 = vld [vmem:[#allocation10 + $0x10] sm:$0xff]  }
 0x21f   :  { %3565 = vmatprep.mubr.bf16.mxu0 %v4657_v29  ;;  %3893 = vmatprep.mubr.bf16.mxu1 %v4657_v29  ;;  %v6117_v19 = vld [vmem:[#allocation10] sm:$0xff]  }
 0x220   :  { %v6118_v29 = vld [vmem:[#allocation10 + $0x80] sm:$0xff]  }
 0x221   :  { %3536 = vmatpush1.bf16.msra.mxu0 %v6023_v30  ;;  %3864 = vmatpush1.bf16.msra.mxu1 %v6026_v31  ;;  %v6119_v30 = vld [vmem:[#allocation10 + $0x48] sm:$0xff]  }
 0x222   :  { %3537 = vmatprep.subr.bf16.mxu0 %v6031_v14  ;;  %3865 = vmatprep.subr.bf16.mxu1 %v6034_v32  ;;  %v6120_v31 = vld [vmem:[#allocation10 + $0xc8] sm:$0xff]  }
 0x223   :  { %v6121_v14 = vld [vmem:[#allocation10 + $0x8] sm:$0xff]  }
 0x224   :  { %v6122_v32 = vld [vmem:[#allocation10 + $0x88] sm:$0xff]  }
 0x225   :  { %3538 = vmatpush1.bf16.msra.mxu0 %v6029_v33  ;;  %3866 = vmatpush1.bf16.msra.mxu1 %v6032_v34  ;;  %v6123_v33 = vld [vmem:[#allocation10 + $0x50] sm:$0xff]  }
 0x226   :  { %3539 = vmatprep.subr.bf16.mxu0 %v6037_v35  ;;  %3867 = vmatprep.subr.bf16.mxu1 %v6040_v36  ;;  %v6124_v34 = vld [vmem:[#allocation10 + $0xd0] sm:$0xff]   ;;  %v6127_v36 = vld [vmem:[#allocation10 + $0x58] sm:$0xff]  }
 0x227   :  { %v6126_v35 = vld [vmem:[#allocation10 + $0x90] sm:$0xff]  }
 0x229   :  { %3540 = vmatpush1.bf16.msra.mxu0 %v6035_v37  ;;  %3868 = vmatpush1.bf16.msra.mxu1 %v6038_v38  ;;  %v6128_v37 = vld [vmem:[#allocation10 + $0xd8] sm:$0xff]  }
 0x22a   :  { %3541 = vmatprep.subr.bf16.mxu0 %v6043_v39  ;;  %3869 = vmatprep.subr.bf16.mxu1 %v6046_v40  ;;  %v6129_v38 = vld [vmem:[#allocation10 + $0x18] sm:$0xff]   ;;  %v6131_v40 = vld [vmem:[#allocation10 + $0x60] sm:$0xff]  }
 0x22b   :  { %v6130_v39 = vld [vmem:[#allocation10 + $0x98] sm:$0xff]  }
 0x22d   :  { %3542 = vmatpush1.bf16.msra.mxu0 %v6041_v41  ;;  %3870 = vmatpush1.bf16.msra.mxu1 %v6044_v42  ;;  %v6132_v41 = vld [vmem:[#allocation10 + $0xe0] sm:$0xff]  }
 0x22e   :  { %3543 = vmatprep.subr.bf16.mxu0 %v6049_v43  ;;  %3871 = vmatprep.subr.bf16.mxu1 %v6052_v44  ;;  %v6133_v42 = vld [vmem:[#allocation10 + $0x20] sm:$0xff]   ;;  %v6135_v44 = vld [vmem:[#allocation10 + $0x68] sm:$0xff]  }
 0x22f   :  { %v6134_v43 = vld [vmem:[#allocation10 + $0xa0] sm:$0xff]  }
 0x231   :  { %3544 = vmatpush1.bf16.msra.mxu0 %v6047_v45  ;;  %3872 = vmatpush1.bf16.msra.mxu1 %v6050_v46  ;;  %v6136_v45 = vld [vmem:[#allocation10 + $0xe8] sm:$0xff]  }
 0x232   :  { %3545 = vmatprep.subr.bf16.mxu0 %v6055_v47  ;;  %3873 = vmatprep.subr.bf16.mxu1 %v6058_v48  ;;  %v6137_v46 = vld [vmem:[#allocation10 + $0x28] sm:$0xff]   ;;  %v6139_v48 = vld [vmem:[#allocation10 + $0x70] sm:$0xff]  }
 0x233   :  { %v6138_v47 = vld [vmem:[#allocation10 + $0xa8] sm:$0xff]  }
 0x235   :  { %3546 = vmatpush1.bf16.msra.mxu0 %v6053_v49  ;;  %3874 = vmatpush1.bf16.msra.mxu1 %v6056_v50  ;;  %v6140_v49 = vld [vmem:[#allocation10 + $0xf0] sm:$0xff]  }
 0x236   :  { %3547 = vmatprep.subr.bf16.mxu0 %v6061_v51  ;;  %3875 = vmatprep.subr.bf16.mxu1 %v6064_v52  ;;  %v6141_v50 = vld [vmem:[#allocation10 + $0x30] sm:$0xff]   ;;  %v6143_v52 = vld [vmem:[#allocation10 + $0x78] sm:$0xff]  }
 0x237   :  { %v6142_v51 = vld [vmem:[#allocation10 + $0xb0] sm:$0xff]  }
 0x239   :  { %3548 = vmatpush1.bf16.msra.mxu0 %v6059_v53  ;;  %3876 = vmatpush1.bf16.msra.mxu1 %v6062_v54  ;;  %v6144_v53 = vld [vmem:[#allocation10 + $0xf8] sm:$0xff]  }
 0x23a   :  { %3549 = vmatprep.subr.bf16.mxu0 %v6067_v55  ;;  %3877 = vmatprep.subr.bf16.mxu1 %v6070_v56  ;;  %v6145_v54 = vld [vmem:[#allocation10 + $0x38] sm:$0xff]   ;;  %v610_v56 = vlaneseq }
 0x23b   :  { %v6146_v55 = vld [vmem:[#allocation10 + $0xb8] sm:$0xff]  }
 0x23d   :  { %3550 = vmatpush1.bf16.msra.mxu0 %v6065_v57  ;;  %3878 = vmatpush1.bf16.msra.mxu1 %v6068_v58  ;;  %v611_v57 = vshrl.u32 %v610_v56, 7 }
 0x23e   :  { %3551 = vmatprep.subr.bf16.mxu0 %v6073_v59  ;;  %3879 = vmatprep.subr.bf16.mxu1 %v6076_v60  ;;  %v608_v60 = vld [vmem:[#allocation9] sm:$0xf] }
 0x23f   :  { %v612_v58 = vsub.s32 0, %v611_v57  ;;  %v620_v59 = vsub.s32 2, %v611_v57 }
 0x241   :  { %3552 = vmatpush1.bf16.msra.mxu0 %v6071_v61  ;;  %3880 = vmatpush1.bf16.msra.mxu1 %v6074_v62  ;;  %v616_v61 = vsub.s32 1, %v611_v57  ;;  %v624_v62 = vsub.s32 3, %v611_v57 }
 0x242   :  { %3553 = vmatprep.subr.bf16.mxu0 %v6079_v63  ;;  %3881 = vmatprep.subr.bf16.mxu1 %v6082_v0  ;;  %v613_v63 = vrot.slane %v608_v60, %v612_v58  ;;  %v621_v0 = vrot.slane %v608_v60, %v620_v59 }
 0x245   :  { %3554 = vmatpush1.bf16.msra.mxu0 %v6077_v1  ;;  %3882 = vmatpush1.bf16.msra.mxu1 %v6080_v2  ;;  %v617_v1 = vrot.slane %v608_v60, %v616_v61  ;;  %v625_v2 = vrot.slane %v608_v60, %v624_v62 }
 0x246   :  { %3555 = vmatprep.subr.bf16.mxu0 %v6085_v3  ;;  %3883 = vmatprep.subr.bf16.mxu1 %v6088_v4 }
 0x249   :  { %3556 = vmatpush1.bf16.msra.mxu0 %v6083_v5  ;;  %3884 = vmatpush1.bf16.msra.mxu1 %v6086_v6 }
 0x24a   :  { %3557 = vmatprep.subr.bf16.mxu0 %v6091_v7  ;;  %3885 = vmatprep.subr.bf16.mxu1 %v6094_v8 }
 0x24d   :  { %3558 = vmatpush1.bf16.msra.mxu0 %v6089_v9  ;;  %3886 = vmatpush1.bf16.msra.mxu1 %v6092_v10 }
 0x24e   :  { %3559 = vmatprep.subr.bf16.mxu0 %v6097_v12  ;;  %3887 = vmatprep.subr.bf16.mxu1 %v6100_v13 }
 0x251   :  { %3560 = vmatpush1.bf16.msra.mxu0 %v6095_v15  ;;  %3888 = vmatpush1.bf16.msra.mxu1 %v6098_v16 }
 0x252   :  { %3561 = vmatprep.subr.bf16.mxu0 %v6103_v18  ;;  %3889 = vmatprep.subr.bf16.mxu1 %v6106_v20 }
 0x255   :  { %3562 = vmatpush1.bf16.msra.mxu0 %v6101_v11  ;;  %3890 = vmatpush1.bf16.msra.mxu1 %v6104_v21 }
 0x256   :  { %3563 = vmatprep.subr.bf16.mxu0 %v6109_v22  ;;  %3891 = vmatprep.subr.bf16.mxu1 %v6112_v23 }
 0x259   :  { %3564 = vmatpush1.bf16.msra.mxu0 %v6107_v24  ;;  %3892 = vmatpush1.bf16.msra.mxu1 %v6110_v25 }
 0x25a   :  { %5215 = vmatprep.subr.bf16.mxu0 %v6115_v26  ;;  %5237 = vmatprep.subr.bf16.mxu1 %v6116_v27 }
 0x25c   :  { %3566 = vmatmul.mubr.bf16.vlgmr.msra.gmra.mrb[0].mxu0 %v4656_v28  ;;  %3894 = vmatmul.mubr.bf16.vlgmr.msra.gmra.mrb[0].mxu1 %v4656_v28 }
 0x25d   :  { %5216 = vmatpush3.bf16.msra.mxu0 %v6117_v19  ;;  %5238 = vmatpush3.bf16.msra.mxu1 %v6118_v29  ;;  %v6300_v19 = vmov 0  }
 0x25e   :  { %5217 = vmatprep.subr.bf16.mxu0 %v6119_v30  ;;  %5239 = vmatprep.subr.bf16.mxu1 %v6120_v31 }
 0x25f   :  { %5330 = vset.pattern.permute.xlu0 %v6300_v19 }
 0x261   :  { %5218 = vmatpush3.bf16.msra.mxu0 %v6121_v14  ;;  %5240 = vmatpush3.bf16.msra.mxu1 %v6122_v32 }
 0x262   :  { %5219 = vmatprep.subr.bf16.mxu0 %v6123_v33  ;;  %5241 = vmatprep.subr.bf16.mxu1 %v6124_v34 }
 0x265   :  { %5220 = vmatpush3.bf16.msra.mxu0 %v6125_v17  ;;  %5242 = vmatpush3.bf16.msra.mxu1 %v6126_v35 }
 0x266   :  { %5221 = vmatprep.subr.bf16.mxu0 %v6127_v36  ;;  %5243 = vmatprep.subr.bf16.mxu1 %v6128_v37 }
 0x269   :  { %5222 = vmatpush3.bf16.msra.mxu0 %v6129_v38  ;;  %5244 = vmatpush3.bf16.msra.mxu1 %v6130_v39 }
 0x26a   :  { %5223 = vmatprep.subr.bf16.mxu0 %v6131_v40  ;;  %5245 = vmatprep.subr.bf16.mxu1 %v6132_v41  ;;  %v5208_v40 = vld [vmem:[#allocation12] ss:$0 sm:$0xff] }
 0x26d   :  { %5224 = vmatpush3.bf16.msra.mxu0 %v6133_v42  ;;  %5246 = vmatpush3.bf16.msra.mxu1 %v6134_v43 }
 0x26e   :  { %5225 = vmatprep.subr.bf16.mxu0 %v6135_v44  ;;  %5247 = vmatprep.subr.bf16.mxu1 %v6136_v45 }
 0x271   :  { %5226 = vmatpush3.bf16.msra.mxu0 %v6137_v46  ;;  %5248 = vmatpush3.bf16.msra.mxu1 %v6138_v47 }
 0x272   :  { %5227 = vmatprep.subr.bf16.mxu0 %v6139_v48  ;;  %5249 = vmatprep.subr.bf16.mxu1 %v6140_v49 }
 0x275   :  { %5228 = vmatpush3.bf16.msra.mxu0 %v6141_v50  ;;  %5250 = vmatpush3.bf16.msra.mxu1 %v6142_v51 }
 0x276   :  { %5229 = vmatprep.subr.bf16.mxu0 %v6143_v52  ;;  %5251 = vmatprep.subr.bf16.mxu1 %v6144_v53 }
 0x279   :  { %5230 = vmatpush3.bf16.msra.mxu0 %v6145_v54  ;;  %5252 = vmatpush3.bf16.msra.mxu1 %v6146_v55 }
 0x32f   :  { %v3567_v3 = vpop.f32.mrb[0].mxu0  ;;  %v3895_v4 = vpop.f32.mrb[0].mxu1 }
 0x330   :  { %v5259_v5 = vadd.f32 %v3567_v3, %v613_v63  ;;  %v5261_v6 = vadd.f32 %v3895_v4, %v621_v0  ;;  %v3569_v7 = vpop.f32.mrb[1].mxu0  ;;  %v3897_v8 = vpop.f32.mrb[1].mxu1 }
 0x331   :  { %v5260_v9 = vadd.f32 %v3569_v7, %v617_v1  ;;  %v5262_v10 = vadd.f32 %v3897_v8, %v625_v2  ;;  %v3571_v12 = vpop.f32.mrb[2].mxu0  ;;  %v3899_v13 = vpop.f32.mrb[2].mxu1 }
 0x332   :  { %v3902_v15 = vmul.f32 %v5259_v5, %v5259_v5  ;;  %v3572_v16 = vpop.f32.mrb[3].mxu0  ;;  %v3900_v18 = vpop.f32.mrb[3].mxu1  ;;  %v5211_v22 = vpack.c.bf16 %v5259_v5, %v5259_v5  ;;  %v5213_v23 = vpack.c.bf16 %v5261_v6, %v5261_v6  ;;  %v3904_v24 = vmul.f32 %v5261_v6, %v5261_v6 }
 0x333   :  { %v3903_v20 = vmul.f32 %v5260_v9, %v5260_v9  ;;  %v5212_v11 = vpack.c.bf16 %v5260_v9, %v5260_v9  ;;  %v5214_v21 = vpack.c.bf16 %v5262_v10, %v5262_v10  ;;  %v3905_v26 = vmul.f32 %v5262_v10, %v5262_v10 }
 0x335   :  { %4235 = vmatprep.mubr.bf16.mxu0 %v5212_v11  ;;  %4275 = vmatprep.mubr.bf16.mxu1 %v5214_v21  ;;  %v3906_v25 = vadd.f32 %v3903_v20, %v3902_v15 }
 0x336   :  { %4236 = vmatmul.mubr.bf16.vlgmr.msra.gmra.mrb[4].mxu0 %v5211_v22  ;;  %4276 = vmatmul.mubr.bf16.vlgmr.msra.gmra.mrb[4].mxu1 %v5213_v23 }
 0x337   :  { %v3907_v27 = vadd.f32 %v3906_v25, %v3904_v24 }
 0x339   :  { %v3908_v28 = vadd.f32 %v3907_v27, %v3905_v26 }
 0x33b   :  { %3909 = vadd.xlane.f32.xlu0 %v3908_v28 }
 0x3c8   :  { %v3910_v29 = vpop.xlane.xlu0 %3909 }
 0x3c9   :  { %3912 = vst.msk [vmem:[#allocation3] sm:$0xff] %vm3911_vm0, %v3910_v29 }
 0x3d0   :  { %v4283_v30 = vld [vmem:[#allocation3] sm:$0xff] }
 0x3d1   :  { %4287 = vperm.xlu0 %5330, %v4283_v30  }
 0x409   :  { %v5231_v31 = vpop.f32.mrb[4].mxu0  ;;  %v5253_v14 = vpop.f32.mrb[4].mxu1 }
 0x40a   :  { %v5232_v32 = vpop.f32.mrb[5].mxu0  ;;  %v5254_v33 = vpop.f32.mrb[5].mxu1 }
 0x40b   :  { %v5233_v34 = vadd.f32 %v5232_v32, %v5231_v31  ;;  %v5255_v17 = vadd.f32 %v5254_v33, %v5253_v14  ;;  %v5234_v35 = vpop.f32.mrb[6].mxu0  ;;  %v5256_v36 = vpop.f32.mrb[6].mxu1 }
 0x40c   :  { %v5235_v37 = vpop.f32.mrb[7].mxu0  ;;  %v5257_v38 = vpop.f32.mrb[7].mxu1 }
 0x40d   :  { %v4278_v39 = vadd.f32 %v5255_v17, %v5233_v34 }
 0x450   :  { %v4288_v41 = vpop.permute.xlu0 %4287 }
 0x451   :  { %v4296_v42 = vmul.f32 %v5208_v40, %v4288_v41 }
 0x453   :  { %v4297_v43 = vmax.f32 %v4296_v42, 1e-16 }
 0x455   :  { %6147 = vrsqrt.f32 %v4297_v43 }
 0x45f   :  { %v6148_v44 = vpop.eup %6147 }
 0x460   :  { %v6434_v45 = vmul.f32 %v6148_v44, %v4278_v39 }
 0x462   :  { %v4300_v46 = vmul.f32 1.6608763, %v6434_v45  ;;  %v4305_v47 = vmul.f32 0.2555516, %v6434_v45  ;;  %v4310_v48 = vmul.f32 0.02895196, %v6434_v45 }
 0x463   :  { %v4315_v49 = vmul.f32 1.3796482, %v6434_v45  ;;  %v4320_v50 = vmul.f32 2.598285, %v6434_v45  ;;  %v4325_v55 = vmul.f32 -0.029746998, %v6434_v45 }
 0x464   :  { %v4301_v51 = vadd.f32 0.0699488, %v4300_v46  ;;  %v4306_v52 = vadd.f32 -0.10251802, %v4305_v47  ;;  %v4311_v53 = vadd.f32 0.0488386, %v4310_v48 }
 0x465   :  { %v4316_v54 = vadd.f32 -0.018597728, %v4315_v49  ;;  %v4321_v58 = vadd.f32 0.009473274, %v4320_v50  ;;  %v4330_v61 = vmul.f32 0.17262073, %v6434_v45 }
 0x466   :  { %v4302_v56 = vmax.f32 %v4301_v51, 0.0  ;;  %v4307_v57 = vmax.f32 %v4306_v52, 0.0  ;;  %v4312_v60 = vmax.f32 %v4311_v53, 0.0  ;;  %v4326_v63 = vadd.f32 -0.07087633, %v4325_v55 }
 0x467   :  { %v4317_v62 = vmax.f32 %v4316_v54, 0.0  ;;  %v4335_v2 = vmul.f32 -1.0032358, %v6434_v45  ;;  %v4322_v3 = vmax.f32 %v4321_v58, 0.0  ;;  %v4331_v6 = vadd.f32 -0.22368734, %v4330_v61 }
 0x468   :  { %v4303_v59 = vmul.f32 0.09451633, %v4302_v56  ;;  %v4308_v1 = vmul.f32 -0.07503259, %v4307_v57  ;;  %v4313_v5 = vmul.f32 0.20069562, %v4312_v60 }
 0x469   :  { %v4340_v7 = vmul.f32 -1.6349367, %v6434_v45  ;;  %v4327_v8 = vmax.f32 %v4326_v63, 0.0  ;;  %v4318_v10 = vmul.f32 0.23469295, %v4317_v62  ;;  %v4332_v20 = vmax.f32 %v4331_v6, 0.0 }
 0x46a   :  { %v4304_v0 = vadd.f32 -0.15426557, %v4303_v59  ;;  %v4336_v12 = vadd.f32 -0.00050158275, %v4335_v2  ;;  %v4345_v13 = vmul.f32 1.1809967, %v6434_v45 }
 0x46b   :  { %v4350_v15 = vmul.f32 -0.2516316, %v6434_v45  ;;  %v4323_v18 = vmul.f32 0.0024462517, %v4322_v3  ;;  %v4341_v11 = vadd.f32 0.121379495, %v4340_v7 }
 0x46c   :  { %v4309_v4 = vadd.f32 %v4308_v1, %v4304_v0  ;;  %v4355_v21 = vmul.f32 -2.6252527, %v6434_v45  ;;  %v4328_v23 = vmul.f32 0.23762344, %v4327_v8  ;;  %v4337_v24 = vmax.f32 %v4336_v12, 0.0 }
 0x46d   :  { %v4346_v25 = vadd.f32 0.070687495, %v4345_v13  ;;  %v4351_v26 = vadd.f32 0.046361383, %v4350_v15  ;;  %v4333_v28 = vmul.f32 -0.14260784, %v4332_v20 }
 0x46e   :  { %v4314_v9 = vadd.f32 %v4313_v5, %v4309_v4  ;;  %v4342_v19 = vmax.f32 %v4341_v11, 0.0  ;;  %v4360_v29 = vmul.f32 -0.21615824, %v6434_v45  ;;  %v4356_v30 = vadd.f32 0.08296372, %v4355_v21 }
 0x46f   :  { %v4338_v14 = vmul.f32 0.14069444, %v4337_v24  ;;  %v4347_v32 = vmax.f32 %v4346_v25, 0.0  ;;  %v4365_v33 = vmul.f32 -0.87588096, %v6434_v45  ;;  %v4352_v36 = vmax.f32 %v4351_v26, 0.0 }
 0x470   :  { %v4319_v16 = vadd.f32 %v4318_v10, %v4314_v9  ;;  %v4370_v34 = vmul.f32 0.32905298, %v6434_v45  ;;  %v4343_v35 = vmul.f32 0.010405939, %v4342_v19  ;;  %v4361_v37 = vadd.f32 -0.001230806, %v4360_v29 }
 0x471   :  { %v4357_v38 = vmax.f32 %v4356_v30, 0.0  ;;  %v4348_v40 = vmul.f32 0.082860105, %v4347_v32  ;;  %v4366_v41 = vadd.f32 -0.019331453, %v4365_v33 }
 0x472   :  { %v4324_v22 = vadd.f32 %v4323_v18, %v4319_v16  ;;  %v4375_v42 = vmul.f32 -0.8402651, %v6434_v45  ;;  %v4371_v43 = vadd.f32 -0.042662438, %v4370_v34  ;;  %v4353_v46 = vmul.f32 -0.09170915, %v4352_v36 }
 0x473   :  { %v4362_v47 = vmax.f32 %v4361_v37, 0.0  ;;  %v4380_v48 = vmul.f32 -1.4359016, %v6434_v45  ;;  %v4358_v49 = vmul.f32 0.013288462, %v4357_v38  ;;  %v4367_v51 = vmax.f32 %v4366_v41, 0.0 }
 0x474   :  { %v4329_v27 = vadd.f32 %v4328_v23, %v4324_v22  ;;  %v4376_v52 = vadd.f32 0.15837876, %v4375_v42  ;;  %v4385_v53 = vmul.f32 -2.2938662, %v6434_v45  ;;  %v4372_v54 = vmax.f32 %v4371_v43, 0.0 }
 0x475   :  { %v4363_v56 = vmul.f32 0.13147977, %v4362_v47  ;;  %v4381_v57 = vadd.f32 0.005269, %v4380_v48  ;;  %v4390_v58 = vmul.f32 -0.4772723, %v6434_v45 }
 0x476   :  { %v4334_v31 = vadd.f32 %v4333_v28, %v4329_v27  ;;  %v4395_v59 = vmul.f32 -0.94741184, %v6434_v45  ;;  %v4368_v61 = vmul.f32 0.077243194, %v4367_v51  ;;  %v4377_v62 = vmax.f32 %v4376_v52, 0.0 }
 0x477   :  { %v4386_v63 = vadd.f32 -0.042708978, %v4385_v53  ;;  %v4400_v0 = vmul.f32 -0.09083185, %v6434_v45  ;;  %v4373_v2 = vmul.f32 -0.070995644, %v4372_v54 }
 0x478   :  { %v4339_v17 = vadd.f32 %v4338_v14, %v4334_v31  ;;  %v4382_v3 = vmax.f32 %v4381_v57, 0.0  ;;  %v4391_v4 = vadd.f32 0.07297637, %v4390_v58  ;;  %v4396_v5 = vadd.f32 0.05681736, %v4395_v59 }
 0x479   :  { %v4378_v7 = vmul.f32 -0.05480008, %v4377_v62  ;;  %v4387_v8 = vmax.f32 %v4386_v63, 0.0  ;;  %v4405_v9 = vmul.f32 0.220165, %v6434_v45 }
 0x47a   :  { %v4344_v39 = vadd.f32 %v4343_v35, %v4339_v17  ;;  %v4401_v10 = vadd.f32 -0.079368144, %v4400_v0  ;;  %v4383_v13 = vmul.f32 -0.027232902, %v4382_v3  ;;  %v4392_v15 = vmax.f32 %v4391_v4, 0.0 }
 0x47b   :  { %v4410_v16 = vmul.f32 0.1463018, %v6434_v45  ;;  %v4397_v18 = vmax.f32 %v4396_v5, 0.0  ;;  %v4388_v11 = vmul.f32 0.07441948, %v4387_v8 }
 0x47c   :  { %v4349_v44 = vadd.f32 %v4348_v40, %v4344_v39  ;;  %v4406_v21 = vadd.f32 0.051749747, %v4405_v9  ;;  %v4415_v22 = vmul.f32 -1.4924442, %v6434_v45  ;;  %v4402_v23 = vmax.f32 %v4401_v10, 0.0 }
 0x47d   :  { %v4393_v25 = vmul.f32 -0.10593388, %v4392_v15  ;;  %v4411_v26 = vadd.f32 0.098687045, %v4410_v16  ;;  %v4420_v27 = vmul.f32 -0.89649934, %v6434_v45 }
 0x47e   :  { %v4354_v50 = vadd.f32 %v4353_v46, %v4349_v44  ;;  %v4398_v28 = vmul.f32 0.12683406, %v4397_v18  ;;  %v4407_v29 = vmax.f32 %v4406_v21, 0.0  ;;  %v4416_v30 = vadd.f32 -0.018323382, %v4415_v22 }
 0x47f   :  { %v4425_v31 = vmul.f32 -0.6589379, %v6434_v45  ;;  %v4430_v14 = vmul.f32 0.022339428, %v6434_v45  ;;  %v4403_v33 = vmul.f32 -0.10850352, %v4402_v23 }
 0x480   :  { %v4359_v55 = vadd.f32 %v4358_v49, %v4354_v50  ;;  %v4412_v34 = vmax.f32 %v4411_v26, 0.0  ;;  %v4421_v17 = vadd.f32 0.00030130145, %v4420_v27  ;;  %v4435_v35 = vmul.f32 0.30301878, %v6434_v45 }
 0x481   :  { %v4408_v37 = vmul.f32 -0.01868999, %v4407_v29  ;;  %v4417_v38 = vmax.f32 %v4416_v30, 0.0  ;;  %v4426_v39 = vadd.f32 0.07143747, %v4425_v31 }
 0x482   :  { %v4364_v60 = vadd.f32 %v4363_v56, %v4359_v55  ;;  %v4431_v40 = vadd.f32 0.22454809, %v4430_v14  ;;  %v4413_v42 = vmul.f32 -0.061834116, %v4412_v34  ;;  %v4422_v43 = vmax.f32 %v4421_v17, 0.0 }
 0x483   :  { %v4440_v44 = vmul.f32 -1.1642568, %v6434_v45  ;;  %v4436_v46 = vadd.f32 0.24286471, %v4435_v35  ;;  %v4418_v48 = vmul.f32 -0.064967714, %v4417_v38 }
 0x484   :  { %v4369_v1 = vadd.f32 %v4368_v61, %v4364_v60  ;;  %v4427_v49 = vmax.f32 %v4426_v39, 0.0  ;;  %v4445_v50 = vmul.f32 -0.05724317, %v6434_v45  ;;  %v4432_v51 = vmax.f32 %v4431_v40, 0.0 }
 0x485   :  { %v4423_v53 = vmul.f32 -0.07747305, %v4422_v43  ;;  %v4441_v54 = vadd.f32 -0.12194381, %v4440_v44  ;;  %v4450_v55 = vmul.f32 -1.0561857, %v6434_v45 }
 0x486   :  { %v4374_v6 = vadd.f32 %v4373_v2, %v4369_v1  ;;  %v4437_v56 = vmax.f32 %v4436_v46, 0.0  ;;  %v4428_v58 = vmul.f32 -0.041253813, %v4427_v49  ;;  %v4446_v59 = vadd.f32 0.012577846, %v4445_v50 }
 0x487   :  { %v4455_v60 = vmul.f32 -0.54164547, %v6434_v45  ;;  %v4460_v61 = vmul.f32 1.0859103, %v6434_v45  ;;  %v4433_v63 = vmul.f32 0.098858126, %v4432_v51 }
 0x488   :  { %v4379_v12 = vadd.f32 %v4378_v7, %v4374_v6  ;;  %v4442_v0 = vmax.f32 %v4441_v54, 0.0  ;;  %v4451_v1 = vadd.f32 0.17928475, %v4450_v55  ;;  %v4465_v2 = vmul.f32 1.5699801, %v6434_v45 }
 0x489   :  { %v4438_v4 = vmul.f32 0.11903706, %v4437_v56  ;;  %v4447_v5 = vmax.f32 %v4446_v59, 0.0  ;;  %v4456_v6 = vadd.f32 -0.027911022, %v4455_v60 }
 0x48a   :  { %v4384_v20 = vadd.f32 %v4383_v13, %v4379_v12  ;;  %v4461_v7 = vadd.f32 -0.05727916, %v4460_v61  ;;  %v4443_v9 = vmul.f32 -0.036456544, %v4442_v0  ;;  %v4452_v10 = vmax.f32 %v4451_v1, 0.0 }
 0x48b   :  { %v4470_v12 = vmul.f32 -0.91292864, %v6434_v45  ;;  %v4466_v13 = vadd.f32 0.09392538, %v4465_v2  ;;  %v4448_v16 = vmul.f32 -0.16856572, %v4447_v5 }
 0x48c   :  { %v4389_v24 = vadd.f32 %v4388_v11, %v4384_v20  ;;  %v4457_v18 = vmax.f32 %v4456_v6, 0.0  ;;  %v4475_v20 = vmul.f32 -0.5836045, %v6434_v45  ;;  %v4462_v11 = vmax.f32 %v4461_v7, 0.0 }
 0x48d   :  { %v4453_v22 = vmul.f32 -0.16916855, %v4452_v10  ;;  %v4471_v23 = vadd.f32 -0.13320379, %v4470_v12  ;;  %v4490_v29 = vmul.f32 1.4008663, %v6434_v45 }
 0x48e   :  { %v4394_v19 = vadd.f32 %v4393_v25, %v4389_v24  ;;  %v4480_v24 = vmul.f32 -0.55485886, %v6434_v45  ;;  %v4467_v25 = vmax.f32 %v4466_v13, 0.0  ;;  %v4458_v27 = vmul.f32 -0.036355413, %v4457_v18 }
 0x48f   :  { %v4463_v31 = vmul.f32 0.13223672, %v4462_v11  ;;  %v4472_v14 = vmax.f32 %v4471_v23, 0.0 }
 0x490   :  { %v4399_v32 = vadd.f32 %v4398_v28, %v4394_v19  ;;  %v4476_v28 = vadd.f32 -0.1617407, %v4475_v20  ;;  %v4485_v19 = vmul.f32 -0.21382377, %v6434_v45  ;;  %v4468_v17 = vmul.f32 -0.0073472215, %v4467_v25 }
 0x491   :  { %v4473_v39 = vmul.f32 -0.09302934, %v4472_v14 }
 0x492   :  { %v4404_v36 = vadd.f32 %v4403_v33, %v4399_v32  ;;  %v4481_v32 = vadd.f32 -0.03665551, %v4480_v24  ;;  %v4495_v33 = vmul.f32 -0.78730667, %v6434_v45  ;;  %v4477_v35 = vmax.f32 %v4476_v28, 0.0 }
 0x494   :  { %v4409_v41 = vadd.f32 %v4408_v37, %v4404_v36  ;;  %v4486_v36 = vadd.f32 0.109363906, %v4485_v19  ;;  %v4491_v37 = vadd.f32 0.018197335, %v4490_v29  ;;  %v4482_v40 = vmax.f32 %v4481_v32, 0.0 }
 0x495   :  { %v4478_v44 = vmul.f32 -0.07543009, %v4477_v35 }
 0x496   :  { %v4414_v47 = vadd.f32 %v4413_v42, %v4409_v41  ;;  %v4500_v41 = vmul.f32 -2.0867467, %v6434_v45  ;;  %v4496_v42 = vadd.f32 -0.091400616, %v4495_v33  ;;  %v4487_v46 = vmax.f32 %v4486_v36, 0.0 }
 0x497   :  { %v4483_v50 = vmul.f32 -0.22270152, %v4482_v40 }
 0x498   :  { %v4419_v52 = vadd.f32 %v4418_v48, %v4414_v47  ;;  %v4505_v47 = vmul.f32 -0.23472162, %v6434_v45  ;;  %v4492_v48 = vmax.f32 %v4491_v37, 0.0  ;;  %v4501_v51 = vadd.f32 0.124210835, %v4500_v41 }
 0x499   :  { %v4488_v55 = vmul.f32 0.00032945143, %v4487_v46 }
 0x49a   :  { %v4424_v57 = vadd.f32 %v4423_v53, %v4419_v52  ;;  %v4510_v52 = vmul.f32 1.6782763, %v6434_v45  ;;  %v4497_v53 = vmax.f32 %v4496_v42, 0.0  ;;  %v4506_v56 = vadd.f32 -0.13144013, %v4505_v47 }
 0x49b   :  { %v4493_v60 = vmul.f32 0.080840796, %v4492_v48  ;;  %v4502_v61 = vmax.f32 %v4501_v51, 0.0 }
 0x49c   :  { %v4429_v62 = vadd.f32 %v4428_v58, %v4424_v57  ;;  %v4515_v57 = vmul.f32 -0.3410165, %v6434_v45  ;;  %v4520_v58 = vmul.f32 0.21691766, %v6434_v45  ;;  %v4498_v1 = vmul.f32 -0.009678131, %v4497_v53 }
 0x49d   :  { %v4507_v2 = vmax.f32 %v4506_v56, 0.0  ;;  %v4503_v6 = vmul.f32 -0.18379633, %v4502_v61 }
 0x49e   :  { %v4434_v3 = vadd.f32 %v4433_v63, %v4429_v62  ;;  %v4511_v62 = vadd.f32 0.08641695, %v4510_v52  ;;  %v4525_v63 = vmul.f32 -1.4245845, %v6434_v45 }
 0x49f   :  { %v4508_v12 = vmul.f32 -0.16494331, %v4507_v2 }
 0x4a0   :  { %v4439_v8 = vadd.f32 %v4438_v4, %v4434_v3  ;;  %v4516_v3 = vadd.f32 -0.11459599, %v4515_v57  ;;  %v4521_v4 = vadd.f32 -0.047621105, %v4520_v58  ;;  %v4512_v7 = vmax.f32 %v4511_v62, 0.0 }
 0x4a2   :  { %v4444_v15 = vadd.f32 %v4443_v9, %v4439_v8  ;;  %v4530_v8 = vmul.f32 -1.6823967, %v6434_v45  ;;  %v4526_v9 = vadd.f32 0.121080235, %v4525_v63  ;;  %v4517_v13 = vmax.f32 %v4516_v3, 0.0 }
 0x4a3   :  { %v4513_v20 = vmul.f32 -0.037028294, %v4512_v7 }
 0x4a4   :  { %v4449_v21 = vadd.f32 %v4448_v16, %v4444_v15  ;;  %v4535_v15 = vmul.f32 0.30101338, %v6434_v45  ;;  %v4522_v16 = vmax.f32 %v4521_v4, 0.0  ;;  %v4531_v11 = vadd.f32 -0.12126394, %v4530_v8 }
 0x4a5   :  { %v4518_v24 = vmul.f32 -0.06538702, %v4517_v13 }
 0x4a6   :  { %v4454_v26 = vadd.f32 %v4453_v22, %v4449_v21  ;;  %v4540_v21 = vmul.f32 2.2187572, %v6434_v45  ;;  %v4527_v22 = vmax.f32 %v4526_v9, 0.0  ;;  %v4536_v25 = vadd.f32 -0.22020558, %v4535_v15 }
 0x4a7   :  { %v4523_v19 = vmul.f32 0.07667345, %v4522_v16  ;;  %v4532_v29 = vmax.f32 %v4531_v11, 0.0 }
 0x4a8   :  { %v4459_v30 = vadd.f32 %v4458_v27, %v4454_v26  ;;  %v4545_v26 = vmul.f32 0.9797507, %v6434_v45  ;;  %v4550_v27 = vmul.f32 -0.57451445, %v6434_v45  ;;  %v4528_v32 = vmul.f32 -0.10229, %v4527_v22 }
 0x4a9   :  { %v4537_v33 = vmax.f32 %v4536_v25, 0.0  ;;  %v4533_v36 = vmul.f32 0.07725345, %v4532_v29 }
 0x4aa   :  { %v4464_v34 = vadd.f32 %v4463_v31, %v4459_v30  ;;  %v4541_v30 = vadd.f32 0.39955145, %v4540_v21  ;;  %v4555_v31 = vmul.f32 -0.19840075, %v6434_v45 }
 0x4ab   :  { %v4538_v41 = vmul.f32 0.08602479, %v4537_v33 }
 0x4ac   :  { %v4469_v38 = vadd.f32 %v4468_v17, %v4464_v34  ;;  %v4546_v34 = vadd.f32 -0.030319944, %v4545_v26  ;;  %v4551_v17 = vadd.f32 -0.06808724, %v4550_v27  ;;  %v4542_v37 = vmax.f32 %v4541_v30, 0.0 }
 0x4ae   :  { %v4474_v43 = vadd.f32 %v4473_v39, %v4469_v38  ;;  %v4560_v38 = vmul.f32 -0.7973722, %v6434_v45  ;;  %v4556_v39 = vadd.f32 0.19938494, %v4555_v31  ;;  %v4547_v42 = vmax.f32 %v4546_v34, 0.0 }
 0x4af   :  { %v4543_v47 = vmul.f32 0.12124683, %v4542_v37 }
 0x4b0   :  { %v4479_v49 = vadd.f32 %v4478_v44, %v4474_v43  ;;  %v4565_v43 = vmul.f32 0.109872386, %v6434_v45  ;;  %v4552_v44 = vmax.f32 %v4551_v17, 0.0  ;;  %v4561_v48 = vadd.f32 0.20359193, %v4560_v38 }
 0x4b1   :  { %v4548_v52 = vmul.f32 -0.17510794, %v4547_v42 }
 0x4b2   :  { %v4484_v54 = vadd.f32 %v4483_v50, %v4479_v49  ;;  %v4570_v49 = vmul.f32 -0.86405516, %v6434_v45  ;;  %v4557_v50 = vmax.f32 %v4556_v39, 0.0  ;;  %v4566_v53 = vadd.f32 0.0729281, %v4565_v43 }
 0x4b3   :  { %v4553_v57 = vmul.f32 -0.016277457, %v4552_v44  ;;  %v4562_v58 = vmax.f32 %v4561_v48, 0.0 }
 0x4b4   :  { %v4489_v59 = vadd.f32 %v4488_v55, %v4484_v54  ;;  %v4575_v54 = vmul.f32 0.74788547, %v6434_v45  ;;  %v4580_v55 = vmul.f32 -0.3727258, %v6434_v45  ;;  %v4558_v62 = vmul.f32 0.029260634, %v4557_v50 }
 0x4b5   :  { %v4567_v63 = vmax.f32 %v4566_v53, 0.0  ;;  %v4563_v3 = vmul.f32 0.11320283, %v4562_v58 }
 0x4b6   :  { %v4494_v0 = vadd.f32 %v4493_v60, %v4489_v59  ;;  %v4571_v59 = vadd.f32 0.1675642, %v4570_v49  ;;  %v4585_v60 = vmul.f32 -0.6514796, %v6434_v45 }
 0x4b7   :  { %v4568_v8 = vmul.f32 0.060585715, %v4567_v63 }
 0x4b8   :  { %v4499_v5 = vadd.f32 %v4498_v1, %v4494_v0  ;;  %v4576_v0 = vadd.f32 -0.07171761, %v4575_v54  ;;  %v4581_v1 = vadd.f32 0.015031028, %v4580_v55  ;;  %v4572_v4 = vmax.f32 %v4571_v59, 0.0 }
 0x4ba   :  { %v4504_v10 = vadd.f32 %v4503_v6, %v4499_v5  ;;  %v4590_v5 = vmul.f32 -1.0361364, %v6434_v45  ;;  %v4586_v6 = vadd.f32 0.13796614, %v4585_v60  ;;  %v4577_v9 = vmax.f32 %v4576_v0, 0.0 }
 0x4bb   :  { %v4573_v15 = vmul.f32 0.35003236, %v4572_v4 }
 0x4bc   :  { %v4509_v18 = vadd.f32 %v4508_v12, %v4504_v10  ;;  %v4595_v10 = vmul.f32 1.3575982, %v6434_v45  ;;  %v4582_v12 = vmax.f32 %v4581_v1, 0.0  ;;  %v4591_v16 = vadd.f32 -0.027106011, %v4590_v5 }
 0x4bd   :  { %v4578_v21 = vmul.f32 -0.07954988, %v4577_v9 }
 0x4be   :  { %v4514_v23 = vadd.f32 %v4513_v20, %v4509_v18  ;;  %v4600_v18 = vmul.f32 -0.032937203, %v6434_v45  ;;  %v4587_v20 = vmax.f32 %v4586_v6, 0.0  ;;  %v4596_v22 = vadd.f32 0.05181696, %v4595_v10 }
 0x4bf   :  { %v4592_v26 = vmax.f32 %v4591_v16, 0.0 }
 0x4c0   :  { %v4519_v28 = vadd.f32 %v4518_v24, %v4514_v23  ;;  %v4605_v23 = vmul.f32 0.46057326, %v6434_v45  ;;  %v4583_v24 = vmul.f32 0.037879694, %v4582_v12  ;;  %v4601_v27 = vadd.f32 0.11895185, %v4600_v18 }
 0x4c1   :  { %v4597_v30 = vmax.f32 %v4596_v22, 0.0  ;;  %v4593_v33 = vmul.f32 0.4158209, %v4592_v26 }
 0x4c2   :  { %v4524_v14 = vadd.f32 %v4523_v19, %v4519_v28  ;;  %v4610_v28 = vmul.f32 -0.31168324, %v6434_v45  ;;  %v4588_v19 = vmul.f32 -0.024136346, %v4587_v20  ;;  %v4606_v31 = vadd.f32 0.004753467, %v4605_v23 }
 0x4c3   :  { %v4602_v34 = vmax.f32 %v4601_v27, 0.0 }
 0x4c4   :  { %v4529_v35 = vadd.f32 %v4528_v32, %v4524_v14  ;;  %v4615_v14 = vmul.f32 -0.10240236, %v6434_v45  ;;  %v4611_v17 = vadd.f32 0.12672761, %v4610_v28  ;;  %v4607_v37 = vmax.f32 %v4606_v31, 0.0 }
 0x4c6   :  { %v4534_v40 = vadd.f32 %v4533_v36, %v4529_v35  ;;  %v4598_v36 = vmul.f32 0.051434327, %v4597_v30  ;;  %v4616_v38 = vadd.f32 -0.08799541, %v4615_v14  ;;  %v4608_v43 = vmul.f32 -0.12757507, %v4607_v37 }
 0x4c8   :  { %v4539_v46 = vadd.f32 %v4538_v41, %v4534_v40  ;;  %v4603_v40 = vmul.f32 -0.0040789563, %v4602_v34  ;;  %v4612_v41 = vmax.f32 %v4611_v17, 0.0  ;;  %v4617_v44 = vmax.f32 %v4616_v38, 0.0 }
 0x4ca   :  { %v4544_v51 = vadd.f32 %v4543_v47, %v4539_v46  ;;  %v4613_v47 = vmul.f32 -0.1136881, %v4612_v41  ;;  %v4618_v49 = vmul.f32 -0.025452528, %v4617_v44 }
 0x4cc   :  { %v4549_v56 = vadd.f32 %v4548_v52, %v4544_v51 }
 0x4ce   :  { %v4554_v61 = vadd.f32 %v4553_v57, %v4549_v56 }
 0x4d0   :  { %v4559_v2 = vadd.f32 %v4558_v62, %v4554_v61 }
 0x4d2   :  { %v4564_v7 = vadd.f32 %v4563_v3, %v4559_v2 }
 0x4d4   :  { %v4569_v13 = vadd.f32 %v4568_v8, %v4564_v7 }
 0x4d6   :  { %v4574_v11 = vadd.f32 %v4573_v15, %v4569_v13 }
 0x4d8   :  { %v4579_v25 = vadd.f32 %v4578_v21, %v4574_v11 }
 0x4da   :  { %v4584_v29 = vadd.f32 %v4583_v24, %v4579_v25 }
 0x4dc   :  { %v4589_v32 = vadd.f32 %v4588_v19, %v4584_v29 }
 0x4de   :  { %v4594_v35 = vadd.f32 %v4593_v33, %v4589_v32 }
 0x4e0   :  { %v4599_v39 = vadd.f32 %v4598_v36, %v4594_v35 }
 0x4e2   :  { %v4604_v42 = vadd.f32 %v4603_v40, %v4599_v39 }
 0x4e4   :  { %v4609_v46 = vadd.f32 %v4608_v43, %v4604_v42 }
 0x4e6   :  { %v4614_v48 = vadd.f32 %v4613_v47, %v4609_v46 }
 0x4e8   :  { %v4619_v50 = vadd.f32 %v4618_v49, %v4614_v48 }
 0x4ea   :  { %v4620_v45 = vmul.f32 0.5, %v4619_v50 }
 0x4ec   :  { %6149 = vtanh.f32 %v4620_v45 }
 0x4f6   :  { %v6150_v51 = vpop.eup %6149 }
 0x4f7   :  { %v4622_v52 = vmul.f32 50.0, %v6150_v51 }
 0x4f9   :  { %v4623_v53 = vadd.f32 50.0, %v4622_v52 }
 0x4fb   :  { %4624 = vst [vmem:[#allocation13] sm:$0xff] %v4623_v53 }
 0x4fc   :  { %6272 = shalt.err (!%p6269_p2)
}
 0x4fd   :  { %s6273_s6 = scalar_lea.hbm %s6517_s5, 128 }
 0x4fe   :  { %p6274_p3 = scmp.ne.s32.totalorder %s6517_s5, %s6273_s6  ;;  %p6277_p4 = scmp.lt.u32.totalorder %s6273_s6, %s6517_s5 }
 0x500   :  { %p6279_p5 = pnand %p6277_p4, %p6274_p3 }
 0x502   :  { %6282 = shalt.err (!%p6279_p5)
}
 0x503   :  { %4634 = dma.vmem_to_hbm [thread:$0]  %s4632_s28, 128, %s6517_s5, [#allocation6]  }
 0x504   :  { %6289 = dma.done.wait [#allocation6], 128  }
 0x505   :  { %6290 = vsyncadd [#allocation6], 4294967168 }
 0x506   :  { %4638 = vsyncpa [#allocation5], 1 }
 0x507   :  { %4639 = vsyncpa [#allocation8], 1 }
 0x508   :  { %4640 = vsyncpa [#allocation11], 1 }
 0x509   :  { %4641 = vsyncpa [#allocation6], 1 }

</bundles_post_ra>
